<compile_context>
chip_gen: v6e
topology: v6e:2x2x1
jax: 0.10.0
libtpu: 0.0.40
codegen_flags: <defaults>
</compile_context>

<pallas_src>
import numpy as np
import jax
import jax.numpy as jnp
from jax.experimental import pallas as pl
from jax.experimental.pallas import tpu as pltpu


# ----------------------------------------------------------------------------
# Static helpers
# ----------------------------------------------------------------------------
def _freq_bands(multires: int, log_sampling: bool = True):
    """Python-float frequency bands (static, baked into the kernel)."""
    max_freq = multires - 1
    if log_sampling:
        bands = 2.0 ** np.linspace(0.0, float(max_freq), num=multires)
    else:
        bands = np.linspace(2.0 ** 0.0, 2.0 ** float(max_freq), num=multires)
    return [float(f) for f in bands]


def _round_up(x: int, m: int) -> int:
    return ((x + m - 1) // m) * m


def _segments(x_f32, freq_bands, in_dim: int, fast_trig: bool):
    """Yield (row_offset, (in_dim, lanes) f32 value) in output column order."""
    yield 0, x_f32
    if fast_trig:
        # Double-angle recurrence (log-sampled bands are exact powers of two,
        # so theta_k = 2 * theta_{k-1}):  sin(2t)=2sc, cos(2t)=1-2s^2.
        # 2 transcendentals per input element total instead of 2*multires.
        s = jnp.sin(x_f32 * freq_bands[0])
        c = jnp.cos(x_f32 * freq_bands[0])
        for k in range(len(freq_bands)):
            if k > 0:
                s, c = 2.0 * s * c, 1.0 - 2.0 * s * s
            base = in_dim * (1 + 2 * k)
            yield base, s
            yield base + in_dim, c
    else:
        for k, f in enumerate(freq_bands):
            xf = x_f32 * f
            base = in_dim * (1 + 2 * k)
            yield base, jnp.sin(xf)
            yield base + in_dim, jnp.cos(xf)


# ----------------------------------------------------------------------------
# Kernels
# ----------------------------------------------------------------------------
def _make_natural_layout_kernel(freq_bands, in_dim, emb, emb_pad, tile_n, fast_trig):
    """Primary kernel: output block in natural (TILE_N, emb) layout."""
    n_chunks = tile_n // 128

    def kernel(x_ref, o_ref, s_ref):
        # x_ref: (in_dim, TILE_N)   lane-dense input (N on lanes)
        # o_ref: (TILE_N, emb)      natural output layout
        # s_ref: (emb_pad, TILE_N)  f32 VMEM scratch (lane-dense assembly)
        if emb_pad > emb:
            # One-time hygiene init of the pad rows (their transposed lanes are
            # sliced off before the store, so this is not needed for correctness).
            @pl.when(pl.program_id(0) == 0)
            def _init_pad():
                s_ref[emb:emb_pad, :] = jnp.zeros(
                    (emb_pad - emb, tile_n), jnp.float32)

        x = x_ref[...].astype(jnp.float32)

        # Assemble the lane-dense (emb, TILE_N) block in VMEM scratch.  The
        # per-segment stores are sublane-misaligned (in_dim rows each) but off
        # the critical path; the HBM-facing store below is aligned and issued
        # once per 128 output rows.
        for row, val in _segments(x, freq_bands, in_dim, fast_trig):
            s_ref[row:row + in_dim, :] = val

        # Transpose 128-column chunks in registers (XLU, otherwise idle) and
        # write the output block directly in (TILE_N, emb) layout.  Static
        # offsets -> plain vector loads / aligned stores; the block->HBM DMA
        # is a contiguous row slab.
        for c in range(n_chunks):
            lo = c * 128
            blk = s_ref[:, lo:lo + 128]          # (emb_pad, 128) f32
            t = jnp.transpose(blk, (1, 0))       # (128, emb_pad)
            o_ref[lo:lo + 128, :] = t[:, :emb].astype(o_ref.dtype)

    return kernel


def _make_lane_dense_kernel(freq_bands, in_dim, fast_trig):
    """Fallback kernel: lane-dense (emb, TILE_N) output (wrapper transposes)."""
    def kernel(x_ref, o_ref):
        x = x_ref[...].astype(jnp.float32)
        for row, val in _segments(x, freq_bands, in_dim, fast_trig):
            o_ref[row:row + in_dim, :] = val.astype(o_ref.dtype)
    return kernel


# ----------------------------------------------------------------------------
# Wrapper
# ----------------------------------------------------------------------------
_NATURAL_LAYOUT_OK = [True]        # flipped if Mosaic rejects the in-kernel transpose
_NATURAL_LAYOUT_VERIFIED = [False]


def nerf_positional_embedding(x, multires: int, log_sampling: bool = True, *,
                              tile_n: int = 8192, fast_trig: bool = False,
                              out_dtype=None):
    """Pallas TPU implementation of Nerf_positional_embedding.forward.

    Returns (N, emb) with emb = in_dim * (1 + 2 * multires), column order
    identical to torch.cat([x, sin(f0 x), cos(f0 x), ...], dim=1).
    On v7x, tile_n >= 16384 is recommended for large N.
    """
    assert x.ndim == 2, f"Expected 2D input (got {x.ndim}D input)"
    n, in_dim = x.shape
    freq_bands = _freq_bands(multires, log_sampling)
    emb = in_dim * (1 + 2 * multires)
    emb_pad = _round_up(emb, 8)
    if out_dtype is None:
        out_dtype = x.dtype
    out_itemsize = np.dtype(out_dtype).itemsize
    fast = bool(fast_trig) and log_sampling   # recurrence needs power-of-two bands

    # Lane tile: multiple of 128, large enough to amortize the ~0.35us/step
    # grid overhead, capped so the grid keeps >=2 steps whenever N allows it
    # (single "parallel" axis -> both v7x TensorCores busy).
    tile = min(max(128, _round_up(int(tile_n), 128)),
               max(128, _round_up(pl.cdiv(max(n, 1), 2), 128)))

    def _vmem_bytes(t):
        return (2 * in_dim * t * x.dtype.itemsize      # input double buffer
                + 2 * t * emb * out_itemsize           # output double buffer
                + emb_pad * t * 4)                     # f32 assembly scratch

    while tile > 128 and _vmem_bytes(tile) > 20 * 1024 * 1024:
        tile = max(128, _round_up(tile // 2, 128))

    grid = (pl.cdiv(max(n, 1), tile),)

    # N on the lane axis for dense compute.  Only the small (in_dim, N) input
    # is transposed by XLA; the output is produced in (N, emb) by the kernel.
    xt = jnp.transpose(x, (1, 0))

    cost = pl.CostEstimate(
        flops=2 * n * in_dim * (1 + 2 * multires),
        transcendentals=(2 * n * in_dim if fast else 2 * multires * n * in_dim),
        bytes_accessed=n * in_dim * x.dtype.itemsize + n * emb * out_itemsize)
    cparams = pltpu.CompilerParams(dimension_semantics=("parallel",),
                                   vmem_limit_bytes=32 * 1024 * 1024)

    def run_natural_layout():
        kernel = _make_natural_layout_kernel(
            freq_bands, in_dim, emb, emb_pad, tile, fast)
        return pl.pallas_call(
            kernel,
            out_shape=jax.ShapeDtypeStruct((n, emb), out_dtype),
            grid_spec=pltpu.PrefetchScalarGridSpec(
                num_scalar_prefetch=0,
                grid=grid,
                in_specs=[pl.BlockSpec((in_dim, tile), lambda i: (0, i))],
                out_specs=pl.BlockSpec((tile, emb), lambda i: (i, 0)),
                scratch_shapes=[pltpu.VMEM((emb_pad, tile), jnp.float32)]),
            compiler_params=cparams,
            cost_estimate=cost,
        )(xt)

    def run_fallback():
        # Safety net only: lane-dense (emb, N) output + XLA transpose (one
        # extra HBM pass).  Used iff the in-kernel transpose fails to lower.
        kernel = _make_lane_dense_kernel(freq_bands, in_dim, fast)
        out_t = pl.pallas_call(
            kernel,
            out_shape=jax.ShapeDtypeStruct((emb, n), out_dtype),
            grid_spec=pltpu.PrefetchScalarGridSpec(
                num_scalar_prefetch=0,
                grid=grid,
                in_specs=[pl.BlockSpec((in_dim, tile), lambda i: (0, i))],
                out_specs=pl.BlockSpec((emb, tile), lambda i: (0, i))),
            compiler_params=cparams,
            cost_estimate=cost,
        )(xt)
        return jnp.transpose(out_t, (1, 0))

    if _NATURAL_LAYOUT_OK[0]:
        try:
            out = run_natural_layout()
            if not _NATURAL_LAYOUT_VERIFIED[0]:
                jax.block_until_ready(out)   # surface lowering errors once
                _NATURAL_LAYOUT_VERIFIED[0] = True
            return out
        except Exception:
            _NATURAL_LAYOUT_OK[0] = False
    return run_fallback()


# ----------------------------------------------------------------------------
# Reference + self-test
# ----------------------------------------------------------------------------
def _reference(x, multires: int, log_sampling: bool = True):
    freq_bands = _freq_bands(multires, log_sampling)
    outs = [x]
    for f in freq_bands:
        outs.append(jnp.sin(x * f))
        outs.append(jnp.cos(x * f))
    return jnp.concatenate(outs, axis=1)


if __name__ == "__main__":
    key = jax.random.PRNGKey(0)
    k1, k2 = jax.random.split(key)

    # Case 1: typical SLAM point batch (in_dim=3), non-tile-aligned N,
    # multi-block grid (tile is capped to keep >=2 grid steps).
    n1, d1, m1 = 1000, 3, 6
    x1 = jax.random.uniform(k1, (n1, d1), dtype=jnp.float32,
                            minval=-1.0, maxval=1.0)
    out1 = jax.block_until_ready(
        nerf_positional_embedding(x1, m1, log_sampling=True))
    ref1 = _reference(x1, m1, log_sampling=True)
    assert out1.shape == (n1, d1 * (1 + 2 * m1)), out1.shape
    np.testing.assert_allclose(np.asarray(out1), np.asarray(ref1),
                               rtol=2e-5, atol=2e-5)

    # Case 2: in_dim=4, tiny ragged N (single partial block).
    n2, d2, m2 = 77, 4, 4
    x2 = jax.random.normal(k2, (n2, d2), dtype=jnp.float32)
    out2 = jax.block_until_ready(
        nerf_positional_embedding(x2, m2, log_sampling=True))
    ref2 = _reference(x2, m2, log_sampling=True)
    assert out2.shape == (n2, d2 * (1 + 2 * m2)), out2.shape
    np.testing.assert_allclose(np.asarray(out2), np.asarray(ref2),
                               rtol=2e-5, atol=2e-5)

    # Case 3: double-angle recurrence path (approximate -> loose tolerance).
    out3 = jax.block_until_ready(
        nerf_positional_embedding(x1, m1, log_sampling=True, fast_trig=True))
    np.testing.assert_allclose(np.asarray(out3), np.asarray(ref1),
                               rtol=2e-3, atol=2e-3)

    print("KERNEL_OK")
</pallas_src>

<mosaic_0001>
module attributes {stable_mosaic.version = 11 : i64} {
  func.func @kernel(%arg0: i32, %arg1: memref<3x512xf32, #tpu.memory_space<vmem>>, %arg2: memref<512x39xf32, #tpu.memory_space<vmem>>, %arg3: memref<40x512xf32, #tpu.memory_space<vmem>>) attributes {dimension_semantics = [#tpu.dimension_semantics<parallel>], iteration_bounds = array<i64: 2>, scalar_prefetch = 0 : i64, scratch_operands = 1 : i64, tpu.core_type = #tpu.core_type<tc>, window_params = [{transform_indices = @transform_0, window_bounds = array<i64: 3, 512>}, {transform_indices = @transform_1, window_bounds = array<i64: 512, 39>}]} {
    %c0_i32 = arith.constant 0 : i32
    %0 = arith.cmpi eq, %arg0, %c0_i32 : i32
    %1 = arith.extui %0 : i1 to i32
    %c0_i32_0 = arith.constant 0 : i32
    %2 = arith.cmpi ne, %1, %c0_i32_0 : i32
    scf.if %2 {
      %cst_34 = arith.constant 0.000000e+00 : f32
      %57 = vector.broadcast %cst_34 : f32 to vector<1x512xf32>
      %c39 = arith.constant 39 : index
      %c0_35 = arith.constant 0 : index
      %58 = vector.load %arg3[%c39, %c0_35] : memref<40x512xf32, #tpu.memory_space<vmem>>, vector<1x512xf32>
      tpu.vector_store %arg3[%c39, %c0_35], %57 {strides = array<i32>} : memref<40x512xf32, #tpu.memory_space<vmem>>, vector<1x512xf32>,
    } else {
    }
    %c0 = arith.constant 0 : index
    %c0_1 = arith.constant 0 : index
    %3 = vector.load %arg1[%c0, %c0_1] : memref<3x512xf32, #tpu.memory_space<vmem>>, vector<3x512xf32>
    %c0_2 = arith.constant 0 : index
    %c0_3 = arith.constant 0 : index
    %4 = vector.load %arg3[%c0_2, %c0_3] : memref<40x512xf32, #tpu.memory_space<vmem>>, vector<3x512xf32>
    tpu.vector_store %arg3[%c0_2, %c0_3], %3 {strides = array<i32>} : memref<40x512xf32, #tpu.memory_space<vmem>>, vector<3x512xf32>,
    %cst = arith.constant 1.000000e+00 : f32
    %5 = vector.broadcast %cst : f32 to vector<3x512xf32>
    %6 = arith.mulf %3, %5 : vector<3x512xf32>
    %7 = math.sin %6 : vector<3x512xf32>
    %c3 = arith.constant 3 : index
    %c0_4 = arith.constant 0 : index
    %8 = vector.load %arg3[%c3, %c0_4] : memref<40x512xf32, #tpu.memory_space<vmem>>, vector<3x512xf32>
    tpu.vector_store %arg3[%c3, %c0_4], %7 {strides = array<i32>} : memref<40x512xf32, #tpu.memory_space<vmem>>, vector<3x512xf32>,
    %9 = math.cos %6 : vector<3x512xf32>
    %c6 = arith.constant 6 : index
    %c0_5 = arith.constant 0 : index
    %10 = vector.load %arg3[%c6, %c0_5] : memref<40x512xf32, #tpu.memory_space<vmem>>, vector<3x512xf32>
    tpu.vector_store %arg3[%c6, %c0_5], %9 {strides = array<i32>} : memref<40x512xf32, #tpu.memory_space<vmem>>, vector<3x512xf32>,
    %cst_6 = arith.constant 2.000000e+00 : f32
    %11 = vector.broadcast %cst_6 : f32 to vector<3x512xf32>
    %12 = arith.mulf %3, %11 : vector<3x512xf32>
    %13 = math.sin %12 : vector<3x512xf32>
    %c9 = arith.constant 9 : index
    %c0_7 = arith.constant 0 : index
    %14 = vector.load %arg3[%c9, %c0_7] : memref<40x512xf32, #tpu.memory_space<vmem>>, vector<3x512xf32>
    tpu.vector_store %arg3[%c9, %c0_7], %13 {strides = array<i32>} : memref<40x512xf32, #tpu.memory_space<vmem>>, vector<3x512xf32>,
    %15 = math.cos %12 : vector<3x512xf32>
    %c12 = arith.constant 12 : index
    %c0_8 = arith.constant 0 : index
    %16 = vector.load %arg3[%c12, %c0_8] : memref<40x512xf32, #tpu.memory_space<vmem>>, vector<3x512xf32>
    tpu.vector_store %arg3[%c12, %c0_8], %15 {strides = array<i32>} : memref<40x512xf32, #tpu.memory_space<vmem>>, vector<3x512xf32>,
    %cst_9 = arith.constant 4.000000e+00 : f32
    %17 = vector.broadcast %cst_9 : f32 to vector<3x512xf32>
    %18 = arith.mulf %3, %17 : vector<3x512xf32>
    %19 = math.sin %18 : vector<3x512xf32>
    %c15 = arith.constant 15 : index
    %c0_10 = arith.constant 0 : index
    %20 = vector.load %arg3[%c15, %c0_10] : memref<40x512xf32, #tpu.memory_space<vmem>>, vector<3x512xf32>
    tpu.vector_store %arg3[%c15, %c0_10], %19 {strides = array<i32>} : memref<40x512xf32, #tpu.memory_space<vmem>>, vector<3x512xf32>,
    %21 = math.cos %18 : vector<3x512xf32>
    %c18 = arith.constant 18 : index
    %c0_11 = arith.constant 0 : index
    %22 = vector.load %arg3[%c18, %c0_11] : memref<40x512xf32, #tpu.memory_space<vmem>>, vector<3x512xf32>
    tpu.vector_store %arg3[%c18, %c0_11], %21 {strides = array<i32>} : memref<40x512xf32, #tpu.memory_space<vmem>>, vector<3x512xf32>,
    %cst_12 = arith.constant 8.000000e+00 : f32
    %23 = vector.broadcast %cst_12 : f32 to vector<3x512xf32>
    %24 = arith.mulf %3, %23 : vector<3x512xf32>
    %25 = math.sin %24 : vector<3x512xf32>
    %c21 = arith.constant 21 : index
    %c0_13 = arith.constant 0 : index
    %26 = vector.load %arg3[%c21, %c0_13] : memref<40x512xf32, #tpu.memory_space<vmem>>, vector<3x512xf32>
    tpu.vector_store %arg3[%c21, %c0_13], %25 {strides = array<i32>} : memref<40x512xf32, #tpu.memory_space<vmem>>, vector<3x512xf32>,
    %27 = math.cos %24 : vector<3x512xf32>
    %c24 = arith.constant 24 : index
    %c0_14 = arith.constant 0 : index
    %28 = vector.load %arg3[%c24, %c0_14] : memref<40x512xf32, #tpu.memory_space<vmem>>, vector<3x512xf32>
    tpu.vector_store %arg3[%c24, %c0_14], %27 {strides = array<i32>} : memref<40x512xf32, #tpu.memory_space<vmem>>, vector<3x512xf32>,
    %cst_15 = arith.constant 1.600000e+01 : f32
    %29 = vector.broadcast %cst_15 : f32 to vector<3x512xf32>
    %30 = arith.mulf %3, %29 : vector<3x512xf32>
    %31 = math.sin %30 : vector<3x512xf32>
    %c27 = arith.constant 27 : index
    %c0_16 = arith.constant 0 : index
    %32 = vector.load %arg3[%c27, %c0_16] : memref<40x512xf32, #tpu.memory_space<vmem>>, vector<3x512xf32>
    tpu.vector_store %arg3[%c27, %c0_16], %31 {strides = array<i32>} : memref<40x512xf32, #tpu.memory_space<vmem>>, vector<3x512xf32>,
    %33 = math.cos %30 : vector<3x512xf32>
    %c30 = arith.constant 30 : index
    %c0_17 = arith.constant 0 : index
    %34 = vector.load %arg3[%c30, %c0_17] : memref<40x512xf32, #tpu.memory_space<vmem>>, vector<3x512xf32>
    tpu.vector_store %arg3[%c30, %c0_17], %33 {strides = array<i32>} : memref<40x512xf32, #tpu.memory_space<vmem>>, vector<3x512xf32>,
    %cst_18 = arith.constant 3.200000e+01 : f32
    %35 = vector.broadcast %cst_18 : f32 to vector<3x512xf32>
    %36 = arith.mulf %3, %35 : vector<3x512xf32>
    %37 = math.sin %36 : vector<3x512xf32>
    %c33 = arith.constant 33 : index
    %c0_19 = arith.constant 0 : index
    %38 = vector.load %arg3[%c33, %c0_19] : memref<40x512xf32, #tpu.memory_space<vmem>>, vector<3x512xf32>
    tpu.vector_store %arg3[%c33, %c0_19], %37 {strides = array<i32>} : memref<40x512xf32, #tpu.memory_space<vmem>>, vector<3x512xf32>,
    %39 = math.cos %36 : vector<3x512xf32>
    %c36 = arith.constant 36 : index
    %c0_20 = arith.constant 0 : index
    %40 = vector.load %arg3[%c36, %c0_20] : memref<40x512xf32, #tpu.memory_space<vmem>>, vector<3x512xf32>
    tpu.vector_store %arg3[%c36, %c0_20], %39 {strides = array<i32>} : memref<40x512xf32, #tpu.memory_space<vmem>>, vector<3x512xf32>,
    %c0_21 = arith.constant 0 : index
    %c0_22 = arith.constant 0 : index
    %41 = vector.load %arg3[%c0_21, %c0_22] : memref<40x512xf32, #tpu.memory_space<vmem>>, vector<40x128xf32>
    %42 = tpu.transpose %41, [1, 0] : vector<40x128xf32> -> vector<128x40xf32>
    %43 = vector.extract_strided_slice %42 {offsets = [0, 0], sizes = [128, 39], strides = [1, 1]} : vector<128x40xf32> to vector<128x39xf32>
    %c0_23 = arith.constant 0 : index
    %c0_24 = arith.constant 0 : index
    %44 = vector.load %arg2[%c0_23, %c0_24] : memref<512x39xf32, #tpu.memory_space<vmem>>, vector<128x39xf32>
    tpu.vector_store %arg2[%c0_23, %c0_24], %43 {strides = array<i32>} : memref<512x39xf32, #tpu.memory_space<vmem>>, vector<128x39xf32>,
    %c0_25 = arith.constant 0 : index
    %c128 = arith.constant 128 : index
    %45 = vector.load %arg3[%c0_25, %c128] : memref<40x512xf32, #tpu.memory_space<vmem>>, vector<40x128xf32>
    %46 = tpu.transpose %45, [1, 0] : vector<40x128xf32> -> vector<128x40xf32>
    %47 = vector.extract_strided_slice %46 {offsets = [0, 0], sizes = [128, 39], strides = [1, 1]} : vector<128x40xf32> to vector<128x39xf32>
    %c128_26 = arith.constant 128 : index
    %c0_27 = arith.constant 0 : index
    %48 = vector.load %arg2[%c128_26, %c0_27] : memref<512x39xf32, #tpu.memory_space<vmem>>, vector<128x39xf32>
    tpu.vector_store %arg2[%c128_26, %c0_27], %47 {strides = array<i32>} : memref<512x39xf32, #tpu.memory_space<vmem>>, vector<128x39xf32>,
    %c0_28 = arith.constant 0 : index
    %c256 = arith.constant 256 : index
    %49 = vector.load %arg3[%c0_28, %c256] : memref<40x512xf32, #tpu.memory_space<vmem>>, vector<40x128xf32>
    %50 = tpu.transpose %49, [1, 0] : vector<40x128xf32> -> vector<128x40xf32>
    %51 = vector.extract_strided_slice %50 {offsets = [0, 0], sizes = [128, 39], strides = [1, 1]} : vector<128x40xf32> to vector<128x39xf32>
    %c256_29 = arith.constant 256 : index
    %c0_30 = arith.constant 0 : index
    %52 = vector.load %arg2[%c256_29, %c0_30] : memref<512x39xf32, #tpu.memory_space<vmem>>, vector<128x39xf32>
    tpu.vector_store %arg2[%c256_29, %c0_30], %51 {strides = array<i32>} : memref<512x39xf32, #tpu.memory_space<vmem>>, vector<128x39xf32>,
    %c0_31 = arith.constant 0 : index
    %c384 = arith.constant 384 : index
    %53 = vector.load %arg3[%c0_31, %c384] : memref<40x512xf32, #tpu.memory_space<vmem>>, vector<40x128xf32>
    %54 = tpu.transpose %53, [1, 0] : vector<40x128xf32> -> vector<128x40xf32>
    %55 = vector.extract_strided_slice %54 {offsets = [0, 0], sizes = [128, 39], strides = [1, 1]} : vector<128x40xf32> to vector<128x39xf32>
    %c384_32 = arith.constant 384 : index
    %c0_33 = arith.constant 0 : index
    %56 = vector.load %arg2[%c384_32, %c0_33] : memref<512x39xf32, #tpu.memory_space<vmem>>, vector<128x39xf32>
    tpu.vector_store %arg2[%c384_32, %c0_33], %55 {strides = array<i32>} : memref<512x39xf32, #tpu.memory_space<vmem>>, vector<128x39xf32>,
    return
  }
  func.func @transform_0(%arg0: i32) -> (i32, i32) {
    %c0_i32 = arith.constant 0 : i32
    %c0_i32_0 = arith.constant 0 : i32
    return %c0_i32, %arg0 : i32, i32
  }
  func.func @transform_1(%arg0: i32) -> (i32, i32) {
    %c0_i32 = arith.constant 0 : i32
    %c0_i32_0 = arith.constant 0 : i32
    return %arg0, %c0_i32 : i32, i32
  }
}

module attributes {stable_mosaic.version = 11 : i64} {
  func.func @kernel(%arg0: i32, %arg1: memref<3x512xf32, #tpu.memory_space<vmem>>, %arg2: memref<39x512xf32, #tpu.memory_space<vmem>>) attributes {dimension_semantics = [#tpu.dimension_semantics<parallel>], iteration_bounds = array<i64: 2>, scalar_prefetch = 0 : i64, scratch_operands = 0 : i64, tpu.core_type = #tpu.core_type<tc>, window_params = [{transform_indices = @transform_0, window_bounds = array<i64: 3, 512>}, {transform_indices = @transform_1, window_bounds = array<i64: 39, 512>}]} {
    %c0 = arith.constant 0 : index
    %c0_0 = arith.constant 0 : index
    %0 = vector.load %arg1[%c0, %c0_0] : memref<3x512xf32, #tpu.memory_space<vmem>>, vector<3x512xf32>
    %c0_1 = arith.constant 0 : index
    %c0_2 = arith.constant 0 : index
    %1 = vector.load %arg2[%c0_1, %c0_2] : memref<39x512xf32, #tpu.memory_space<vmem>>, vector<3x512xf32>
    tpu.vector_store %arg2[%c0_1, %c0_2], %0 {strides = array<i32>} : memref<39x512xf32, #tpu.memory_space<vmem>>, vector<3x512xf32>,
    %cst = arith.constant 1.000000e+00 : f32
    %2 = vector.broadcast %cst : f32 to vector<3x512xf32>
    %3 = arith.mulf %0, %2 : vector<3x512xf32>
    %4 = math.sin %3 : vector<3x512xf32>
    %c3 = arith.constant 3 : index
    %c0_3 = arith.constant 0 : index
    %5 = vector.load %arg2[%c3, %c0_3] : memref<39x512xf32, #tpu.memory_space<vmem>>, vector<3x512xf32>
    tpu.vector_store %arg2[%c3, %c0_3], %4 {strides = array<i32>} : memref<39x512xf32, #tpu.memory_space<vmem>>, vector<3x512xf32>,
    %6 = math.cos %3 : vector<3x512xf32>
    %c6 = arith.constant 6 : index
    %c0_4 = arith.constant 0 : index
    %7 = vector.load %arg2[%c6, %c0_4] : memref<39x512xf32, #tpu.memory_space<vmem>>, vector<3x512xf32>
    tpu.vector_store %arg2[%c6, %c0_4], %6 {strides = array<i32>} : memref<39x512xf32, #tpu.memory_space<vmem>>, vector<3x512xf32>,
    %cst_5 = arith.constant 2.000000e+00 : f32
    %8 = vector.broadcast %cst_5 : f32 to vector<3x512xf32>
    %9 = arith.mulf %0, %8 : vector<3x512xf32>
    %10 = math.sin %9 : vector<3x512xf32>
    %c9 = arith.constant 9 : index
    %c0_6 = arith.constant 0 : index
    %11 = vector.load %arg2[%c9, %c0_6] : memref<39x512xf32, #tpu.memory_space<vmem>>, vector<3x512xf32>
    tpu.vector_store %arg2[%c9, %c0_6], %10 {strides = array<i32>} : memref<39x512xf32, #tpu.memory_space<vmem>>, vector<3x512xf32>,
    %12 = math.cos %9 : vector<3x512xf32>
    %c12 = arith.constant 12 : index
    %c0_7 = arith.constant 0 : index
    %13 = vector.load %arg2[%c12, %c0_7] : memref<39x512xf32, #tpu.memory_space<vmem>>, vector<3x512xf32>
    tpu.vector_store %arg2[%c12, %c0_7], %12 {strides = array<i32>} : memref<39x512xf32, #tpu.memory_space<vmem>>, vector<3x512xf32>,
    %cst_8 = arith.constant 4.000000e+00 : f32
    %14 = vector.broadcast %cst_8 : f32 to vector<3x512xf32>
    %15 = arith.mulf %0, %14 : vector<3x512xf32>
    %16 = math.sin %15 : vector<3x512xf32>
    %c15 = arith.constant 15 : index
    %c0_9 = arith.constant 0 : index
    %17 = vector.load %arg2[%c15, %c0_9] : memref<39x512xf32, #tpu.memory_space<vmem>>, vector<3x512xf32>
    tpu.vector_store %arg2[%c15, %c0_9], %16 {strides = array<i32>} : memref<39x512xf32, #tpu.memory_space<vmem>>, vector<3x512xf32>,
    %18 = math.cos %15 : vector<3x512xf32>
    %c18 = arith.constant 18 : index
    %c0_10 = arith.constant 0 : index
    %19 = vector.load %arg2[%c18, %c0_10] : memref<39x512xf32, #tpu.memory_space<vmem>>, vector<3x512xf32>
    tpu.vector_store %arg2[%c18, %c0_10], %18 {strides = array<i32>} : memref<39x512xf32, #tpu.memory_space<vmem>>, vector<3x512xf32>,
    %cst_11 = arith.constant 8.000000e+00 : f32
    %20 = vector.broadcast %cst_11 : f32 to vector<3x512xf32>
    %21 = arith.mulf %0, %20 : vector<3x512xf32>
    %22 = math.sin %21 : vector<3x512xf32>
    %c21 = arith.constant 21 : index
    %c0_12 = arith.constant 0 : index
    %23 = vector.load %arg2[%c21, %c0_12] : memref<39x512xf32, #tpu.memory_space<vmem>>, vector<3x512xf32>
    tpu.vector_store %arg2[%c21, %c0_12], %22 {strides = array<i32>} : memref<39x512xf32, #tpu.memory_space<vmem>>, vector<3x512xf32>,
    %24 = math.cos %21 : vector<3x512xf32>
    %c24 = arith.constant 24 : index
    %c0_13 = arith.constant 0 : index
    %25 = vector.load %arg2[%c24, %c0_13] : memref<39x512xf32, #tpu.memory_space<vmem>>, vector<3x512xf32>
    tpu.vector_store %arg2[%c24, %c0_13], %24 {strides = array<i32>} : memref<39x512xf32, #tpu.memory_space<vmem>>, vector<3x512xf32>,
    %cst_14 = arith.constant 1.600000e+01 : f32
    %26 = vector.broadcast %cst_14 : f32 to vector<3x512xf32>
    %27 = arith.mulf %0, %26 : vector<3x512xf32>
    %28 = math.sin %27 : vector<3x512xf32>
    %c27 = arith.constant 27 : index
    %c0_15 = arith.constant 0 : index
    %29 = vector.load %arg2[%c27, %c0_15] : memref<39x512xf32, #tpu.memory_space<vmem>>, vector<3x512xf32>
    tpu.vector_store %arg2[%c27, %c0_15], %28 {strides = array<i32>} : memref<39x512xf32, #tpu.memory_space<vmem>>, vector<3x512xf32>,
    %30 = math.cos %27 : vector<3x512xf32>
    %c30 = arith.constant 30 : index
    %c0_16 = arith.constant 0 : index
    %31 = vector.load %arg2[%c30, %c0_16] : memref<39x512xf32, #tpu.memory_space<vmem>>, vector<3x512xf32>
    tpu.vector_store %arg2[%c30, %c0_16], %30 {strides = array<i32>} : memref<39x512xf32, #tpu.memory_space<vmem>>, vector<3x512xf32>,
    %cst_17 = arith.constant 3.200000e+01 : f32
    %32 = vector.broadcast %cst_17 : f32 to vector<3x512xf32>
    %33 = arith.mulf %0, %32 : vector<3x512xf32>
    %34 = math.sin %33 : vector<3x512xf32>
    %c33 = arith.constant 33 : index
    %c0_18 = arith.constant 0 : index
    %35 = vector.load %arg2[%c33, %c0_18] : memref<39x512xf32, #tpu.memory_space<vmem>>, vector<3x512xf32>
    tpu.vector_store %arg2[%c33, %c0_18], %34 {strides = array<i32>} : memref<39x512xf32, #tpu.memory_space<vmem>>, vector<3x512xf32>,
    %36 = math.cos %33 : vector<3x512xf32>
    %c36 = arith.constant 36 : index
    %c0_19 = arith.constant 0 : index
    %37 = vector.load %arg2[%c36, %c0_19] : memref<39x512xf32, #tpu.memory_space<vmem>>, vector<3x512xf32>
    tpu.vector_store %arg2[%c36, %c0_19], %36 {strides = array<i32>} : memref<39x512xf32, #tpu.memory_space<vmem>>, vector<3x512xf32>,
    return
  }
  func.func @transform_0(%arg0: i32) -> (i32, i32) {
    %c0_i32 = arith.constant 0 : i32
    %c0_i32_0 = arith.constant 0 : i32
    return %c0_i32, %arg0 : i32, i32
  }
  func.func @transform_1(%arg0: i32) -> (i32, i32) {
    %c0_i32 = arith.constant 0 : i32
    %c0_i32_0 = arith.constant 0 : i32
    return %c0_i32, %arg0 : i32, i32
  }
}

</mosaic_0001>

<bundles_post_ra>
// kernel: tpu_custom_call.1
= control target key start
LH: loop header
LB: loop body
LE: loop exit
PB: predicated region body
PF: predicated region fallthrough
CT: control target
= control target key end

     0   :  { %6 = vsyncpa [#allocation4], 0  ;;  %s5582_s0 = inlined_call_operand.hbm [shape: f32[3,1000], index: 0, kind: input, shape index: {}]   ;;  %s5583_s1 = inlined_call_operand.vmem [shape: f32[1000,39], index: 1, kind: output, shape index: {}]  }
   0x1   :  { %8 = vsyncpa [#allocation4 + $0x1], 0  ;;  %s4012_s6 = smov 0   ;;  %s4014_s7 = smov 0  }
   0x2   :  { %s4016_s8 = smov 0   ;;  %s4018_s9 = smov 0  }
   0x3 LB: > { %s4031_s10 = sadd.s32 4294967295, %s3960_s9   ;;  %s4034_s11 = sadd.s32 1, %s3960_s9   ;;  %s3960_s9 = sphi %s4018_s9, %s5623_s9   ;;  %s3956_s8 = sphi %s4016_s8, %s5622_s8   ;;  %s3952_s7 = sphi %s4014_s7, %s5621_s7   ;;  %s3948_s6 = sphi %s4012_s6, %s5620_s6  }
   0x4   : > { %s18_s12 = ssub.s32 %s3960_s9, %s4034_s11  ;;  %s21_s13 = sadd.s32 1, %s3956_s8 }
   0x5   : > { %p19_p0 = scmp.eq.s32.totalorder %s18_s12, 0  ;;  %p28_p1 = scmp.ne.s32.totalorder %s3956_s8, %s3952_s7 }
   0x6   : > { %p29_p2 = scmp.eq.s32.totalorder %s3960_s9, 0  ;;  %p34_p3 = scmp.ne.s32.totalorder %s3952_s7, %s3948_s6 }
   0x7   : > { %s4044_s14 = scalar_select %p19_p0, %s3956_s8, %s21_s13  }
   0x8   : > { %p4046_p4 = por %p29_p2, %p28_p1  ;;  %p35_p5 = scmp.eq.s32.totalorder %s4031_s10, 0 }
   0x9   : > { %p58_p6 = scmp.eq.s32.totalorder %s4031_s10, 1  ;;  %p3711_p8 = scmp.lt.s32.totalorder %s3960_s9, 2 }
   0xa   : > { %p4052_p7 = por %p35_p5, %p34_p3  ;;  %s84_s18 = sand.u32 1, %s3956_s8  }
   0xb   : > { %p4057_p9 = por %p58_p6, %p28_p1  ;;  %s3533_s19 = sshll.u32 %s84_s18, 4 }
   0xc   : > { %s5586_s16 = scalar_select %p4052_p7, 1, 0 }
   0xd   : > { %s5587_s17 = scalar_select %p4057_p9, 1, 0 }
   0xe   : > { %s3653_s20 = sshll.u32 %s3960_s9, 8  ;;  %s88_s24 = scalar_lea.vmem [#allocation3], %s3533_s19 }
   0xf   : > { %s4066_s23 = scalar_lea.hbm %s5582_s0, %s3653_s20  ;;  %s96_s25 = sshll.u32 %s88_s24, 4  ;;  %s4068_s25 = int_to_ptr.vmem [resolvable:$true] %s96_s25 }
  0x10   : > { %p4072_p10 = pnand %p3711_p8, %p4046_p4  ;;  %s85_s27 = scalar_lea.sflag [#allocation4], %s84_s18 }
  0x11   : > { %s3866_s28 = scalar_lea.hbm %s4066_s23, 256  ;;  %s3871_s2 = scalar_lea.hbm %s5582_s0, 512 }
  0x12   : > { %p3867_p13 = scmp.ne.s32.totalorder %s4066_s23, %s3866_s28  ;;  %p3868_p0 = pneg %p4072_p10 }
  0x13   : > { %p3872_p3 = scmp.lt.s32.totalorder %s4066_s23, %s5582_s0  ;;  %p3873_p4 = scmp.lt.s32.totalorder %s3871_s2, %s3866_s28 }
  0x14   : > { %p3869_p1 = pnand %p3868_p0, %p3867_p13 }
  0x15   : > { %p3874_p5 = por %p3873_p4, %p3872_p3 }
  0x16   : > { %p3870_p2 = pneg %p3869_p1 }
  0x18   : > { %p3875_p6 = pnand %p3874_p5, %p3870_p2 }
  0x1a   : > { %3878 = shalt.err (!%p3875_p6)
}
  0x1b   : > { %s3879_s5 = scalar_lea.vmem %s4068_s25, 256  ;;  %s3994_s6 = smov [#allocation3]  }
  0x1c   : > { %p3880_p8 = scmp.ne.s32.totalorder %s4068_s25, %s3879_s5  ;;  %s3884_s12 = sshll.u32 %s3994_s6, 4  ;;  %s3885_s12 = int_to_ptr.vmem [resolvable:$false] %s3884_s12 }
  0x1d   : > { %s3886_s13 = scalar_lea.vmem %s3885_s12, 512  ;;  %p3887_p1 = scmp.lt.s32.totalorder %s4068_s25, %s3885_s12 }
  0x1e   : > { %p3882_p11 = pnand %p3880_p8, %p3868_p0  ;;  %p3888_p12 = scmp.lt.s32.totalorder %s3886_s13, %s3879_s5 }
  0x20   : > { %p3883_p13 = pneg %p3882_p11  ;;  %p3889_p9 = por %p3888_p12, %p3887_p1 }
  0x22   : > { %p3890_p7 = pnand %p3889_p9, %p3883_p13 }
  0x24   : > { %3893 = shalt.err (!%p3890_p7)
}
  0x25   : > { %3710 = dma.hbm_to_vmem [thread:$0]  (!%p4072_p10), %s4066_s23, 256, %s4068_s25, %s85_s27  }
  0x26   : > { %p5589_p2 = scmp.lt.s32.totalorder %s3960_s9, 3  ;;  %p5590_p3 = scmp.ge.s32.totalorder %s3960_s9, 1 }
  0x28   : > { %p102_p0 = pnand %p5590_p3, %p5589_p2 }
  0x29   : > { %s107_s15 = sand.u32 (!%p102_p0), 1, %s3952_s7   ;;  %p5591_p9 = scmp.ne.s32.totalorder (!%p102_p0), %s5586_s16, 0 }
  0x2a   : > { %105 = sbr.rel (%p102_p0) target bundleno = 677 (0x2a5), region = 24  ;;  %s3537_s18 = sshll.u32 (!%p102_p0), %s107_s15, 4 }
  0x2b   : > { %s108_s19 = scalar_lea.sflag (!%p102_p0), [#allocation4], %s107_s15  ;;  %s4101_s20 = scalar_lea.vmem (!%p102_p0), [#allocation3], %s3537_s18 }
  0x2f   : > { %3943 = dma.done.wait (%p5591_p9), %s108_s19, 256  }
  0x30   : > { %3945 = vsyncadd (%p5591_p9), %s108_s19, 4294967040  ;;  %s3538_s21 = sshll.u32 %s107_s15, 9  ;;  %p3539_p7 = scmp.ne.s32.totalorder %s4031_s10, 0 }
  0x31   : > { %s4107_s22 = scalar_lea.vmem [#allocation5], %s3538_s21  }
  0x32   : > { %138 = sbr.rel (%p3539_p7) target bundleno = 59 (0x3b), region = 32 }
  0x37   : > { %v139_v0 = vlaneseq  ;;  %v3995_v1 = vmov 0.0  }
  0x39   : > { %vm141_vm0 = vcmp.lt.s32.totalorder %v139_v0, 512 }
  0x3a   : > { %144 = vst.msk [vmem:[#allocation2 + $0x87] ss:$8 sm:$0xf] %vm141_vm0, %v3995_v1 }
  0x3b PF: > { %v4111_v2 = vld [vmem:[%s4101_s20] sm:$0x77]  ;;  %v3996_v28 = vmov 683565275   ;;  %v3997_v30 = vmov 2475754826  }
  0x3c   : > { %154 = vst [vmem:[#allocation2] sm:$0x7] %v4111_v2  ;;  %v158_v3 = vand.u32 2147483647, %v4111_v2  ;;  %v161_v4 = vand.u32 2139095040, %v4111_v2  ;;  %v150_v6 = vcombine.high %v4111_v2, %v4111_v2  ;;  %v4121_v8 = vmul.f32 2.0, %v4111_v2 }
  0x3d   : > { %v4124_v9 = vmul.f32 4.0, %v4111_v2  ;;  %v3998_v32 = vmov 2131351028   ;;  %v3999_v34 = vmov 2102212464   ;;  %vm160_vm15 = vcmp.lt.s32.totalorder %v4111_v2, 0 }
  0x3e   : > { %v162_v5 = vshrl.u32 %v161_v4, 23  ;;  %v165_v7 = vand.u32 8388607, %v158_v3  ;;  %155 = vst [vmem:[#allocation2 + $0x8] sm:$0x7] %v150_v6  ;;  %v613_v12 = vand.u32 2139095040, %v4121_v8 }
  0x3f   : > { %v610_v11 = vand.u32 2147483647, %v4121_v8  ;;  %v1055_v17 = vand.u32 2139095040, %v4124_v9  ;;  %v4000_v36 = vmov 920167782   ;;  %p5614_p10 = scmp.ne.s32.totalorder %s5587_s17, 0 }
  0x40   : > { %v3540_v10 = vadd.s32 4294967169, %v162_v5  ;;  %v166_v14 = vor.u32 8388608, %v165_v7  ;;  %v614_v15 = vshrl.u32 %v613_v12, 23  ;;  %v4001_v44 = vmov 1326507024   ;;  %s3637_s9 = sshll.u32 (%p5614_p10), %s4031_s10, 6 }
  0x41   : > { %v617_v16 = vand.u32 8388607, %v610_v11  ;;  %v1056_v21 = vshrl.u32 %v1055_v17, 23  ;;  %vm4216_vm14 = vcmp.le.f32.partialorder %v158_v3, 0.7853982  ;;  %s3654_s16 = sshll.u32 (%p5614_p10), %s4031_s10, 9 }
  0x42   : > { %v168_v13 = vadd.s32 1, %v3540_v10  ;;  %v3556_v19 = vadd.s32 4294967169, %v614_v15  ;;  %v4131_v24 = vshll.u32 %v166_v14, 8  ;;  %s3059_s23 = ssub.s32 (%p5614_p10), 125, %s3637_s9  ;;  %s5380_s26 = scalar_lea.vmem (%p5614_p10), %s5583_s1, %s3654_s16  }
  0x43   : > { %v618_v20 = vor.u32 8388608, %v617_v16  ;;  %v3572_v38 = vadd.s32 4294967169, %v1056_v21  ;;  %p3060_p11 = scmp.lt.s32.totalorder (%p5614_p10), %s3059_s23, 64 }
  0x44   : > { %vm169_vm1 = vcmp.gt.s32.totalorder %v168_v13, 0  ;;  %v620_v25 = vadd.s32 1, %v3556_v19 }
  0x45   : > { %v170_v18 = vsel %vm169_vm1, %v168_v13, 0  ;;  %v4133_v26 = vshll.u32 %v618_v20, 8  ;;  %v1062_v5 = vadd.s32 1, %v3572_v38 }
  0x46   : > { %v171_v22 = vshrl.u32 %v170_v18, 5  ;;  %v172_v23 = vand.u32 31, %v170_v18  ;;  %vm621_vm5 = vcmp.gt.s32.totalorder %v620_v25, 0 }
  0x47   : > { %v622_v51 = vsel %vm621_vm5, %v620_v25, 0  ;;  %vm1063_vm12 = vcmp.gt.s32.totalorder %v1062_v5, 0  ;;  %vm612_vm5 = vcmp.lt.s32.totalorder %v4121_v8, 0 }
  0x48   : > { %v173_v27 = vsub.s32 32, %v172_v23  ;;  %v175_v29 = vshll.u32 %v3996_v28, %v172_v23  ;;  %v178_v31 = vshll.u32 %v3997_v30, %v172_v23  ;;  %v181_v33 = vshll.u32 %v3998_v32, %v172_v23 }
  0x49   : > { %v184_v35 = vshll.u32 %v3999_v34, %v172_v23  ;;  %v187_v37 = vshll.u32 %v4000_v36, %v172_v23  ;;  %vm190_vm2 = vcmp.lt.s32.totalorder %v171_v22, 1  ;;  %vm191_vm3 = vcmp.lt.s32.totalorder %v171_v22, 2 }
  0x4a   : > { %v174_v39 = vshrl.u32 %v3996_v28, %v173_v27  ;;  %v176_v40 = vshrl.u32 %v3997_v30, %v173_v27  ;;  %v179_v41 = vshrl.u32 %v3998_v32, %v173_v27  ;;  %v182_v42 = vshrl.u32 %v3999_v34, %v173_v27 }
  0x4b   : > { %v185_v43 = vshrl.u32 %v4000_v36, %v173_v27  ;;  %v188_v45 = vshrl.u32 %v4001_v44, %v173_v27  ;;  %vm193_vm4 = vcmp.lt.s32.totalorder %v171_v22, 4  ;;  %vm192_vm6 = vcmp.lt.s32.totalorder %v171_v22, 3 }
  0x4c   : > { %v177_v46 = vor.u32 %v176_v40, %v175_v29  ;;  %v180_v47 = vor.u32 %v179_v41, %v178_v31  ;;  %v183_v48 = vor.u32 %v182_v42, %v181_v33  ;;  %v623_v59 = vshrl.u32 %v622_v51, 5 }
  0x4d   : > { %v186_v49 = vor.u32 %v185_v43, %v184_v35  ;;  %v189_v50 = vor.u32 %v188_v45, %v187_v37  ;;  %v624_v63 = vand.u32 31, %v622_v51 }
  0x4e   : > { %v194_v52 = vsel %vm190_vm2, %v174_v39, %v177_v46  ;;  %v195_v53 = vsel %vm193_vm4, %v183_v48, 2102212464  ;;  %v198_v54 = vsel %vm190_vm2, %v177_v46, %v180_v47  ;;  %v202_v55 = vsel %vm190_vm2, %v180_v47, %v183_v48 }
  0x4f   : > { %v196_v56 = vsel %vm192_vm6, %v180_v47, %v195_v53  ;;  %v199_v57 = vsel %vm193_vm4, %v186_v49, 920167782  ;;  %v203_v58 = vsel %vm193_vm4, %v189_v50, 1326507024  ;;  %v625_v13 = vsub.s32 32, %v624_v63 }
  0x50   : > { %v197_v60 = vsel %vm191_vm3, %v194_v52, %v196_v56  ;;  %v200_v61 = vsel %vm192_vm6, %v183_v48, %v199_v57  ;;  %v204_v62 = vsel %vm192_vm6, %v186_v49, %v203_v58  ;;  %v627_v14 = vshll.u32 %v3996_v28, %v624_v63 }
  0x51   : > { %v201_v0 = vsel %vm191_vm3, %v198_v54, %v200_v61  ;;  %v205_v1 = vsel %vm191_vm3, %v202_v55, %v204_v62  ;;  %v213_v4 = vmul.u32 %v4131_v24, %v197_v60  ;;  %v630_v15 = vshll.u32 %v3997_v30, %v624_v63 }
  0x52   : > { %v4154_v6 = vmul.u32.u64.low %v4131_v24, %v205_v1  ;;  %v4155_v7 = vmul.u32.u64.high %v4131_v24, %v205_v1, %v4154_v6  ;;  %v4158_v10 = vmul.u32.u64.low %v4131_v24, %v201_v0  ;;  %v4159_v12 = vmul.u32.u64.high %v4131_v24, %v201_v0, %v4158_v10 }
  0x53   : > { %v633_v16 = vshll.u32 %v3998_v32, %v624_v63  ;;  %v636_v17 = vshll.u32 %v3999_v34, %v624_v63  ;;  %v639_v18 = vshll.u32 %v4000_v36, %v624_v63  ;;  %vm642_vm7 = vcmp.lt.s32.totalorder %v623_v59, 1 }
  0x54   : > { %vm643_vm8 = vcmp.lt.s32.totalorder %v623_v59, 2  ;;  %v626_v19 = vshrl.u32 %v3996_v28, %v625_v13  ;;  %v628_v20 = vshrl.u32 %v3997_v30, %v625_v13  ;;  %v631_v21 = vshrl.u32 %v3998_v32, %v625_v13 }
  0x55   : > { %v634_v22 = vshrl.u32 %v3999_v34, %v625_v13  ;;  %vm215_vm9 = vc.u32 %v4155_v7, %v4158_v10  ;;  %v216_v23 = vadd.s32 1, %v4159_v12  ;;  %v637_v24 = vshrl.u32 %v4000_v36, %v625_v13 }
  0x56   : > { %vm644_vm10 = vcmp.lt.s32.totalorder %v623_v59, 3  ;;  %v629_v25 = vor.u32 %v628_v20, %v627_v14  ;;  %v632_v27 = vor.u32 %v631_v21, %v630_v15  ;;  %v640_v31 = vshrl.u32 %v4001_v44, %v625_v13 }
  0x57   : > { %v635_v29 = vor.u32 %v634_v22, %v633_v16  ;;  %v217_v33 = vsel %vm215_vm9, %v216_v23, %v4159_v12  ;;  %v638_v35 = vor.u32 %v637_v24, %v636_v17  ;;  %vm645_vm11 = vcmp.lt.s32.totalorder %v623_v59, 4 }
  0x58   : > { %v218_v37 = vadd.s32 %v217_v33, %v213_v4  ;;  %v641_v38 = vor.u32 %v640_v31, %v639_v18  ;;  %v646_v39 = vsel %vm642_vm7, %v626_v19, %v629_v25  ;;  %v650_v42 = vsel %vm642_vm7, %v629_v25, %v632_v27  ;;  %v4208_v19 = vld [vmem:[%s4101_s20 + $0x8] sm:$0x77] }
  0x59   : > { %v647_v40 = vsel %vm645_vm11, %v635_v29, 2102212464  ;;  %v651_v43 = vsel %vm645_vm11, %v638_v35, 920167782  ;;  %v654_v45 = vsel %vm642_vm7, %v632_v27, %v635_v29  ;;  %v1052_v49 = vand.u32 2147483647, %v4124_v9 }
  0x5a   : > { %v648_v41 = vsel %vm644_vm10, %v632_v27, %v647_v40  ;;  %v219_v46 = vadd.s32 536870912, %v218_v37  ;;  %v652_v47 = vsel %vm644_vm10, %v635_v29, %v651_v43  ;;  %v655_v48 = vsel %vm645_vm11, %v641_v38, 1326507024  ;;  %156 = vst [vmem:[#allocation2 + $0x10] sm:$0x7] %v4208_v19 }
  0x5b   : > { %v649_v50 = vsel %vm643_vm8, %v646_v39, %v648_v41  ;;  %v653_v51 = vsel %vm643_vm8, %v650_v42, %v652_v47  ;;  %v656_v52 = vsel %vm644_vm10, %v638_v35, %v655_v48  ;;  %v1064_v53 = vsel %vm1063_vm12, %v1062_v5, 0 }
  0x5c   : > { %v220_v54 = vshrl.u32 %v219_v46, 30  ;;  %v657_v55 = vsel %vm643_vm8, %v654_v45, %v656_v52  ;;  %v4189_v56 = vmul.u32.u64.low %v4133_v26, %v653_v51  ;;  %v4190_v57 = vmul.u32.u64.high %v4133_v26, %v653_v51, %v4189_v56 }
  0x5d   : > { %v4194_v58 = vmul.u32.u64.low %v4133_v26, %v657_v55  ;;  %v4195_v60 = vmul.u32.u64.high %v4133_v26, %v657_v55, %v4194_v58  ;;  %v1066_v62 = vand.u32 31, %v1064_v53  ;;  %v665_v63 = vmul.u32 %v4133_v26, %v649_v50 }
  0x5e   : > { %v221_v61 = vshll.u32 %v220_v54, 30  ;;  %v668_v1 = vadd.s32 1, %v4190_v57  ;;  %v1059_v59 = vand.u32 8388607, %v1052_v49  ;;  %v244_v14 = vsub.s32 4, %v220_v54 }
  0x5f   : > { %vm667_vm13 = vc.u32 %v4195_v60, %v4189_v56  ;;  %v1067_v6 = vsub.s32 32, %v1066_v62  ;;  %v1069_v26 = vshll.u32 %v3996_v28, %v1066_v62  ;;  %v1072_v17 = vshll.u32 %v3997_v30, %v1066_v62 }
  0x60   : > { %v222_v0 = vsub.s32 %v218_v37, %v221_v61  ;;  %v669_v5 = vsel %vm667_vm13, %v668_v1, %v4190_v57  ;;  %v1060_v15 = vor.u32 8388608, %v1059_v59  ;;  %v1075_v18 = vshll.u32 %v3998_v32, %v1066_v62 }
  0x61   : > { %v670_v12 = vadd.s32 %v669_v5, %v665_v63  ;;  %v1070_v21 = vshrl.u32 %v3997_v30, %v1067_v6  ;;  %v1073_v22 = vshrl.u32 %v3998_v32, %v1067_v6  ;;  %v1076_v23 = vshrl.u32 %v3999_v34, %v1067_v6 }
  0x62   : > { %v224_v4 = vsub.s32 0, %v222_v0  ;;  %v4224_v27 = vmul.f32 8.0, %v4111_v2  ;;  %v214_v29 = vadd.s32 %v4158_v10, %v4155_v7  ;;  %v1078_v33 = vshll.u32 %v3999_v34, %v1066_v62 }
  0x63   : > { %v671_v16 = vadd.s32 536870912, %v670_v12  ;;  %v1079_v35 = vshrl.u32 %v4000_v36, %v1067_v6  ;;  %v245_v3 = vsel %vm160_vm15, %v244_v14, %v220_v54  ;;  %v1065_v38 = vshrl.u32 %v1064_v53, 5 }
  0x64   : > { %v3541_v13 = vmin.u32 %v224_v4, %v222_v0  ;;  %v4233_v39 = vshll.u32 %v1060_v15, 8  ;;  %v1071_v40 = vor.u32 %v1070_v21, %v1069_v26  ;;  %v1074_v41 = vor.u32 %v1073_v22, %v1072_v17 }
  0x65   : > { %v4221_v25 = vshrl.u32 %v671_v16, 30  ;;  %v1077_v42 = vor.u32 %v1076_v23, %v1075_v18  ;;  %v1081_v7 = vshll.u32 %v4000_v36, %v1066_v62  ;;  %v1082_v10 = vshrl.u32 %v4001_v44, %v1067_v6 }
  0x66   : > { %v226_v20 = vclz %v3541_v13  ;;  %v1080_v50 = vor.u32 %v1079_v35, %v1078_v33  ;;  %v1068_v52 = vshrl.u32 %v3996_v28, %v1067_v6  ;;  %vm1084_vm1 = vcmp.lt.s32.totalorder %v1065_v38, 1 }
  0x67   : > { %v673_v37 = vshll.u32 %v4221_v25, 30  ;;  %vm1087_vm2 = vcmp.lt.s32.totalorder %v1065_v38, 4  ;;  %v4243_v55 = vsel %vm4216_vm14, 0, %v245_v3  ;;  %v1083_v61 = vor.u32 %v1082_v10, %v1081_v7 }
  0x68   : > { %v3542_v31 = vadd.s32 4294967294, %v226_v20  ;;  %v1089_v57 = vsel %vm1087_vm2, %v1077_v42, 2102212464  ;;  %vm1085_vm3 = vcmp.lt.s32.totalorder %v1065_v38, 2  ;;  %vm1086_vm4 = vcmp.lt.s32.totalorder %v1065_v38, 3 }
  0x69   : > { %v4235_v45 = vsub.s32 %v670_v12, %v673_v37  ;;  %v1093_v1 = vsel %vm1087_vm2, %v1080_v50, 920167782  ;;  %v666_v59 = vadd.s32 %v4189_v56, %v4195_v60  ;;  %v1088_v5 = vsel %vm1084_vm1, %v1068_v52, %v1071_v40 }
  0x6a   : > { %vm3543_vm0 = vcmp.lt.s32.totalorder %v3542_v31, 0  ;;  %v1090_v6 = vsel %vm1086_vm4, %v1074_v41, %v1089_v57  ;;  %v1094_v14 = vsel %vm1086_vm4, %v1077_v42, %v1093_v1  ;;  %v1096_v15 = vsel %vm1084_vm1, %v1074_v41, %v1077_v42 }
  0x6b   : > { %v229_v43 = vsel %vm3543_vm0, 0, %v3542_v31  ;;  %v676_v51 = vsub.s32 0, %v4235_v45  ;;  %v696_v26 = vsub.s32 4, %v4221_v25  ;;  %v1097_v18 = vsel %vm1087_vm2, %v1083_v61, 1326507024 }
  0x6c   : > { %v230_v46 = vsub.s32 32, %v229_v43  ;;  %v231_v47 = vshll.u32 %v222_v0, %v229_v43  ;;  %v234_v48 = vsub.s32 4294967266, %v229_v43  ;;  %v1092_v0 = vsel %vm1084_vm1, %v1071_v40, %v1074_v41 }
  0x6d   : > { %v3557_v58 = vmin.u32 %v676_v51, %v4235_v45  ;;  %v1095_v17 = vsel %vm1085_vm3, %v1092_v0, %v1094_v14  ;;  %v1098_v56 = vsel %vm1086_vm4, %v1080_v50, %v1097_v18  ;;  %v1091_v22 = vsel %vm1085_vm3, %v1088_v5, %v1090_v6 }
  0x6e   : > { %v232_v53 = vshrl.u32 %v214_v29, %v230_v46  ;;  %v235_v54 = vadd.s32 127, %v234_v48  ;;  %v4261_v60 = vmul.u32.u64.low %v4233_v39, %v1095_v17  ;;  %v4262_v21 = vmul.u32.u64.high %v4233_v39, %v1095_v17, %v4261_v60 }
  0x6f   : > { %v678_v4 = vclz %v3557_v58  ;;  %v1099_v23 = vsel %vm1085_vm3, %v1096_v15, %v1098_v56  ;;  %v1507_v29 = vand.u32 2139095040, %v4224_v27  ;;  %v1107_v7 = vmul.u32 %v4233_v39, %v1091_v22 }
  0x70   : > { %v233_v62 = vor.u32 %v232_v53, %v231_v47  ;;  %v236_v63 = vshll.u32 %v235_v54, 23  ;;  %v4269_v35 = vmul.u32.u64.low %v4233_v39, %v1099_v23  ;;  %v4270_v3 = vmul.u32.u64.high %v4233_v39, %v1099_v23, %v4269_v35 }
  0x71   : > { %v3558_v16 = vadd.s32 4294967294, %v678_v4  ;;  %v1508_v42 = vshrl.u32 %v1507_v29, 23  ;;  %v1110_v10 = vadd.s32 1, %v4262_v21  ;;  %v1504_v38 = vand.u32 2147483647, %v4224_v27 }
  0x72   : > { %v237_v12 = vor.u32 4788187, %v236_v63  ;;  %v240_v13 = vcvt.s32.f32 %v233_v62  ;;  %vm4278_vm7 = vcmp.le.f32.partialorder %v610_v11, 0.7853982  ;;  %v251_v51 = vadd.s32 3, %v4243_v55 }
  0x73   : > { %vm3559_vm6 = vcmp.lt.s32.totalorder %v3558_v16, 0  ;;  %v3588_v50 = vadd.s32 4294967169, %v1508_v42  ;;  %v697_v39 = vsel %vm612_vm5, %v696_v26, %v4221_v25  ;;  %vm1109_vm8 = vc.u32 %v4270_v3, %v4261_v60 }
  0x74   : > { %v238_v20 = vand.u32 2147483647, %v237_v12  ;;  %v681_v33 = vsel %vm3559_vm6, 0, %v3558_v16  ;;  %v1111_v54 = vsel %vm1109_vm8, %v1110_v10, %v4262_v21  ;;  %v1511_v58 = vand.u32 8388607, %v1504_v38 }
  0x75   : > { %v682_v37 = vsub.s32 32, %v681_v33  ;;  %v683_v40 = vshll.u32 %v4235_v45, %v681_v33  ;;  %v686_v41 = vsub.s32 4294967266, %v681_v33  ;;  %v1112_v57 = vadd.s32 %v1111_v54, %v1107_v7 }
  0x76   : > { %v241_v31 = vmul.f32 %v240_v13, %v238_v20  ;;  %v1514_v61 = vadd.s32 1, %v3588_v50  ;;  %v699_v63 = vsel %vm4278_vm7, 0, %v697_v39  ;;  %v4299_v0 = vand.u32 3, %v4243_v55 }
  0x77   : > { %v684_v47 = vshrl.u32 %v666_v59, %v682_v37  ;;  %v687_v48 = vadd.s32 127, %v686_v41  ;;  %v1113_v24 = vadd.s32 536870912, %v1112_v57  ;;  %v4301_v1 = vand.u32 3, %v251_v51 }
  0x78   : > { %v242_v43 = vxor.u32 2147483648, %v241_v31  ;;  %vm1515_vm9 = vcmp.gt.s32.totalorder %v1514_v61, 0  ;;  %v703_v5 = vadd.s32 3, %v699_v63  ;;  %v1512_v12 = vor.u32 8388608, %v1511_v58 }
  0x79   : > { %v685_v52 = vor.u32 %v684_v47, %v683_v40  ;;  %v688_v53 = vshll.u32 %v687_v48, 23  ;;  %v1516_v4 = vsel %vm1515_vm9, %v1514_v61, 0  ;;  %v1114_v6 = vshrl.u32 %v1113_v24, 30 }
  0x7a   : > { %v243_v45 = vsel %vm160_vm15, %v242_v43, %v241_v31  ;;  %v1518_v13 = vand.u32 31, %v1516_v4  ;;  %vm1054_vm10 = vcmp.lt.s32.totalorder %v4124_v9, 0  ;;  %v4305_v15 = vmul.f32 16.0, %v4111_v2 }
  0x7b   : > { %v246_v11 = vsel %vm4216_vm14, %v4111_v2, %v243_v45  ;;  %v689_v62 = vor.u32 4788187, %v688_v53  ;;  %v692_v25 = vcvt.s32.f32 %v685_v52  ;;  %vm477_vm11 = vcmp.eq.s32.totalorder %v4299_v0, 0 }
  0x7c   : > { %3818 = vcosq.f32 %v246_v11  ;;  %vm480_vm12 = vcmp.eq.s32.totalorder %v4299_v0, 2  ;;  %v1115_v55 = vshll.u32 %v1114_v6, 30  ;;  %v1519_v16 = vsub.s32 32, %v1518_v13 }
  0x7d   : > { %3820 = vsinq.f32 %v246_v11  ;;  %v690_v59 = vand.u32 2147483647, %v689_v62  ;;  %vm253_vm13 = vcmp.lt.s32.totalorder %v4301_v1, 2  ;;  %vm254_vm14 = vcmp.eq.s32.totalorder %v4301_v1, 0 }
  0x7e   : > { %vm257_vm15 = vcmp.eq.s32.totalorder %v4301_v1, 2  ;;  %vm476_vm0 = vcmp.lt.s32.totalorder %v4299_v0, 2  ;;  %v4313_v17 = vand.u32 3, %v699_v63  ;;  %vm250_vm1 = vweird.f32 %v4111_v2 }
  0x7f   : > { %v693_v14 = vmul.f32 %v692_v25, %v690_v59  ;;  %v4316_v18 = vand.u32 3, %v703_v5  ;;  %v4320_v20 = vadd.s32 %v4261_v60, %v4270_v3  ;;  %v4322_v56 = vsub.s32 %v1112_v57, %v1115_v55 }
  0x80   : > { %v4324_v21 = vshll.u32 %v1512_v12, 8  ;;  %v1138_v23 = vsub.s32 4, %v1114_v6  ;;  %v1521_v29 = vshll.u32 %v3996_v28, %v1518_v13  ;;  %v1949_v31 = vand.u32 2139095040, %v4305_v15 }
  0x81   : > { %v694_v26 = vxor.u32 2147483648, %v693_v14  ;;  %v1118_v35 = vsub.s32 0, %v4322_v56  ;;  %v1522_v60 = vshrl.u32 %v3997_v30, %v1519_v16  ;;  %v1524_v3 = vshll.u32 %v3997_v30, %v1518_v13 }
  0x82   : > { %v1525_v37 = vshrl.u32 %v3998_v32, %v1519_v16  ;;  %v1527_v40 = vshll.u32 %v3998_v32, %v1518_v13  ;;  %v1528_v41 = vshrl.u32 %v3999_v34, %v1519_v16  ;;  %v4340_v43 = vshrl.u32 %v1516_v4, 5 }
  0x83   : > { %v695_v22 = vsel %vm612_vm5, %v694_v26, %v693_v14  ;;  %v3573_v42 = vmin.u32 %v1118_v35, %v4322_v56  ;;  %v1530_v7 = vshll.u32 %v3999_v34, %v1518_v13  ;;  %v4345_v46 = vsel %vm1054_vm10, %v1138_v23, %v1114_v6 }
  0x84   : > { %v698_v33 = vsel %vm4278_vm7, %v4121_v8, %v695_v22  ;;  %v1531_v47 = vshrl.u32 %v4000_v36, %v1519_v16  ;;  %v1533_v48 = vshll.u32 %v4000_v36, %v1518_v13  ;;  %v4349_v50 = vshrl.u32 %v1949_v31, 23 }
  0x85   : > { %3822 = vcosq.f32 %v698_v33  ;;  %v1120_v39 = vclz %v3573_v42  ;;  %v1520_v11 = vshrl.u32 %v3996_v28, %v1519_v16  ;;  %v1523_v52 = vor.u32 %v1522_v60, %v1521_v29 }
  0x86   : > { %3824 = vsinq.f32 %v698_v33  ;;  %v1526_v54 = vor.u32 %v1525_v37, %v1524_v3  ;;  %v1529_v57 = vor.u32 %v1528_v41, %v1527_v40  ;;  %v1534_v58 = vshrl.u32 %v4001_v44, %v1519_v16 }
  0x87   : > { %vm709_vm2 = vcmp.eq.s32.totalorder %v4316_v18, 2  ;;  %vm932_vm3 = vcmp.eq.s32.totalorder %v4313_v17, 2  ;;  %v3574_v25 = vadd.s32 4294967294, %v1120_v39  ;;  %v1532_v63 = vor.u32 %v1531_v47, %v1530_v7 }
  0x88   : > { %vm706_vm4 = vcmp.eq.s32.totalorder %v4316_v18, 0  ;;  %vm929_vm5 = vcmp.eq.s32.totalorder %v4313_v17, 0  ;;  %v1535_v4 = vor.u32 %v1534_v58, %v1533_v48  ;;  %vm1536_vm6 = vcmp.lt.s32.totalorder %v4340_v43, 1 }
  0x89   : > { %v3819_v10 = vpop.eup %3818  ;;  %vm705_vm7 = vcmp.lt.s32.totalorder %v4316_v18, 2  ;;  %vm928_vm8 = vcmp.lt.s32.totalorder %v4313_v17, 2  ;;  %vm3575_vm9 = vcmp.lt.s32.totalorder %v3574_v25, 0  ;;  %v1544_v35 = vsel %vm1536_vm6, %v1523_v52, %v1526_v54 }
  0x8a   : > { %v3821_v45 = vpop.eup %3820  ;;  %v258_v51 = vxor.u32 2147483648, %v3819_v10  ;;  %v1123_v1 = vsel %vm3575_vm9, 0, %v3574_v25  ;;  %v1540_v37 = vsel %vm1536_vm6, %v1520_v11, %v1523_v52  ;;  %v1548_v7 = vsel %vm1536_vm6, %v1526_v54, %v1529_v57 }
  0x8b   : > { %v255_v53 = vxor.u32 2147483648, %v3821_v45  ;;  %v1124_v26 = vsub.s32 32, %v1123_v1  ;;  %v1125_v22 = vshll.u32 %v4322_v56, %v1123_v1  ;;  %v1128_v23 = vsub.s32 4294967266, %v1123_v1 }
  0x8c   : > { %v259_v61 = vsel %vm257_vm15, %v258_v51, %v3821_v45  ;;  %v482_v62 = vsel %vm480_vm12, %v258_v51, %v3821_v45  ;;  %vm702_vm12 = vweird.f32 %v4121_v8  ;;  %vm1053_vm15 = vcmp.le.f32.partialorder %v1052_v49, 0.7853982 }
  0x8d   : > { %v256_v24 = vsel %vm254_vm14, %v3819_v10, %v255_v53  ;;  %v479_v59 = vsel %vm477_vm11, %v3819_v10, %v255_v53  ;;  %vm1537_vm11 = vcmp.lt.s32.totalorder %v4340_v43, 2  ;;  %vm1538_vm14 = vcmp.lt.s32.totalorder %v4340_v43, 3 }
  0x8e   : > { %v260_v5 = vsel %vm253_vm13, %v256_v24, %v259_v61  ;;  %v483_v6 = vsel %vm476_vm0, %v479_v59, %v482_v62  ;;  %vm1539_vm13 = vcmp.lt.s32.totalorder %v4340_v43, 4  ;;  %v1126_v60 = vshrl.u32 %v4320_v20, %v1124_v26 }
  0x8f   : > { %v261_v12 = vsel %vm250_vm1, nan, %v260_v5  ;;  %v484_v13 = vsel %vm250_vm1, nan, %v483_v6  ;;  %v1541_v33 = vsel %vm1539_vm13, %v1529_v57, 2102212464  ;;  %v1129_v3 = vadd.s32 127, %v1128_v23 }
  0x90   : > { %v370_v0 = vrot.slane %v261_v12, 5  ;;  %v592_v14 = vrot.slane %v484_v13, 2  ;;  %v368_v55 = vcombine.high %v261_v12, %v261_v12  ;;  %v590_v16 = vcombine.high %v484_v13, %v484_v13 }
  0x91   : > { %v1545_v56 = vsel %vm1539_vm13, %v1532_v63, 920167782  ;;  %v1542_v41 = vsel %vm1538_vm14, %v1526_v54, %v1541_v33  ;;  %v1549_v20 = vsel %vm1539_vm13, %v1535_v4, 1326507024  ;;  %v1127_v48 = vor.u32 %v1126_v60, %v1125_v22 }
  0x92   : > { %378 = vst [vmem:[#allocation2] sm:$0x38] %v370_v0  ;;  %600 = vst [vmem:[#allocation2 + $0x20] ss:$-28 sps:$4 sm:$0xc1] %v592_v14   ;;  %v371_v29 = vrot.slane %v368_v55, 5  ;;  %v3823_v40 = vpop.eup %3822  ;;  %v1546_v42 = vsel %vm1538_vm14, %v1529_v57, %v1545_v56  ;;  %v1550_v11 = vsel %vm1538_vm14, %v1532_v63, %v1549_v20  ;;  %v1543_v63 = vsel %vm1537_vm11, %v1540_v37, %v1542_v41 }
  0x93   : > { %v593_v31 = vrot.slane %v590_v16, 2  ;;  %v3825_v10 = vpop.eup %3824  ;;  %v710_v47 = vxor.u32 2147483648, %v3823_v40  ;;  %v1130_v45 = vshll.u32 %v1129_v3, 23  ;;  %v1547_v51 = vsel %vm1537_vm11, %v1544_v35, %v1546_v42 }
  0x94   : > { %379 = vst [vmem:[#allocation2 + $0x8] sm:$0x38] %v371_v29  ;;  %v707_v39 = vxor.u32 2147483648, %v3825_v10  ;;  %v4403_v52 = vmul.u32.u64.low %v4324_v21, %v1547_v51  ;;  %v4404_v53 = vmul.u32.u64.high %v4324_v21, %v1547_v51, %v4403_v52  ;;  %v1134_v61 = vcvt.s32.f32 %v1127_v48 }
  0x95   : > { %601 = vst [vmem:[#allocation2 + $0x28] ss:$-28 sps:$4 sm:$0xc1] %v593_v31   ;;  %v711_v54 = vsel %vm709_vm2, %v710_v47, %v3825_v10  ;;  %v934_v57 = vsel %vm932_vm3, %v710_v47, %v3825_v10  ;;  %v1131_v58 = vor.u32 4788187, %v1130_v45  ;;  %v1551_v24 = vsel %vm1537_vm11, %v1548_v7, %v1550_v11 }
  0x96   : > { %v708_v62 = vsel %vm706_vm4, %v3823_v40, %v707_v39  ;;  %v931_v25 = vsel %vm929_vm5, %v3823_v40, %v707_v39  ;;  %v3604_v12 = vadd.s32 4294967169, %v4349_v50  ;;  %v1559_v50 = vmul.u32 %v4324_v21, %v1543_v63 }
  0x97   : > { %v712_v4 = vsel %vm705_vm7, %v708_v62, %v711_v54  ;;  %v935_v5 = vsel %vm928_vm8, %v931_v25, %v934_v57  ;;  %v1132_v6 = vand.u32 2147483647, %v1131_v58  ;;  %v1562_v26 = vadd.s32 1, %v4404_v53 }
  0x98   : > { %v713_v13 = vsel %vm702_vm12, nan, %v712_v4  ;;  %v936_v1 = vsel %vm702_vm12, nan, %v935_v5  ;;  %v4429_v43 = vmul.u32.u64.low %v4324_v21, %v1551_v24  ;;  %v4430_v0 = vmul.u32.u64.high %v4324_v21, %v1551_v24, %v4429_v43 }
  0x99   : > { %v2838_v59 = vld [vmem:[#allocation2] sm:$0xff]  ;;  %v822_v18 = vrot.slane %v713_v13, 7  ;;  %v1042_v55 = vcombine.low %v936_v1, %v936_v1  ;;  %v1135_v16 = vmul.f32 %v1134_v61, %v1132_v6  ;;  %1047 = vst [vmem:[#allocation2 + $0x28] sm:$0x70] %v936_v1  ;;  %v820_v17 = vcombine.high %v713_v13, %v713_v13 }
  0x9a   : > { %2843 = vxpose.xlu0.b32.start [1/5] (short) %v2838_v59, 128  ;;  %v1946_v22 = vand.u32 2147483647, %v4305_v15  ;;  %v1956_v23 = vadd.s32 1, %v3604_v12  ;;  %v4438_v31 = vmul.f32 32.0, %v4111_v2  ;;  %v1141_v33 = vsel %vm1053_vm15, 0, %v4345_v46 }
  0x9b   : > { %830 = vst [vmem:[#allocation2 + $0x20] sm:$0xe] %v822_v18  ;;  %1046 = vst [vmem:[#allocation2 + $0x20] sm:$0x70] %v1042_v55  ;;  %v1136_v8 = vxor.u32 2147483648, %v1135_v16  ;;  %v823_v29 = vrot.slane %v820_v17, 7  ;;  %vm1561_vm0 = vc.u32 %v4430_v0, %v4403_v52  ;;  %vm1144_vm3 = vweird.f32 %v4124_v9 }
  0x9c   : > { %v2892_v14 = vld [vmem:[#allocation2 + $0x8] sm:$0xff]  ;;  %vm1957_vm1 = vcmp.gt.s32.totalorder %v1956_v23, 0  ;;  %v1563_v35 = vsel %vm1561_vm0, %v1562_v26, %v4404_v53  ;;  %v1953_v2 = vand.u32 8388607, %v1946_v22  ;;  %v1145_v46 = vadd.s32 3, %v1141_v33 }
  0x9d   : > { %2897 = vxpose.xlu1.b32.start [1/5] (short) %v2892_v14, 128  ;;  %v1137_v21 = vsel %vm1054_vm10, %v1136_v8, %v1135_v16  ;;  %831 = vst [vmem:[#allocation2 + $0x28] sm:$0xe] %v823_v29  ;;  %v1958_v60 = vsel %vm1957_vm1, %v1956_v23, 0  ;;  %v1564_v3 = vadd.s32 %v1563_v35, %v1559_v50  ;;  %v4449_v56 = vand.u32 3, %v1141_v33 }
  0x9e   : > { %v1140_v49 = vsel %vm1053_vm15, %v4124_v9, %v1137_v21  ;;  %v1960_v37 = vand.u32 31, %v1958_v60  ;;  %v2401_v40 = vand.u32 2139095040, %v4438_v31  ;;  %v1959_v42 = vshrl.u32 %v1958_v60, 5 }
  0x9f   : > { %3826 = vcosq.f32 %v1140_v49  ;;  %v1565_v41 = vadd.s32 536870912, %v1564_v3  ;;  %v2398_v58 = vand.u32 2147483647, %v4438_v31  ;;  %v1146_v61 = vand.u32 3, %v1145_v46 }
  0xa0   : > { %3828 = vsinq.f32 %v1140_v49  ;;  %v1961_v7 = vsub.s32 32, %v1960_v37  ;;  %v1963_v20 = vshll.u32 %v3996_v28, %v1960_v37  ;;  %v1969_v10 = vshll.u32 %v3998_v32, %v1960_v37 }
  0xa1   : > { %v1972_v47 = vshll.u32 %v3999_v34, %v1960_v37  ;;  %v1975_v48 = vshll.u32 %v4000_v36, %v1960_v37  ;;  %v4456_v45 = vshrl.u32 %v1565_v41, 30  ;;  %v1966_v39 = vshll.u32 %v3997_v30, %v1960_v37 }
  0xa2   : > { %v1964_v51 = vshrl.u32 %v3997_v30, %v1961_v7  ;;  %v1967_v11 = vshrl.u32 %v3998_v32, %v1961_v7  ;;  %v1970_v53 = vshrl.u32 %v3999_v34, %v1961_v7  ;;  %v1973_v54 = vshrl.u32 %v4000_v36, %v1961_v7 }
  0xa3   : > { %v1976_v57 = vshrl.u32 %v4001_v44, %v1961_v7  ;;  %v1567_v62 = vshll.u32 %v4456_v45, 30  ;;  %v1954_v25 = vor.u32 8388608, %v1953_v2  ;;  %v2402_v63 = vshrl.u32 %v2401_v40, 23 }
  0xa4   : > { %v1962_v24 = vshrl.u32 %v3996_v28, %v1961_v7  ;;  %v1971_v59 = vor.u32 %v1970_v53, %v1969_v10  ;;  %v1974_v4 = vor.u32 %v1973_v54, %v1972_v47  ;;  %vm1374_vm10 = vcmp.lt.s32.totalorder %v4449_v56, 2 }
  0xa5   : > { %v1977_v5 = vor.u32 %v1976_v57, %v1975_v48  ;;  %v4468_v6 = vsub.s32 %v1564_v3, %v1567_v62  ;;  %v1965_v12 = vor.u32 %v1964_v51, %v1963_v20  ;;  %v1968_v13 = vor.u32 %v1967_v11, %v1966_v39 }
  0xa6   : > { %vm1981_vm2 = vcmp.lt.s32.totalorder %v1959_v42, 4  ;;  %vm1375_vm4 = vcmp.eq.s32.totalorder %v4449_v56, 0  ;;  %vm1378_vm5 = vcmp.eq.s32.totalorder %v4449_v56, 2  ;;  %vm1978_vm6 = vcmp.lt.s32.totalorder %v1959_v42, 1 }
  0xa7   : > { %v1983_v1 = vsel %vm1981_vm2, %v1971_v59, 2102212464  ;;  %v1570_v43 = vsub.s32 0, %v4468_v6  ;;  %vm1980_vm7 = vcmp.lt.s32.totalorder %v1959_v42, 3  ;;  %v4474_v14 = vshll.u32 %v1954_v25, 8 }
  0xa8   : > { %v3620_v18 = vadd.s32 4294967169, %v2402_v63  ;;  %v1982_v55 = vsel %vm1978_vm6, %v1962_v24, %v1965_v12  ;;  %v1984_v16 = vsel %vm1980_vm7, %v1968_v13, %v1983_v1  ;;  %v1987_v17 = vsel %vm1981_vm2, %v1974_v4, 920167782 }
  0xa9   : > { %v1991_v50 = vsel %vm1981_vm2, %v1977_v5, 1326507024  ;;  %v3589_v26 = vmin.u32 %v1570_v43, %v4468_v6  ;;  %vm1979_vm8 = vcmp.lt.s32.totalorder %v1959_v42, 2  ;;  %v1986_v23 = vsel %vm1978_vm6, %v1965_v12, %v1968_v13 }
  0xaa   : > { %v1990_v8 = vsel %vm1978_vm6, %v1968_v13, %v1971_v59  ;;  %vm1147_vm9 = vcmp.lt.s32.totalorder %v1146_v61, 2  ;;  %vm1148_vm11 = vcmp.eq.s32.totalorder %v1146_v61, 0  ;;  %v1988_v29 = vsel %vm1980_vm7, %v1971_v59, %v1987_v17 }
  0xab   : > { %v1992_v33 = vsel %vm1980_vm7, %v1974_v4, %v1991_v50  ;;  %vm1151_vm12 = vcmp.eq.s32.totalorder %v1146_v61, 2  ;;  %v1560_v35 = vadd.s32 %v4403_v52, %v4430_v0  ;;  %v1572_v60 = vclz %v3589_v26 }
  0xac   : > { %v3827_v21 = vpop.eup %3826  ;;  %v1985_v49 = vsel %vm1979_vm8, %v1982_v55, %v1984_v16  ;;  %v1989_v37 = vsel %vm1979_vm8, %v1986_v23, %v1988_v29  ;;  %v1993_v46 = vsel %vm1979_vm8, %v1990_v8, %v1992_v33  ;;  %v2408_v40 = vadd.s32 1, %v3620_v18 }
  0xad   : > { %v3829_v3 = vpop.eup %3828  ;;  %v1152_v2 = vxor.u32 2147483648, %v3827_v21  ;;  %v3590_v42 = vadd.s32 4294967294, %v1572_v60  ;;  %v4480_v7 = vmul.u32.u64.low %v4474_v14, %v1993_v46  ;;  %v4481_v20 = vmul.u32.u64.high %v4474_v14, %v1993_v46, %v4480_v7 }
  0xae   : > { %v1149_v41 = vxor.u32 2147483648, %v3829_v3  ;;  %v4486_v48 = vmul.u32.u64.low %v4474_v14, %v1989_v37  ;;  %v4487_v52 = vmul.u32.u64.high %v4474_v14, %v1989_v37, %v4486_v48  ;;  %vm2409_vm14 = vcmp.gt.s32.totalorder %v2408_v40, 0 }
  0xaf   : > { %v1153_v10 = vsel %vm1151_vm12, %v1152_v2, %v3829_v3  ;;  %v1380_v47 = vsel %vm1378_vm5, %v1152_v2, %v3829_v3  ;;  %vm3591_vm13 = vcmp.lt.s32.totalorder %v3590_v42, 0  ;;  %v2410_v54 = vsel %vm2409_vm14, %v2408_v40, 0 }
  0xb0   : > { %v1150_v0 = vsel %vm1148_vm11, %v3827_v21, %v1149_v41  ;;  %v1377_v51 = vsel %vm1375_vm4, %v3827_v21, %v1149_v41  ;;  %v1575_v53 = vsel %vm3591_vm13, 0, %v3590_v42  ;;  %v2001_v56 = vmul.u32 %v4474_v14, %v1985_v49 }
  0xb1   : > { %v1154_v39 = vsel %vm1147_vm9, %v1150_v0, %v1153_v10  ;;  %v1381_v11 = vsel %vm1374_vm10, %v1377_v51, %v1380_v47  ;;  %v1576_v25 = vsub.s32 32, %v1575_v53  ;;  %v1577_v63 = vshll.u32 %v4468_v6, %v1575_v53 }
  0xb2   : > { %v1155_v57 = vsel %vm1144_vm3, nan, %v1154_v39  ;;  %v1382_v62 = vsel %vm1144_vm3, nan, %v1381_v11  ;;  %v1580_v5 = vsub.s32 4294967266, %v1575_v53  ;;  %vm2003_vm15 = vc.u32 %v4481_v20, %v4486_v48 }
  0xb3   : > { %v1264_v24 = vrot.slane %v1155_v57, 1  ;;  %v1262_v59 = vcombine.high %v1155_v57, %v1155_v57  ;;  %v1490_v4 = vrot.slane %v1382_v62, 6  ;;  %v1578_v61 = vshrl.u32 %v1560_v35, %v1576_v25 }
  0xb4   : > { %v1488_v12 = vcombine.high %v1382_v62, %v1382_v62  ;;  %v1581_v1 = vadd.s32 127, %v1580_v5  ;;  %v2004_v9 = vadd.s32 1, %v4487_v52  ;;  %vm1506_vm0 = vcmp.lt.s32.totalorder %v4224_v27, 0 }
  0xb5   : > { %1272 = vst [vmem:[#allocation2 + $0x40] ss:$-28 sps:$4 sm:$0x83] %v1264_v24   ;;  %v1265_v13 = vrot.slane %v1262_v59, 1  ;;  %1498 = vst [vmem:[#allocation2 + $0x40] sm:$0x1c] %v1490_v4  ;;  %v1579_v6 = vor.u32 %v1578_v61, %v1577_v63  ;;  %vm1596_vm8 = vweird.f32 %v4224_v27 }
  0xb6   : > { %v1491_v43 = vrot.slane %v1488_v12, 6  ;;  %v2412_v18 = vand.u32 31, %v2410_v54  ;;  %vm4508_vm1 = vcmp.le.f32.partialorder %v1504_v38, 0.7853982  ;;  %v1582_v14 = vshll.u32 %v1581_v1, 23 }
  0xb7   : > { %1273 = vst [vmem:[#allocation2 + $0x48] ss:$-28 sps:$4 sm:$0x83] %v1265_v13   ;;  %v1590_v16 = vsub.s32 4, %v4456_v45  ;;  %v2005_v17 = vsel %vm2003_vm15, %v2004_v9, %v4487_v52  ;;  %v2405_v50 = vand.u32 8388607, %v2398_v58  ;;  %v1586_v26 = vcvt.s32.f32 %v1579_v6 }
  0xb8   : > { %1499 = vst [vmem:[#allocation2 + $0x48] sm:$0x1c] %v1491_v43  ;;  %v2006_v23 = vadd.s32 %v2005_v17, %v2001_v56  ;;  %v2413_v8 = vsub.s32 32, %v2412_v18  ;;  %v2415_v29 = vshll.u32 %v3996_v28, %v2412_v18  ;;  %v1583_v33 = vor.u32 4788187, %v1582_v14 }
  0xb9   : > { %v2418_v38 = vshll.u32 %v3997_v30, %v2412_v18  ;;  %v2421_v21 = vshll.u32 %v3998_v32, %v2412_v18  ;;  %v2424_v35 = vshll.u32 %v3999_v34, %v2412_v18  ;;  %v2411_v49 = vshrl.u32 %v2410_v54, 5 }
  0xba   : > { %v2007_v60 = vadd.s32 536870912, %v2006_v23  ;;  %v2416_v3 = vshrl.u32 %v3997_v30, %v2413_v8  ;;  %v2419_v2 = vshrl.u32 %v3998_v32, %v2413_v8  ;;  %v1584_v37 = vand.u32 2147483647, %v1583_v33 }
  0xbb   : > { %v2422_v46 = vshrl.u32 %v3999_v34, %v2413_v8  ;;  %v2425_v40 = vshrl.u32 %v4000_v36, %v2413_v8  ;;  %v2427_v41 = vshll.u32 %v4000_v36, %v2412_v18  ;;  %v2406_v10 = vor.u32 8388608, %v2405_v50 }
  0xbc   : > { %v2839_v42 = vld [vmem:[#allocation2 + $0x20] sm:$0xff]  ;;  %v4525_v7 = vshrl.u32 %v2007_v60, 30  ;;  %v2417_v47 = vor.u32 %v2416_v3, %v2415_v29  ;;  %v2428_v52 = vshrl.u32 %v4001_v44, %v2413_v8  ;;  %v1587_v0 = vmul.f32 %v1586_v26, %v1584_v37 }
  0xbd   : > { %2844 = vxpose.xlu0.b32.cont [2/5] (short) %v2839_v42, 128  ;;  %v2420_v51 = vor.u32 %v2419_v2, %v2418_v38  ;;  %v2423_v39 = vor.u32 %v2422_v46, %v2421_v21  ;;  %v2426_v11 = vor.u32 %v2425_v40, %v2424_v35  ;;  %vm2430_vm10 = vcmp.lt.s32.totalorder %v2411_v49, 1 }
  0xbe   : > { %v2893_v53 = vld [vmem:[#allocation2 + $0x28] sm:$0xff]  ;;  %v2009_v54 = vshll.u32 %v4525_v7, 30  ;;  %vm2432_vm2 = vcmp.lt.s32.totalorder %v2411_v49, 3  ;;  %vm2433_vm3 = vcmp.lt.s32.totalorder %v2411_v49, 4  ;;  %v1588_v57 = vxor.u32 2147483648, %v1587_v0 }
  0xbf   : > { %2898 = vxpose.xlu1.b32.cont [2/5] (short) %v2893_v53, 128  ;;  %v1591_v62 = vsel %vm1506_vm0, %v1590_v16, %v4456_v45  ;;  %v2414_v25 = vshrl.u32 %v3996_v28, %v2413_v8  ;;  %v2429_v63 = vor.u32 %v2428_v52, %v2427_v41  ;;  %v2435_v59 = vsel %vm2433_vm3, %v2423_v39, 2102212464 }
  0xc0   : > { %v4533_v24 = vsub.s32 %v2006_v23, %v2009_v54  ;;  %v2439_v4 = vsel %vm2433_vm3, %v2426_v11, 920167782  ;;  %v1589_v5 = vsel %vm1506_vm0, %v1588_v57, %v1587_v0  ;;  %vm2431_vm4 = vcmp.lt.s32.totalorder %v2411_v49, 2 }
  0xc1   : > { %v2438_v61 = vsel %vm2430_vm10, %v2417_v47, %v2420_v51  ;;  %v2440_v12 = vsel %vm2432_vm2, %v2423_v39, %v2439_v4  ;;  %v1592_v45 = vsel %vm4508_vm1, %v4224_v27, %v1589_v5  ;;  %v1593_v56 = vsel %vm4508_vm1, 0, %v1591_v62 }
  0xc2   : > { %v2012_v13 = vsub.s32 0, %v4533_v24  ;;  %v2446_v1 = vshll.u32 %v2406_v10, 8  ;;  %3830 = vcosq.f32 %v1592_v45  ;;  %v2434_v9 = vsel %vm2430_vm10, %v2414_v25, %v2417_v47 }
  0xc3   : > { %v2436_v6 = vsel %vm2432_vm2, %v2420_v51, %v2435_v59  ;;  %v2443_v43 = vsel %vm2433_vm3, %v2429_v63, 1326507024  ;;  %3832 = vsinq.f32 %v1592_v45  ;;  %v2441_v14 = vsel %vm2431_vm4, %v2438_v61, %v2440_v12 }
  0xc4   : > { %v3605_v18 = vmin.u32 %v2012_v13, %v4533_v24  ;;  %v2442_v16 = vsel %vm2430_vm10, %v2420_v51, %v2423_v39  ;;  %v2444_v55 = vsel %vm2432_vm2, %v2426_v11, %v2443_v43  ;;  %v1597_v17 = vadd.s32 3, %v1593_v56 }
  0xc5   : > { %v2437_v26 = vsel %vm2431_vm4, %v2434_v9, %v2436_v6  ;;  %v2445_v23 = vsel %vm2431_vm4, %v2442_v16, %v2444_v55  ;;  %v4556_v8 = vmul.u32.u64.low %v2446_v1, %v2441_v14  ;;  %v4557_v29 = vmul.u32.u64.high %v2446_v1, %v2441_v14, %v4556_v8 }
  0xc6   : > { %v2014_v50 = vclz %v3605_v18  ;;  %v4560_v38 = vmul.u32.u64.low %v2446_v1, %v2445_v23  ;;  %v4561_v21 = vmul.u32.u64.high %v2446_v1, %v2445_v23, %v4560_v38  ;;  %v265_v35 = vand.u32 2139095040, %v4208_v19 }
  0xc7   : > { %v1821_v60 = vand.u32 3, %v1593_v56  ;;  %vm4566_vm5 = vcmp.le.f32.partialorder %v1946_v22, 0.7853982  ;;  %v2032_v49 = vsub.s32 4, %v4525_v7  ;;  %v151_v2 = vcombine.high %v4208_v19, %v4208_v19 }
  0xc8   : > { %v3606_v33 = vadd.s32 4294967294, %v2014_v50  ;;  %vm1948_vm6 = vcmp.lt.s32.totalorder %v4305_v15, 0  ;;  %v2002_v37 = vadd.s32 %v4486_v48, %v4481_v20  ;;  %v266_v46 = vshrl.u32 %v265_v35, 23 }
  0xc9   : > { %v1598_v40 = vand.u32 3, %v1597_v17  ;;  %v2453_v22 = vmul.u32 %v2446_v1, %v2437_v26  ;;  %v2456_v42 = vadd.s32 1, %v4557_v29  ;;  %157 = vst [vmem:[#allocation2 + $0x18] sm:$0x7] %v151_v2  ;;  %v262_v0 = vand.u32 2147483647, %v4208_v19 }
  0xca   : > { %vm3607_vm7 = vcmp.lt.s32.totalorder %v3606_v33, 0  ;;  %vm1822_vm9 = vcmp.lt.s32.totalorder %v1821_v60, 2  ;;  %v2033_v20 = vsel %vm1948_vm6, %v2032_v49, %v4525_v7  ;;  %vm2455_vm11 = vc.u32 %v4561_v21, %v4556_v8 }
  0xcb   : > { %v2017_v41 = vsel %vm3607_vm7, 0, %v3606_v33  ;;  %v3544_v48 = vadd.s32 4294967169, %v266_v46  ;;  %vm1823_vm12 = vcmp.eq.s32.totalorder %v1821_v60, 0  ;;  %v2457_v11 = vsel %vm2455_vm11, %v2456_v42, %v4557_v29 }
  0xcc   : > { %v2018_v10 = vsub.s32 32, %v2017_v41  ;;  %v2019_v47 = vshll.u32 %v4533_v24, %v2017_v41  ;;  %v2022_v52 = vsub.s32 4294967266, %v2017_v41  ;;  %vm1599_vm13 = vcmp.lt.s32.totalorder %v1598_v40, 2 }
  0xcd   : > { %vm1826_vm14 = vcmp.eq.s32.totalorder %v1821_v60, 2  ;;  %v2458_v53 = vadd.s32 %v2457_v11, %v2453_v22  ;;  %v272_v54 = vadd.s32 1, %v3544_v48  ;;  %vm1603_vm15 = vcmp.eq.s32.totalorder %v1598_v40, 2 }
  0xce   : > { %v2020_v51 = vshrl.u32 %v2002_v37, %v2018_v10  ;;  %v2023_v39 = vadd.s32 127, %v2022_v52  ;;  %v2035_v7 = vsel %vm4566_vm5, 0, %v2033_v20  ;;  %vm1600_vm0 = vcmp.eq.s32.totalorder %v1598_v40, 0 }
  0xcf   : > { %v3831_v57 = vpop.eup %3830  ;;  %v2459_v59 = vadd.s32 536870912, %v2458_v53  ;;  %vm273_vm1 = vcmp.gt.s32.totalorder %v272_v54, 0  ;;  %v2039_v13 = vadd.s32 3, %v2035_v7  ;;  %v269_v17 = vand.u32 8388607, %v262_v0 }
  0xd0   : > { %v2021_v62 = vor.u32 %v2020_v51, %v2019_v47  ;;  %v2024_v25 = vshll.u32 %v2023_v39, 23  ;;  %v3833_v63 = vpop.eup %3832  ;;  %v1604_v24 = vxor.u32 2147483648, %v3831_v57  ;;  %v274_v12 = vsel %vm273_vm1, %v272_v54, 0 }
  0xd1   : > { %v1601_v4 = vxor.u32 2147483648, %v3833_v63  ;;  %v4589_v1 = vshrl.u32 %v2459_v59, 30  ;;  %v276_v18 = vand.u32 31, %v274_v12  ;;  %v4602_v29 = vmul.f32 2.0, %v4208_v19 }
  0xd2   : > { %v2025_v5 = vor.u32 4788187, %v2024_v25  ;;  %v2028_v61 = vcvt.s32.f32 %v2021_v62  ;;  %v1605_v45 = vsel %vm1603_vm15, %v1604_v24, %v3833_v63  ;;  %v1828_v56 = vsel %vm1826_vm14, %v1604_v24, %v3833_v63 }
  0xd3   : > { %v1602_v9 = vsel %vm1600_vm0, %v3831_v57, %v1601_v4  ;;  %v1825_v6 = vsel %vm1823_vm12, %v3831_v57, %v1601_v4  ;;  %v2461_v55 = vshll.u32 %v4589_v1, 30  ;;  %v277_v2 = vsub.s32 32, %v276_v18 }
  0xd4   : > { %v2026_v43 = vand.u32 2147483647, %v2025_v5  ;;  %v1606_v14 = vsel %vm1599_vm13, %v1602_v9, %v1605_v45  ;;  %v1829_v16 = vsel %vm1822_vm9, %v1825_v6, %v1828_v56  ;;  %v4606_v46 = vand.u32 3, %v2035_v7 }
  0xd5   : > { %v1607_v50 = vsel %vm1596_vm8, nan, %v1606_v14  ;;  %v1830_v26 = vsel %vm1596_vm8, nan, %v1829_v16  ;;  %v4604_v60 = vsub.s32 %v2458_v53, %v2461_v55  ;;  %v270_v40 = vor.u32 8388608, %v269_v17 }
  0xd6   : > { %v2029_v23 = vmul.f32 %v2028_v61, %v2026_v43  ;;  %v1716_v33 = vrot.slane %v1607_v50, 3  ;;  %v1714_v38 = vcombine.high %v1607_v50, %v1607_v50  ;;  %1940 = vst [vmem:[#allocation2 + $0x60] sm:$0x7] %v1830_v26  ;;  %v1936_v35 = vcombine.high %v1830_v26, %v1830_v26 }
  0xd7   : > { %v2464_v27 = vsub.s32 0, %v4604_v60  ;;  %v4611_v22 = vand.u32 3, %v2039_v13  ;;  %v714_v42 = vand.u32 2147483647, %v4602_v29  ;;  %v717_v10 = vand.u32 2139095040, %v4602_v29 }
  0xd8   : > { %v2030_v49 = vxor.u32 2147483648, %v2029_v23  ;;  %1724 = vst [vmem:[#allocation2 + $0x40] sm:$0xe0] %v1716_v33  ;;  %v1717_v37 = vrot.slane %v1714_v38, 3  ;;  %1941 = vst [vmem:[#allocation2 + $0x68] sm:$0x7] %v1936_v35  ;;  %v2454_v52 = vadd.s32 %v4556_v8, %v4561_v21  ;;  %v279_v48 = vshll.u32 %v3996_v28, %v276_v18 }
  0xd9   : > { %vm2400_vm10 = vcmp.lt.s32.totalorder %v4438_v31, 0  ;;  %v3621_v20 = vmin.u32 %v2464_v27, %v4604_v60  ;;  %v280_v51 = vshrl.u32 %v3997_v30, %v277_v2  ;;  %v282_v39 = vshll.u32 %v3997_v30, %v276_v18 }
  0xda   : > { %v2031_v41 = vsel %vm1948_vm6, %v2030_v49, %v2029_v23  ;;  %1725 = vst [vmem:[#allocation2 + $0x48] sm:$0xe0] %v1717_v37  ;;  %v283_v11 = vshrl.u32 %v3998_v32, %v277_v2  ;;  %v4626_v3 = vshrl.u32 %v274_v12, 5  ;;  %v4628_v54 = vshll.u32 %v270_v40, 8 }
  0xdb   : > { %v2034_v47 = vsel %vm4566_vm5, %v4305_v15, %v2031_v41  ;;  %v2466_v53 = vclz %v3621_v20  ;;  %v2484_v57 = vsub.s32 4, %v4589_v1  ;;  %v278_v8 = vshrl.u32 %v3996_v28, %v277_v2 }
  0xdc   : > { %3834 = vcosq.f32 %v2034_v47  ;;  %v285_v21 = vshll.u32 %v3998_v32, %v276_v18  ;;  %v718_v62 = vshrl.u32 %v717_v10, 23  ;;  %v286_v7 = vshrl.u32 %v3999_v34, %v277_v2 }
  0xdd   : > { %3836 = vsinq.f32 %v2034_v47  ;;  %v3622_v25 = vadd.s32 4294967294, %v2466_v53  ;;  %v288_v63 = vshll.u32 %v3999_v34, %v276_v18  ;;  %v289_v24 = vshrl.u32 %v4000_v36, %v277_v2 }
  0xde   : > { %v281_v4 = vor.u32 %v280_v51, %v279_v48  ;;  %v284_v5 = vor.u32 %v283_v11, %v282_v39  ;;  %v291_v61 = vshll.u32 %v4000_v36, %v276_v18  ;;  %v292_v12 = vshrl.u32 %v4001_v44, %v277_v2 }
  0xdf   : > { %v2840_v59 = vld [vmem:[#allocation2 + $0x40] sm:$0xff]  ;;  %vm2045_vm2 = vcmp.eq.s32.totalorder %v4611_v22, 2  ;;  %vm2268_vm3 = vcmp.eq.s32.totalorder %v4606_v46, 2  ;;  %vm3623_vm4 = vcmp.lt.s32.totalorder %v3622_v25, 0  ;;  %v287_v45 = vor.u32 %v286_v7, %v285_v21 }
  0xe0   : > { %2845 = vxpose.xlu0.b32.cont [3/5] (short) %v2840_v59, 128  ;;  %v290_v56 = vor.u32 %v289_v24, %v288_v63  ;;  %vm294_vm5 = vcmp.lt.s32.totalorder %v4626_v3, 1  ;;  %vm2265_vm6 = vcmp.eq.s32.totalorder %v4606_v46, 0  ;;  %v2469_v9 = vsel %vm3623_vm4, 0, %v3622_v25 }
  0xe1   : > { %v2894_v13 = vld [vmem:[#allocation2 + $0x48] sm:$0xff]  ;;  %v293_v6 = vor.u32 %v292_v12, %v291_v61  ;;  %vm296_vm7 = vcmp.lt.s32.totalorder %v4626_v3, 3  ;;  %vm297_vm8 = vcmp.lt.s32.totalorder %v4626_v3, 4  ;;  %vm2041_vm9 = vcmp.lt.s32.totalorder %v4611_v22, 2 }
  0xe2   : > { %2899 = vxpose.xlu1.b32.cont [3/5] (short) %v2894_v13, 128  ;;  %vm2264_vm11 = vcmp.lt.s32.totalorder %v4606_v46, 2  ;;  %vm4648_vm12 = vcmp.le.f32.partialorder %v2398_v58, 0.7853982  ;;  %v2470_v18 = vsub.s32 32, %v2469_v9  ;;  %v2471_v14 = vshll.u32 %v4604_v60, %v2469_v9 }
  0xe3   : > { %v2474_v16 = vsub.s32 4294967266, %v2469_v9  ;;  %vm295_vm13 = vcmp.lt.s32.totalorder %v4626_v3, 2  ;;  %vm2038_vm14 = vweird.f32 %v4305_v15  ;;  %v2485_v55 = vsel %vm2400_vm10, %v2484_v57, %v4589_v1 }
  0xe4   : > { %v299_v17 = vsel %vm297_vm8, %v287_v45, 2102212464  ;;  %v302_v58 = vsel %vm294_vm5, %v281_v4, %v284_v5  ;;  %v303_v50 = vsel %vm297_vm8, %v290_v56, 920167782  ;;  %v2472_v26 = vshrl.u32 %v2454_v52, %v2470_v18 }
  0xe5   : > { %v2475_v23 = vadd.s32 127, %v2474_v16  ;;  %v304_v33 = vsel %vm296_vm7, %v287_v45, %v303_v50  ;;  %v306_v38 = vsel %vm294_vm5, %v284_v5, %v287_v45  ;;  %v298_v1 = vsel %vm294_vm5, %v278_v8, %v281_v4 }
  0xe6   : > { %v305_v35 = vsel %vm295_vm13, %v302_v58, %v304_v33  ;;  %v307_v60 = vsel %vm297_vm8, %v293_v6, 1326507024  ;;  %v3560_v49 = vadd.s32 4294967169, %v718_v62  ;;  %v2473_v2 = vor.u32 %v2472_v26, %v2471_v14 }
  0xe7   : > { %v2476_v37 = vshll.u32 %v2475_v23, 23  ;;  %v300_v27 = vsel %vm296_vm7, %v284_v5, %v299_v17  ;;  %v308_v40 = vsel %vm296_vm7, %v290_v56, %v307_v60  ;;  %vm2042_vm15 = vcmp.eq.s32.totalorder %v4611_v22, 0 }
  0xe8   : > { %v309_v41 = vsel %vm295_vm13, %v306_v38, %v308_v40  ;;  %v4681_v10 = vmul.u32.u64.low %v4628_v54, %v305_v35  ;;  %v4682_v47 = vmul.u32.u64.high %v4628_v54, %v305_v35, %v4681_v10  ;;  %v724_v52 = vadd.s32 1, %v3560_v49 }
  0xe9   : > { %v3835_v20 = vpop.eup %3834  ;;  %v2477_v48 = vor.u32 4788187, %v2476_v37  ;;  %v2480_v51 = vcvt.s32.f32 %v2473_v2  ;;  %v4686_v39 = vmul.u32.u64.low %v4628_v54, %v309_v41  ;;  %v4687_v11 = vmul.u32.u64.high %v4628_v54, %v309_v41, %v4686_v39 }
  0xea   : > { %v3837_v53 = vpop.eup %3836  ;;  %v2046_v57 = vxor.u32 2147483648, %v3835_v20  ;;  %v301_v8 = vsel %vm295_vm13, %v298_v1, %v300_v27  ;;  %vm725_vm0 = vcmp.gt.s32.totalorder %v724_v52, 0  ;;  %v4694_v25 = vand.u32 8388607, %v714_v42 }
  0xeb   : > { %v2043_v21 = vxor.u32 2147483648, %v3837_v53  ;;  %v2478_v62 = vand.u32 2147483647, %v2477_v48  ;;  %v726_v7 = vsel %vm725_vm0, %v724_v52, 0  ;;  %v2487_v59 = vsel %vm4648_vm12, 0, %v2485_v55 }
  0xec   : > { %v2047_v63 = vsel %vm2045_vm2, %v2046_v57, %v3837_v53  ;;  %v2270_v24 = vsel %vm2268_vm3, %v2046_v57, %v3837_v53  ;;  %v320_v3 = vadd.s32 1, %v4682_v47  ;;  %v317_v12 = vmul.u32 %v4628_v54, %v301_v8 }
  0xed   : > { %v2044_v4 = vsel %vm2042_vm15, %v3835_v20, %v2043_v21  ;;  %v2267_v5 = vsel %vm2265_vm6, %v3835_v20, %v2043_v21  ;;  %v2481_v61 = vmul.f32 %v2480_v51, %v2478_v62  ;;  %vm319_vm1 = vc.u32 %v4687_v11, %v4681_v10 }
  0xee   : > { %v2048_v45 = vsel %vm2041_vm9, %v2044_v4, %v2047_v63  ;;  %v2271_v56 = vsel %vm2264_vm11, %v2267_v5, %v2270_v24  ;;  %v728_v13 = vand.u32 31, %v726_v7  ;;  %v321_v14 = vsel %vm319_vm1, %v320_v3, %v4682_v47 }
  0xef   : > { %v2049_v9 = vsel %vm2038_vm14, nan, %v2048_v45  ;;  %v2272_v6 = vsel %vm2038_vm14, nan, %v2271_v56  ;;  %v2482_v18 = vxor.u32 2147483648, %v2481_v61  ;;  %v322_v17 = vadd.s32 %v321_v14, %v317_v12 }
  0xf0   : > { %v2158_v54 = vrot.slane %v2049_v9, 5  ;;  %v2380_v16 = vrot.slane %v2272_v6, 2  ;;  %v2156_v22 = vcombine.high %v2049_v9, %v2049_v9  ;;  %v2378_v55 = vcombine.high %v2272_v6, %v2272_v6 }
  0xf1   : > { %v2483_v46 = vsel %vm2400_vm10, %v2482_v18, %v2481_v61  ;;  %v4719_v58 = vshrl.u32 %v726_v7, 5  ;;  %v729_v50 = vsub.s32 32, %v728_v13  ;;  %v731_v33 = vshll.u32 %v3996_v28, %v728_v13 }
  0xf2   : > { %2166 = vst [vmem:[#allocation2 + $0x60] sm:$0x38] %v2158_v54  ;;  %2388 = vst [vmem:[#allocation2 + $0x80] ss:$-28 sps:$4 sm:$0xc1] %v2380_v16   ;;  %v2159_v26 = vrot.slane %v2156_v22, 5  ;;  %v2486_v15 = vsel %vm4648_vm12, %v4438_v31, %v2483_v46  ;;  %v734_v35 = vshll.u32 %v3997_v30, %v728_v13  ;;  %v737_v49 = vshll.u32 %v3998_v32, %v728_v13 }
  0xf3   : > { %v2381_v23 = vrot.slane %v2378_v55, 2  ;;  %3838 = vcosq.f32 %v2486_v15  ;;  %v323_v38 = vadd.s32 536870912, %v322_v17  ;;  %v732_v1 = vshrl.u32 %v3997_v30, %v729_v50 }
  0xf4   : > { %2167 = vst [vmem:[#allocation2 + $0x68] sm:$0x38] %v2159_v26  ;;  %3840 = vsinq.f32 %v2486_v15  ;;  %v735_v60 = vshrl.u32 %v3998_v32, %v729_v50  ;;  %v738_v2 = vshrl.u32 %v3999_v34, %v729_v50  ;;  %v2491_v37 = vadd.s32 3, %v2487_v59 }
  0xf5   : > { %2389 = vst [vmem:[#allocation2 + $0x88] ss:$-28 sps:$4 sm:$0xc1] %v2381_v23   ;;  %v4730_v43 = vshrl.u32 %v323_v38, 30  ;;  %v740_v27 = vshll.u32 %v3999_v34, %v728_v13  ;;  %v741_v40 = vshrl.u32 %v4000_v36, %v729_v50  ;;  %v4734_v41 = vand.u32 3, %v2487_v59 }
  0xf6   : > { %v722_v47 = vor.u32 8388608, %v4694_v25  ;;  %v743_v52 = vshll.u32 %v4000_v36, %v728_v13  ;;  %v744_v20 = vshrl.u32 %v4001_v44, %v729_v50  ;;  %v733_v51 = vor.u32 %v732_v1, %v731_v33 }
  0xf7   : > { %v325_v48 = vshll.u32 %v4730_v43, 30  ;;  %v736_v39 = vor.u32 %v735_v60, %v734_v35  ;;  %v742_v53 = vor.u32 %v741_v40, %v740_v27  ;;  %v739_v57 = vor.u32 %v738_v2, %v737_v49 }
  0xf8   : > { %v745_v8 = vor.u32 %v744_v20, %v743_v52  ;;  %vm746_vm10 = vcmp.lt.s32.totalorder %v4719_v58, 1  ;;  %vm749_vm2 = vcmp.lt.s32.totalorder %v4719_v58, 4  ;;  %v2492_v62 = vand.u32 3, %v2491_v37 }
  0xf9   : > { %v2841_v21 = vld [vmem:[#allocation2 + $0x60] sm:$0xff]  ;;  %v4742_v7 = vsub.s32 %v322_v17, %v325_v48  ;;  %vm748_vm3 = vcmp.lt.s32.totalorder %v4719_v58, 3  ;;  %vm2716_vm4 = vcmp.lt.s32.totalorder %v4734_v41, 2  ;;  %vm2717_vm5 = vcmp.eq.s32.totalorder %v4734_v41, 0 }
  0xfa   : > { %2846 = vxpose.xlu0.b32.cont [4/5] (short) %v2841_v21, 128  ;;  %v755_v25 = vsel %vm749_vm2, %v742_v53, 920167782  ;;  %v4750_v63 = vmul.f32 4.0, %v4208_v19  ;;  %vm2490_vm6 = vweird.f32 %v4438_v31  ;;  %v730_v3 = vshrl.u32 %v3996_v28, %v729_v50 }
  0xfb   : > { %v328_v59 = vsub.s32 0, %v4742_v7  ;;  %vm747_vm7 = vcmp.lt.s32.totalorder %v4719_v58, 2  ;;  %v754_v4 = vsel %vm746_vm10, %v733_v51, %v736_v39  ;;  %v751_v5 = vsel %vm749_vm2, %v739_v57, 2102212464 }
  0xfc   : > { %v2895_v24 = vld [vmem:[#allocation2 + $0x68] sm:$0xff]  ;;  %v756_v61 = vsel %vm748_vm3, %v739_v57, %v755_v25  ;;  %v759_v12 = vsel %vm749_vm2, %v745_v8, 1326507024  ;;  %v762_v45 = vshll.u32 %v722_v47, 8  ;;  %vm2493_vm8 = vcmp.lt.s32.totalorder %v2492_v62, 2 }
  0xfd   : > { %2900 = vxpose.xlu1.b32.cont [4/5] (short) %v2895_v24, 128  ;;  %vm2720_vm9 = vcmp.eq.s32.totalorder %v4734_v41, 2  ;;  %v3545_v56 = vmin.u32 %v328_v59, %v4742_v7  ;;  %v758_v13 = vsel %vm746_vm10, %v736_v39, %v739_v57  ;;  %vm2494_vm11 = vcmp.eq.s32.totalorder %v2492_v62, 0 }
  0xfe   : > { %v757_v9 = vsel %vm747_vm7, %v754_v4, %v756_v61  ;;  %v760_v6 = vsel %vm748_vm3, %v742_v53, %v759_v12  ;;  %v1159_v18 = vand.u32 2139095040, %v4750_v63  ;;  %vm2497_vm12 = vcmp.eq.s32.totalorder %v2492_v62, 2 }
  0xff   : > { %v330_v14 = vclz %v3545_v56  ;;  %v750_v54 = vsel %vm746_vm10, %v730_v3, %v733_v51  ;;  %v752_v16 = vsel %vm748_vm3, %v736_v39, %v751_v5  ;;  %v761_v55 = vsel %vm747_vm7, %v758_v13, %v760_v6 }
 0x100   : > { %v3839_v22 = vpop.eup %3838  ;;  %v4779_v46 = vmul.u32.u64.low %v762_v45, %v757_v9  ;;  %v4780_v17 = vmul.u32.u64.high %v762_v45, %v757_v9, %v4779_v46  ;;  %v1160_v50 = vshrl.u32 %v1159_v18, 23  ;;  %v318_v35 = vadd.s32 %v4681_v10, %v4687_v11 }
 0x101   : > { %v3841_v26 = vpop.eup %3840  ;;  %v2498_v23 = vxor.u32 2147483648, %v3839_v22  ;;  %v3546_v15 = vadd.s32 4294967294, %v330_v14  ;;  %v4783_v33 = vmul.u32.u64.low %v762_v45, %v761_v55  ;;  %v4784_v38 = vmul.u32.u64.high %v762_v45, %v761_v55, %v4783_v33 }
 0x102   : > { %v2495_v1 = vxor.u32 2147483648, %v3841_v26  ;;  %v348_v60 = vsub.s32 4, %v4730_v43  ;;  %v753_v49 = vsel %vm747_vm7, %v750_v54, %v752_v16  ;;  %v3576_v27 = vadd.s32 4294967169, %v1160_v50 }
 0x103   : > { %v2499_v2 = vsel %vm2497_vm12, %v2498_v23, %v3841_v26  ;;  %v2722_v37 = vsel %vm2720_vm9, %v2498_v23, %v3841_v26  ;;  %vm3547_vm13 = vcmp.lt.s32.totalorder %v3546_v15, 0  ;;  %v772_v10 = vadd.s32 1, %v4780_v17 }
 0x104   : > { %v2496_v40 = vsel %vm2494_vm11, %v3839_v22, %v2495_v1  ;;  %v2719_v47 = vsel %vm2717_vm5, %v3839_v22, %v2495_v1  ;;  %v333_v52 = vsel %vm3547_vm13, 0, %v3546_v15  ;;  %v769_v57 = vmul.u32 %v762_v45, %v753_v49 }
 0x105   : > { %v2500_v11 = vsel %vm2493_vm8, %v2496_v40, %v2499_v2  ;;  %v2723_v58 = vsel %vm2716_vm4, %v2719_v47, %v2722_v37  ;;  %v334_v20 = vsub.s32 32, %v333_v52  ;;  %v335_v48 = vshll.u32 %v4742_v7, %v333_v52 }
 0x106   : > { %v2501_v51 = vsel %vm2490_vm6, nan, %v2500_v11  ;;  %v2724_v39 = vsel %vm2490_vm6, nan, %v2723_v58  ;;  %v338_v53 = vsub.s32 4294967266, %v333_v52  ;;  %vm771_vm14 = vc.u32 %v4784_v38, %v4779_v46 }
 0x107   : > { %v2610_v8 = vrot.slane %v2501_v51, 7  ;;  %v2830_v21 = vcombine.low %v2724_v39, %v2724_v39  ;;  %2835 = vst [vmem:[#allocation2 + $0x88] sm:$0x70] %v2724_v39  ;;  %v2608_v25 = vcombine.high %v2501_v51, %v2501_v51  ;;  %v336_v62 = vshrl.u32 %v318_v35, %v334_v20 }
 0x108   : > { %v339_v24 = vadd.s32 127, %v338_v53  ;;  %v1166_v41 = vadd.s32 1, %v3576_v27  ;;  %v773_v3 = vsel %vm771_vm14, %v772_v10, %v4780_v17  ;;  %vm264_vm15 = vcmp.lt.s32.totalorder %v4208_v19, 0 }
 0x109   : > { %2618 = vst [vmem:[#allocation2 + $0x80] sm:$0xe] %v2610_v8  ;;  %2834 = vst [vmem:[#allocation2 + $0x80] sm:$0x70] %v2830_v21  ;;  %v2611_v7 = vrot.slane %v2608_v25, 7  ;;  %v337_v59 = vor.u32 %v336_v62, %v335_v48  ;;  %v774_v4 = vadd.s32 %v773_v3, %v769_v57  ;;  %v349_v5 = vsel %vm264_vm15, %v348_v60, %v4730_v43 }
 0x10a   : > { %v340_v31 = vshll.u32 %v339_v24, 23  ;;  %vm1167_vm0 = vcmp.gt.s32.totalorder %v1166_v41, 0  ;;  %v1156_v61 = vand.u32 2147483647, %v4750_v63  ;;  %vm4816_vm1 = vcmp.le.f32.partialorder %v262_v0, 0.7853982 }
 0x10b   : > { %2619 = vst [vmem:[#allocation2 + $0x88] sm:$0xe] %v2611_v7  ;;  %v1168_v12 = vsel %vm1167_vm0, %v1166_v41, 0  ;;  %v344_v56 = vcvt.s32.f32 %v337_v59  ;;  %v775_v13 = vadd.s32 536870912, %v774_v4  ;;  %v351_v43 = vsel %vm4816_vm1, 0, %v349_v5 }
 0x10c   : > { %v341_v45 = vor.u32 4788187, %v340_v31  ;;  %v1170_v9 = vand.u32 31, %v1168_v12  ;;  %v1163_v16 = vand.u32 8388607, %v1156_v61  ;;  %v4826_v22 = vshrl.u32 %v1168_v12, 5 }
 0x10d   : > { %v4820_v14 = vshrl.u32 %v775_v13, 30  ;;  %v4829_v55 = vmul.f32 8.0, %v4208_v19  ;;  %v355_v40 = vadd.s32 3, %v351_v43  ;;  %v4854_v25 = vand.u32 3, %v351_v43 }
 0x10e   : > { %v342_v18 = vand.u32 2147483647, %v341_v45  ;;  %v1171_v54 = vsub.s32 32, %v1170_v9  ;;  %v1173_v26 = vshll.u32 %v3996_v28, %v1170_v9  ;;  %v1176_v23 = vshll.u32 %v3997_v30, %v1170_v9 }
 0x10f   : > { %v777_v50 = vshll.u32 %v4820_v14, 30  ;;  %v1179_v1 = vshll.u32 %v3998_v32, %v1170_v9  ;;  %v1182_v37 = vshll.u32 %v3999_v34, %v1170_v9  ;;  %v1185_v47 = vshll.u32 %v4000_v36, %v1170_v9 }
 0x110   : > { %v2842_v17 = vld [vmem:[#allocation2 + $0x80] sm:$0xff]  ;;  %v345_v0 = vmul.f32 %v344_v56, %v342_v18  ;;  %v1174_v15 = vshrl.u32 %v3997_v30, %v1171_v54  ;;  %v1177_v33 = vshrl.u32 %v3998_v32, %v1171_v54  ;;  %v1180_v35 = vshrl.u32 %v3999_v34, %v1171_v54 }
 0x111   : > { %2847 = vxpose.xlu0.b32.end [5/5] (short) %v2842_v17, 128  ;;  %v4838_v2 = vsub.s32 %v774_v4, %v777_v50  ;;  %v1183_v27 = vshrl.u32 %v4000_v36, %v1171_v54  ;;  %v1186_v52 = vshrl.u32 %v4001_v44, %v1171_v54  ;;  %v1611_v10 = vand.u32 2139095040, %v4829_v55 }
 0x112   : > { %v2896_v60 = vld [vmem:[#allocation2 + $0x88] sm:$0xff]  ;;  %v346_v49 = vxor.u32 2147483648, %v345_v0  ;;  %v1164_v20 = vor.u32 8388608, %v1163_v16  ;;  %v1172_v48 = vshrl.u32 %v3996_v28, %v1171_v54  ;;  %v1175_v39 = vor.u32 %v1174_v15, %v1173_v26 }
 0x113   : > { %2901 = vxpose.xlu1.b32.end [5/5] (short) %v2896_v60, 128  ;;  %v780_v58 = vsub.s32 0, %v4838_v2  ;;  %v1178_v53 = vor.u32 %v1177_v33, %v1176_v23  ;;  %v1181_v57 = vor.u32 %v1180_v35, %v1179_v1  ;;  %v1184_v21 = vor.u32 %v1183_v27, %v1182_v37 }
 0x114   : > { %v347_v11 = vsel %vm264_vm15, %v346_v49, %v345_v0  ;;  %vm1188_vm10 = vcmp.lt.s32.totalorder %v4826_v22, 1  ;;  %v1187_v62 = vor.u32 %v1186_v52, %v1185_v47  ;;  %v1612_v24 = vshrl.u32 %v1611_v10, 23 }
 0x115   : > { %v350_v51 = vsel %vm4816_vm1, %v4208_v19, %v347_v11  ;;  %v3561_v8 = vmin.u32 %v780_v58, %v4838_v2  ;;  %v4856_v41 = vand.u32 3, %v355_v40  ;;  %vm1189_vm2 = vcmp.lt.s32.totalorder %v4826_v22, 2 }
 0x116   : > { %3842 = vcosq.f32 %v350_v51  ;;  %v1204_v59 = vshll.u32 %v1164_v20, 8  ;;  %vm1190_vm3 = vcmp.lt.s32.totalorder %v4826_v22, 3  ;;  %vm1191_vm4 = vcmp.lt.s32.totalorder %v4826_v22, 4 }
 0x117   : > { %3844 = vsinq.f32 %v350_v51  ;;  %v782_v7 = vclz %v3561_v8  ;;  %v1192_v3 = vsel %vm1188_vm10, %v1172_v48, %v1175_v39  ;;  %v1196_v31 = vsel %vm1188_vm10, %v1175_v39, %v1178_v53 }
 0x118   : > { %vm716_vm5 = vcmp.lt.s32.totalorder %v4602_v29, 0  ;;  %v1193_v5 = vsel %vm1191_vm4, %v1181_v57, 2102212464  ;;  %v1197_v12 = vsel %vm1191_vm4, %v1184_v21, 920167782  ;;  %v1200_v45 = vsel %vm1188_vm10, %v1178_v53, %v1181_v57 }
 0x119   : > { %v3562_v4 = vadd.s32 4294967294, %v782_v7  ;;  %v1194_v56 = vsel %vm1190_vm3, %v1178_v53, %v1193_v5  ;;  %v1198_v13 = vsel %vm1190_vm3, %v1181_v57, %v1197_v12  ;;  %v1201_v9 = vsel %vm1191_vm4, %v1187_v62, 1326507024 }
 0x11a   : > { %v3592_v6 = vadd.s32 4294967169, %v1612_v24  ;;  %v770_v18 = vadd.s32 %v4779_v46, %v4784_v38  ;;  %v1199_v54 = vsel %vm1189_vm2, %v1196_v31, %v1198_v13  ;;  %v1202_v43 = vsel %vm1190_vm3, %v1184_v21, %v1201_v9 }
 0x11b   : > { %vm3563_vm6 = vcmp.lt.s32.totalorder %v3562_v4, 0  ;;  %vm4880_vm7 = vcmp.le.f32.partialorder %v714_v42, 0.7853982  ;;  %v1203_v0 = vsel %vm1189_vm2, %v1200_v45, %v1202_v43  ;;  %vm354_vm8 = vweird.f32 %v4208_v19 }
 0x11c   : > { %v785_v17 = vsel %vm3563_vm6, 0, %v3562_v4  ;;  %v4886_v50 = vmul.u32.u64.low %v1204_v59, %v1199_v54  ;;  %v4887_v26 = vmul.u32.u64.high %v1204_v59, %v1199_v54, %v4886_v50  ;;  %v1195_v42 = vsel %vm1189_vm2, %v1192_v3, %v1194_v56 }
 0x11d   : > { %v786_v46 = vsub.s32 32, %v785_v17  ;;  %v787_v38 = vshll.u32 %v4838_v2, %v785_v17  ;;  %v790_v23 = vsub.s32 4294967266, %v785_v17  ;;  %v800_v15 = vsub.s32 4, %v4820_v14 }
 0x11e   : > { %v4895_v33 = vmul.u32.u64.low %v1204_v59, %v1203_v0  ;;  %v4896_v1 = vmul.u32.u64.high %v1204_v59, %v1203_v0, %v4895_v33  ;;  %v1618_v35 = vadd.s32 1, %v3592_v6  ;;  %vm580_vm9 = vcmp.eq.s32.totalorder %v4854_v25, 0 }
 0x11f   : > { %vm583_vm11 = vcmp.eq.s32.totalorder %v4854_v25, 2  ;;  %v788_v60 = vshrl.u32 %v770_v18, %v786_v46  ;;  %v791_v49 = vadd.s32 127, %v790_v23  ;;  %vm358_vm12 = vcmp.eq.s32.totalorder %v4856_v41, 0 }
 0x120   : > { %v1211_v37 = vmul.u32 %v1204_v59, %v1195_v42  ;;  %v1214_v2 = vadd.s32 1, %v4887_v26  ;;  %vm1619_vm13 = vcmp.gt.s32.totalorder %v1618_v35, 0  ;;  %vm361_vm14 = vcmp.eq.s32.totalorder %v4856_v41, 2 }
 0x121   : > { %v789_v22 = vor.u32 %v788_v60, %v787_v38  ;;  %v792_v27 = vshll.u32 %v791_v49, 23  ;;  %v1620_v40 = vsel %vm1619_vm13, %v1618_v35, 0  ;;  %v801_v52 = vsel %vm716_vm5, %v800_v15, %v4820_v14 }
 0x122   : > { %vm1213_vm15 = vc.u32 %v4896_v1, %v4886_v50  ;;  %v1608_v10 = vand.u32 2147483647, %v4829_v55  ;;  %v1622_v11 = vand.u32 31, %v1620_v40  ;;  %vm357_vm0 = vcmp.lt.s32.totalorder %v4856_v41, 2 }
 0x123   : > { %v3843_v47 = vpop.eup %3842  ;;  %v793_v48 = vor.u32 4788187, %v792_v27  ;;  %v796_v51 = vcvt.s32.f32 %v789_v22  ;;  %v1215_v39 = vsel %vm1213_vm15, %v1214_v2, %v4887_v26  ;;  %vm579_vm1 = vcmp.lt.s32.totalorder %v4854_v25, 2 }
 0x124   : > { %v3845_v58 = vpop.eup %3844  ;;  %v362_v20 = vxor.u32 2147483648, %v3843_v47  ;;  %v1216_v57 = vadd.s32 %v1215_v39, %v1211_v37  ;;  %v803_v62 = vsel %vm4880_vm7, 0, %v801_v52  ;;  %v1615_v3 = vand.u32 8388607, %v1608_v10 }
 0x125   : > { %v359_v53 = vxor.u32 2147483648, %v3845_v58  ;;  %v794_v21 = vand.u32 2147483647, %v793_v48  ;;  %v1623_v12 = vsub.s32 32, %v1622_v11  ;;  %v807_v13 = vadd.s32 3, %v803_v62 }
 0x126   : > { %v363_v14 = vsel %vm361_vm14, %v362_v20, %v3845_v58  ;;  %v585_v8 = vsel %vm583_vm11, %v362_v20, %v3845_v58  ;;  %v1217_v59 = vadd.s32 536870912, %v1216_v57  ;;  %v4931_v17 = vshrl.u32 %v1620_v40, 5 }
 0x127   : > { %v360_v24 = vsel %vm358_vm12, %v3843_v47, %v359_v53  ;;  %v582_v7 = vsel %vm580_vm9, %v3843_v47, %v359_v53  ;;  %v797_v5 = vmul.f32 %v796_v51, %v794_v21  ;;  %v1625_v0 = vshll.u32 %v3996_v28, %v1622_v11 }
 0x128   : > { %v364_v31 = vsel %vm357_vm0, %v360_v24, %v363_v14  ;;  %v586_v4 = vsel %vm579_vm1, %v582_v7, %v585_v8  ;;  %v4928_v41 = vshrl.u32 %v1217_v59, 30  ;;  %v1626_v38 = vshrl.u32 %v3997_v30, %v1623_v12 }
 0x129   : > { %v365_v45 = vsel %vm354_vm8, nan, %v364_v31  ;;  %v587_v56 = vsel %vm354_vm8, nan, %v586_v4  ;;  %v798_v54 = vxor.u32 2147483648, %v797_v5  ;;  %v1628_v23 = vshll.u32 %v3997_v30, %v1622_v11 }
 0x12a   : > { %v372_v9 = vrot.slane %v365_v45, 5  ;;  %v594_v25 = vrot.slane %v587_v56, 2  ;;  %v369_v6 = vcombine.high %v365_v45, %v365_v45  ;;  %v591_v18 = vcombine.high %v587_v56, %v587_v56 }
 0x12b   : > { %v1219_v43 = vshll.u32 %v4928_v41, 30  ;;  %v799_v42 = vsel %vm716_vm5, %v798_v54, %v797_v5  ;;  %v1629_v33 = vshrl.u32 %v3998_v32, %v1623_v12  ;;  %v1631_v35 = vshll.u32 %v3998_v32, %v1622_v11 }
 0x12c   : > { %380 = vst [vmem:[#allocation2 + $0x10] sm:$0x38] %v372_v9  ;;  %602 = vst [vmem:[#allocation2 + $0x30] ss:$-28 sps:$4 sm:$0xc1] %v594_v25   ;;  %v373_v26 = vrot.slane %v369_v6, 5  ;;  %v802_v60 = vsel %vm4880_vm7, %v4602_v29, %v799_v42  ;;  %v1632_v49 = vshrl.u32 %v3999_v34, %v1623_v12  ;;  %v1634_v37 = vshll.u32 %v3999_v34, %v1622_v11 }
 0x12d   : > { %v595_v46 = vrot.slane %v591_v18, 2  ;;  %v4938_v15 = vsub.s32 %v1216_v57, %v1219_v43  ;;  %v1635_v2 = vshrl.u32 %v4000_v36, %v1623_v12  ;;  %3846 = vcosq.f32 %v802_v60 }
 0x12e   : > { %381 = vst [vmem:[#allocation2 + $0x18] sm:$0x38] %v373_v26  ;;  %v1616_v27 = vor.u32 8388608, %v1615_v3  ;;  %v4950_v40 = vmul.f32 16.0, %v4208_v19  ;;  %3848 = vsinq.f32 %v802_v60  ;;  %v4952_v47 = vand.u32 3, %v807_v13 }
 0x12f   : > { %603 = vst [vmem:[#allocation2 + $0x38] ss:$-28 sps:$4 sm:$0xc1] %v595_v46   ;;  %v1222_v22 = vsub.s32 0, %v4938_v15  ;;  %v4954_v52 = vand.u32 3, %v803_v62  ;;  %v1637_v16 = vshll.u32 %v4000_v36, %v1622_v11  ;;  %v1627_v20 = vor.u32 %v1626_v38, %v1625_v0 }
 0x130   : > { %v1630_v48 = vor.u32 %v1629_v33, %v1628_v23  ;;  %v1636_v51 = vor.u32 %v1635_v2, %v1634_v37  ;;  %v1624_v39 = vshrl.u32 %v3996_v28, %v1623_v12  ;;  %v1633_v53 = vor.u32 %v1632_v49, %v1631_v35 }
 0x131   : > { %v3577_v58 = vmin.u32 %v1222_v22, %v4938_v15  ;;  %v1638_v57 = vshrl.u32 %v4001_v44, %v1623_v12  ;;  %vm1640_vm10 = vcmp.lt.s32.totalorder %v4931_v17, 1  ;;  %v1212_v14 = vadd.s32 %v4886_v50, %v4896_v1 }
 0x132   : > { %v4963_v21 = vshll.u32 %v1616_v27, 8  ;;  %v2053_v11 = vand.u32 2139095040, %v4950_v40  ;;  %vm1035_vm2 = vcmp.eq.s32.totalorder %v4954_v52, 2  ;;  %vm1641_vm3 = vcmp.lt.s32.totalorder %v4931_v17, 2 }
 0x133   : > { %v1224_v8 = vclz %v3577_v58  ;;  %v1639_v62 = vor.u32 %v1638_v57, %v1637_v16  ;;  %vm1642_vm4 = vcmp.lt.s32.totalorder %v4931_v17, 3  ;;  %vm1643_vm5 = vcmp.lt.s32.totalorder %v4931_v17, 4  ;;  %v2945_v42 = vld [vmem:[#allocation2 + $0x10] sm:$0xff] }
 0x134   : > { %vm1032_vm6 = vcmp.eq.s32.totalorder %v4954_v52, 0  ;;  %vm1158_vm7 = vcmp.lt.s32.totalorder %v4750_v63, 0  ;;  %v1645_v50 = vsel %vm1643_vm5, %v1633_v53, 2102212464  ;;  %v1648_v1 = vsel %vm1640_vm10, %v1627_v20, %v1630_v48 }
 0x135   : > { %v3578_v24 = vadd.s32 4294967294, %v1224_v8  ;;  %v1649_v7 = vsel %vm1643_vm5, %v1636_v51, 920167782  ;;  %vm1031_vm8 = vcmp.lt.s32.totalorder %v4954_v52, 2  ;;  %v1644_v59 = vsel %vm1640_vm10, %v1624_v39, %v1627_v20 }
 0x136   : > { %v1650_v3 = vsel %vm1642_vm4, %v1633_v53, %v1649_v7  ;;  %v1652_v31 = vsel %vm1640_vm10, %v1630_v48, %v1633_v53  ;;  %v1653_v4 = vsel %vm1643_vm5, %v1639_v62, 1326507024  ;;  %vm806_vm9 = vweird.f32 %v4602_v29  ;;  %v2998_v37 = vld [vmem:[#allocation2 + $0x18] sm:$0xff] }
 0x137   : > { %vm3579_vm11 = vcmp.lt.s32.totalorder %v3578_v24, 0  ;;  %v1646_v5 = vsel %vm1642_vm4, %v1630_v48, %v1645_v50  ;;  %v1651_v12 = vsel %vm1641_vm3, %v1648_v1, %v1650_v3  ;;  %v1654_v45 = vsel %vm1642_vm4, %v1636_v51, %v1653_v4 }
 0x138   : > { %v1227_v56 = vsel %vm3579_vm11, 0, %v3578_v24  ;;  %v1655_v13 = vsel %vm1641_vm3, %v1652_v31, %v1654_v45  ;;  %v4991_v9 = vmul.u32.u64.low %v4963_v21, %v1651_v12  ;;  %v4992_v25 = vmul.u32.u64.high %v4963_v21, %v1651_v12, %v4991_v9 }
 0x139   : > { %vm4997_vm12 = vcmp.le.f32.partialorder %v1156_v61, 0.7853982  ;;  %v1228_v18 = vsub.s32 32, %v1227_v56  ;;  %v1229_v54 = vshll.u32 %v4938_v15, %v1227_v56  ;;  %v1232_v43 = vsub.s32 4294967266, %v1227_v56 }
 0x13a   : > { %v1242_v0 = vsub.s32 4, %v4928_v41  ;;  %v1647_v26 = vsel %vm1641_vm3, %v1644_v59, %v1646_v5  ;;  %v5006_v46 = vmul.u32.u64.low %v4963_v21, %v1655_v13  ;;  %v5007_v38 = vmul.u32.u64.high %v4963_v21, %v1655_v13, %v5006_v46  ;;  %v3847_v35 = vpop.eup %3846 }
 0x13b   : > { %v2054_v23 = vshrl.u32 %v2053_v11, 23  ;;  %vm809_vm13 = vcmp.lt.s32.totalorder %v4952_v47, 2  ;;  %vm810_vm14 = vcmp.eq.s32.totalorder %v4952_v47, 0  ;;  %v1230_v61 = vshrl.u32 %v1212_v14, %v1228_v18  ;;  %v3849_v49 = vpop.eup %3848 }
 0x13c   : > { %v1233_v33 = vadd.s32 127, %v1232_v43  ;;  %vm813_vm15 = vcmp.eq.s32.totalorder %v4952_v47, 2  ;;  %v1666_v15 = vadd.s32 1, %v4992_v25  ;;  %v2050_v17 = vand.u32 2147483647, %v4950_v40 }
 0x13d   : > { %v3608_v60 = vadd.s32 4294967169, %v2054_v23  ;;  %v814_v2 = vxor.u32 2147483648, %v3847_v35  ;;  %v1231_v22 = vor.u32 %v1230_v61, %v1229_v54  ;;  %v1663_v16 = vmul.u32 %v4963_v21, %v1647_v26 }
 0x13e   : > { %v1234_v27 = vshll.u32 %v1233_v33, 23  ;;  %2950 = vxpose.xlu0.b32.start [1/5] (short) %v2945_v42, 128  ;;  %v811_v58 = vxor.u32 2147483648, %v3849_v49  ;;  %v1243_v20 = vsel %vm1158_vm7, %v1242_v0, %v4928_v41  ;;  %vm1665_vm0 = vc.u32 %v5007_v38, %v4991_v9 }
 0x13f   : > { %v2060_v48 = vadd.s32 1, %v3608_v60  ;;  %v815_v51 = vsel %vm813_vm15, %v814_v2, %v3849_v49  ;;  %v1037_v39 = vsel %vm1035_vm2, %v814_v2, %v3849_v49  ;;  %v1238_v57 = vcvt.s32.f32 %v1231_v22 }
 0x140   : > { %v1235_v53 = vor.u32 4788187, %v1234_v27  ;;  %3003 = vxpose.xlu1.b32.start [1/5] (short) %v2998_v37, 128  ;;  %v812_v14 = vsel %vm810_vm14, %v3847_v35, %v811_v58  ;;  %v1034_v8 = vsel %vm1032_vm6, %v3847_v35, %v811_v58  ;;  %v1667_v41 = vsel %vm1665_vm0, %v1666_v15, %v4992_v25 }
 0x141   : > { %vm2061_vm1 = vcmp.gt.s32.totalorder %v2060_v48, 0  ;;  %v816_v21 = vsel %vm809_vm13, %v812_v14, %v815_v51  ;;  %v1038_v11 = vsel %vm1031_vm8, %v1034_v8, %v1037_v39  ;;  %v1668_v24 = vadd.s32 %v1667_v41, %v1663_v16 }
 0x142   : > { %v1236_v62 = vand.u32 2147483647, %v1235_v53  ;;  %v817_v50 = vsel %vm806_vm9, nan, %v816_v21  ;;  %v1039_v1 = vsel %vm806_vm9, nan, %v1038_v11  ;;  %v1245_v7 = vsel %vm4997_vm12, 0, %v1243_v20 }
 0x143   : > { %v2062_v59 = vsel %vm2061_vm1, %v2060_v48, 0  ;;  %v824_v3 = vrot.slane %v817_v50, 7  ;;  %v1043_v31 = vcombine.low %v1039_v1, %v1039_v1  ;;  %1049 = vst [vmem:[#allocation2 + $0x38] sm:$0x70] %v1039_v1  ;;  %v821_v47 = vcombine.high %v817_v50, %v817_v50 }
 0x144   : > { %v1239_v4 = vmul.f32 %v1238_v57, %v1236_v62  ;;  %v1669_v5 = vadd.s32 536870912, %v1668_v24  ;;  %v2064_v52 = vand.u32 31, %v2062_v59  ;;  %v1249_v56 = vadd.s32 3, %v1245_v7 }
 0x145   : > { %832 = vst [vmem:[#allocation2 + $0x30] sm:$0xe] %v824_v3  ;;  %1048 = vst [vmem:[#allocation2 + $0x30] sm:$0x70] %v1043_v31  ;;  %v825_v45 = vrot.slane %v821_v47, 7  ;;  %v5039_v13 = vand.u32 3, %v1245_v7  ;;  %vm1248_vm9 = vweird.f32 %v4750_v63  ;;  %v1664_v3 = vadd.s32 %v4991_v9, %v5007_v38 }
 0x146   : > { %v1240_v12 = vxor.u32 2147483648, %v1239_v4  ;;  %v5041_v29 = vshrl.u32 %v1669_v5, 30  ;;  %v2065_v25 = vsub.s32 32, %v2064_v52  ;;  %v2057_v54 = vand.u32 8388607, %v2050_v17 }
 0x147   : > { %833 = vst [vmem:[#allocation2 + $0x38] sm:$0xe] %v825_v45  ;;  %v2067_v43 = vshll.u32 %v3996_v28, %v2064_v52  ;;  %v2070_v0 = vshll.u32 %v3997_v30, %v2064_v52  ;;  %v2073_v23 = vshll.u32 %v3998_v32, %v2064_v52  ;;  %v2076_v42 = vshll.u32 %v3999_v34, %v2064_v52 }
 0x148   : > { %v1241_v18 = vsel %vm1158_vm7, %v1240_v12, %v1239_v4  ;;  %v1671_v46 = vshll.u32 %v5041_v29, 30  ;;  %v2068_v61 = vshrl.u32 %v3997_v30, %v2065_v25  ;;  %v2071_v33 = vshrl.u32 %v3998_v32, %v2065_v25 }
 0x149   : > { %v1244_v26 = vsel %vm4997_vm12, %v4750_v63, %v1241_v18  ;;  %v2074_v35 = vshrl.u32 %v3999_v34, %v2065_v25  ;;  %v2063_v60 = vshrl.u32 %v2062_v59, 5  ;;  %v2077_v6 = vshrl.u32 %v4000_v36, %v2065_v25 }
 0x14a   : > { %3850 = vcosq.f32 %v1244_v26  ;;  %v5058_v15 = vsub.s32 %v1668_v24, %v1671_v46  ;;  %v5061_v49 = vand.u32 3, %v1249_v56  ;;  %v2058_v37 = vor.u32 8388608, %v2057_v54 }
 0x14b   : > { %3852 = vsinq.f32 %v1244_v26  ;;  %v2079_v2 = vshll.u32 %v4000_v36, %v2064_v52  ;;  %v2066_v27 = vshrl.u32 %v3996_v28, %v2065_v25  ;;  %v2069_v16 = vor.u32 %v2068_v61, %v2067_v43 }
 0x14c   : > { %v1674_v22 = vsub.s32 0, %v5058_v15  ;;  %v5067_v58 = vmul.f32 32.0, %v4208_v19  ;;  %v2072_v20 = vor.u32 %v2071_v33, %v2070_v0  ;;  %v2075_v48 = vor.u32 %v2074_v35, %v2073_v23 }
 0x14d   : > { %v2078_v51 = vor.u32 %v2077_v6, %v2076_v42  ;;  %v2080_v39 = vshrl.u32 %v4001_v44, %v2065_v25  ;;  %vm1481_vm10 = vcmp.eq.s32.totalorder %v5039_v13, 2  ;;  %vm2082_vm2 = vcmp.lt.s32.totalorder %v2063_v60, 1 }
 0x14e   : > { %v3593_v53 = vmin.u32 %v1674_v22, %v5058_v15  ;;  %vm1478_vm3 = vcmp.eq.s32.totalorder %v5039_v13, 0  ;;  %vm2084_vm4 = vcmp.lt.s32.totalorder %v2063_v60, 3  ;;  %vm2085_vm5 = vcmp.lt.s32.totalorder %v2063_v60, 4 }
 0x14f   : > { %v2081_v57 = vor.u32 %v2080_v39, %v2079_v2  ;;  %v5073_v14 = vshll.u32 %v2058_v37, 8  ;;  %vm1251_vm6 = vcmp.lt.s32.totalorder %v5061_v49, 2  ;;  %vm1477_vm7 = vcmp.lt.s32.totalorder %v5039_v13, 2 }
 0x150   : > { %v1676_v19 = vclz %v3593_v53  ;;  %vm2083_vm8 = vcmp.lt.s32.totalorder %v2063_v60, 2  ;;  %v2086_v8 = vsel %vm2082_vm2, %v2066_v27, %v2069_v16  ;;  %v2505_v41 = vand.u32 2139095040, %v5067_v58 }
 0x151   : > { %v2087_v21 = vsel %vm2085_vm5, %v2075_v48, 2102212464  ;;  %v2090_v11 = vsel %vm2082_vm2, %v2069_v16, %v2072_v20  ;;  %v2091_v62 = vsel %vm2085_vm5, %v2078_v51, 920167782  ;;  %v2094_v24 = vsel %vm2082_vm2, %v2072_v20, %v2075_v48 }
 0x152   : > { %v3594_v50 = vadd.s32 4294967294, %v1676_v19  ;;  %v2088_v1 = vsel %vm2084_vm4, %v2072_v20, %v2087_v21  ;;  %v2092_v7 = vsel %vm2084_vm4, %v2075_v48, %v2091_v62  ;;  %v2095_v59 = vsel %vm2085_vm5, %v2081_v57, 1326507024 }
 0x153   : > { %v2089_v31 = vsel %vm2083_vm8, %v2086_v8, %v2088_v1  ;;  %v2093_v4 = vsel %vm2083_vm8, %v2090_v11, %v2092_v7  ;;  %v2096_v47 = vsel %vm2084_vm4, %v2078_v51, %v2095_v59  ;;  %v2506_v9 = vshrl.u32 %v2505_v41, 23 }
 0x154   : > { %vm3595_vm11 = vcmp.lt.s32.totalorder %v3594_v50, 0  ;;  %v2097_v5 = vsel %vm2083_vm8, %v2094_v24, %v2096_v47  ;;  %v5094_v52 = vmul.u32.u64.low %v5073_v14, %v2093_v4  ;;  %v5095_v12 = vmul.u32.u64.high %v5073_v14, %v2093_v4, %v5094_v52 }
 0x155   : > { %v1679_v45 = vsel %vm3595_vm11, 0, %v3594_v50  ;;  %v5099_v56 = vmul.u32.u64.low %v5073_v14, %v2097_v5  ;;  %v5100_v25 = vmul.u32.u64.high %v5073_v14, %v2097_v5, %v5099_v56  ;;  %vm1255_vm12 = vcmp.eq.s32.totalorder %v5061_v49, 2 }
 0x156   : > { %v1680_v18 = vsub.s32 32, %v1679_v45  ;;  %v1681_v54 = vshll.u32 %v5058_v15, %v1679_v45  ;;  %v1684_v43 = vsub.s32 4294967266, %v1679_v45  ;;  %vm1252_vm13 = vcmp.eq.s32.totalorder %v5061_v49, 0 }
 0x157   : > { %v3851_v38 = vpop.eup %3850  ;;  %v1694_v46 = vsub.s32 4, %v5041_v29  ;;  %v2105_v23 = vmul.u32 %v5073_v14, %v2089_v31  ;;  %v2108_v35 = vadd.s32 1, %v5095_v12  ;;  %vm2107_vm14 = vc.u32 %v5100_v25, %v5094_v52 }
 0x158   : > { %v3853_v0 = vpop.eup %3852  ;;  %v1256_v26 = vxor.u32 2147483648, %v3851_v38  ;;  %v1682_v61 = vshrl.u32 %v1664_v3, %v1680_v18  ;;  %v1685_v33 = vadd.s32 127, %v1684_v43  ;;  %v3624_v15 = vadd.s32 4294967169, %v2506_v9 }
 0x159   : > { %v1253_v42 = vxor.u32 2147483648, %v3853_v0  ;;  %vm1610_vm15 = vcmp.lt.s32.totalorder %v4829_v55, 0  ;;  %v2109_v48 = vsel %vm2107_vm14, %v2108_v35, %v5095_v12  ;;  %vm5129_vm0 = vcmp.le.f32.partialorder %v1608_v10, 0.7853982 }
 0x15a   : > { %v1257_v60 = vsel %vm1255_vm12, %v1256_v26, %v3853_v0  ;;  %v1483_v6 = vsel %vm1481_vm10, %v1256_v26, %v3853_v0  ;;  %v1683_v22 = vor.u32 %v1682_v61, %v1681_v54  ;;  %v1686_v27 = vshll.u32 %v1685_v33, 23 }
 0x15b   : > { %v1254_v37 = vsel %vm1252_vm13, %v3851_v38, %v1253_v42  ;;  %v1480_v2 = vsel %vm1478_vm3, %v3851_v38, %v1253_v42  ;;  %v1695_v13 = vsel %vm1610_vm15, %v1694_v46, %v5041_v29  ;;  %v2110_v21 = vadd.s32 %v2109_v48, %v2105_v23 }
 0x15c   : > { %v1258_v16 = vsel %vm1251_vm6, %v1254_v37, %v1257_v60  ;;  %v1484_v20 = vsel %vm1477_vm7, %v1480_v2, %v1483_v6  ;;  %v1687_v53 = vor.u32 4788187, %v1686_v27  ;;  %v1690_v57 = vcvt.s32.f32 %v1683_v22 }
 0x15d   : > { %v1259_v51 = vsel %vm1248_vm9, nan, %v1258_v16  ;;  %v1485_v39 = vsel %vm1248_vm9, nan, %v1484_v20  ;;  %v2512_v11 = vadd.s32 1, %v3624_v15  ;;  %v2111_v1 = vadd.s32 536870912, %v2110_v21 }
 0x15e   : > { %v1266_v14 = vrot.slane %v1259_v51, 1  ;;  %v1263_v19 = vcombine.high %v1259_v51, %v1259_v51  ;;  %v1492_v8 = vrot.slane %v1485_v39, 6  ;;  %v1489_v49 = vcombine.high %v1485_v39, %v1485_v39 }
 0x15f   : > { %v1688_v41 = vand.u32 2147483647, %v1687_v53  ;;  %vm2513_vm1 = vcmp.gt.s32.totalorder %v2512_v11, 0  ;;  %v1697_v7 = vsel %vm5129_vm0, 0, %v1695_v13  ;;  %v5135_v3 = vshrl.u32 %v2111_v1, 30 }
 0x160   : > { %1274 = vst [vmem:[#allocation2 + $0x50] ss:$-28 sps:$4 sm:$0x83] %v1266_v14   ;;  %v1267_v62 = vrot.slane %v1263_v19, 1  ;;  %1500 = vst [vmem:[#allocation2 + $0x50] sm:$0x1c] %v1492_v8  ;;  %v2106_v20 = vadd.s32 %v5094_v52, %v5100_v25  ;;  %vm1700_vm7 = vweird.f32 %v4829_v55 }
 0x161   : > { %v1493_v24 = vrot.slane %v1489_v49, 6  ;;  %v1691_v50 = vmul.f32 %v1690_v57, %v1688_v41  ;;  %v2514_v29 = vsel %vm2513_vm1, %v2512_v11, 0  ;;  %v2502_v4 = vand.u32 2147483647, %v5067_v58 }
 0x162   : > { %1275 = vst [vmem:[#allocation2 + $0x58] ss:$-28 sps:$4 sm:$0x83] %v1267_v62   ;;  %v2516_v31 = vand.u32 31, %v2514_v29  ;;  %v1701_v47 = vadd.s32 3, %v1697_v7  ;;  %v2113_v5 = vshll.u32 %v5135_v3, 30 }
 0x163   : > { %1501 = vst [vmem:[#allocation2 + $0x58] sm:$0x1c] %v1493_v24  ;;  %v1692_v59 = vxor.u32 2147483648, %v1691_v50  ;;  %v5144_v56 = vand.u32 3, %v1697_v7  ;;  %v2509_v43 = vand.u32 8388607, %v2502_v4 }
 0x164   : > { %v2517_v12 = vsub.s32 32, %v2516_v31  ;;  %v5146_v38 = vsub.s32 %v2110_v21, %v2113_v5  ;;  %v2519_v18 = vshll.u32 %v3996_v28, %v2516_v31  ;;  %v2522_v54 = vshll.u32 %v3997_v30, %v2516_v31 }
 0x165   : > { %v1693_v10 = vsel %vm1610_vm15, %v1692_v59, %v1691_v50  ;;  %v5154_v23 = vand.u32 3, %v1701_v47  ;;  %v2525_v61 = vshll.u32 %v3998_v32, %v2516_v31  ;;  %v2515_v35 = vshrl.u32 %v2514_v29, 5 }
 0x166   : > { %v1696_v45 = vsel %vm5129_vm0, %v4829_v55, %v1693_v10  ;;  %v2520_v0 = vshrl.u32 %v3997_v30, %v2517_v12  ;;  %v2523_v26 = vshrl.u32 %v3998_v32, %v2517_v12  ;;  %v2116_v42 = vsub.s32 0, %v5146_v38 }
 0x167   : > { %v2946_v9 = vld [vmem:[#allocation2 + $0x30] sm:$0xff]  ;;  %3854 = vcosq.f32 %v1696_v45  ;;  %v2526_v33 = vshrl.u32 %v3999_v34, %v2517_v12  ;;  %v2528_v60 = vshll.u32 %v3999_v34, %v2516_v31  ;;  %v2529_v6 = vshrl.u32 %v4000_v36, %v2517_v12 }
 0x168   : > { %2951 = vxpose.xlu0.b32.cont [2/5] (short) %v2946_v9, 128  ;;  %3856 = vsinq.f32 %v1696_v45  ;;  %v3609_v15 = vmin.u32 %v2116_v42, %v5146_v38  ;;  %v2521_v30 = vor.u32 %v2520_v0, %v2519_v18  ;;  %v2524_v37 = vor.u32 %v2523_v26, %v2522_v54 }
 0x169   : > { %v2999_v46 = vld [vmem:[#allocation2 + $0x38] sm:$0xff]  ;;  %vm1929_vm10 = vcmp.eq.s32.totalorder %v5144_v56, 2  ;;  %v2510_v2 = vor.u32 8388608, %v2509_v43  ;;  %v2530_v22 = vor.u32 %v2529_v6, %v2528_v60  ;;  %v2531_v27 = vshll.u32 %v4000_v36, %v2516_v31 }
 0x16a   : > { %3004 = vxpose.xlu1.b32.cont [2/5] (short) %v2999_v46, 128  ;;  %vm1704_vm2 = vcmp.eq.s32.totalorder %v5154_v23, 0  ;;  %vm1926_vm3 = vcmp.eq.s32.totalorder %v5144_v56, 0  ;;  %v2118_v32 = vclz %v3609_v15  ;;  %v2518_v16 = vshrl.u32 %v3996_v28, %v2517_v12 }
 0x16b   : > { %v2527_v34 = vor.u32 %v2526_v33, %v2525_v61  ;;  %vm1925_vm4 = vcmp.lt.s32.totalorder %v5144_v56, 2  ;;  %v2532_v48 = vshrl.u32 %v4001_v44, %v2517_v12  ;;  %vm2534_vm5 = vcmp.lt.s32.totalorder %v2515_v35, 1 }
 0x16c   : > { %vm2536_vm6 = vcmp.lt.s32.totalorder %v2515_v35, 3  ;;  %v3610_v36 = vadd.s32 4294967294, %v2118_v32  ;;  %vm2535_vm8 = vcmp.lt.s32.totalorder %v2515_v35, 2  ;;  %vm2537_vm9 = vcmp.lt.s32.totalorder %v2515_v35, 4 }
 0x16d   : > { %v2542_v51 = vsel %vm2534_vm5, %v2521_v30, %v2524_v37  ;;  %v2533_v39 = vor.u32 %v2532_v48, %v2531_v27  ;;  %v2539_v53 = vsel %vm2537_vm9, %v2527_v34, 2102212464  ;;  %v2543_v57 = vsel %vm2537_vm9, %v2530_v22, 920167782 }
 0x16e   : > { %v2550_v28 = vshll.u32 %v2510_v2, 8  ;;  %vm3611_vm11 = vcmp.lt.s32.totalorder %v3610_v36, 0  ;;  %v2538_v14 = vsel %vm2534_vm5, %v2518_v16, %v2521_v30  ;;  %v2544_v19 = vsel %vm2536_vm6, %v2527_v34, %v2543_v57 }
 0x16f   : > { %v2546_v8 = vsel %vm2534_vm5, %v2524_v37, %v2527_v34  ;;  %v2121_v52 = vsel %vm3611_vm11, 0, %v3610_v36  ;;  %v2540_v44 = vsel %vm2536_vm6, %v2524_v37, %v2539_v53  ;;  %v2545_v25 = vsel %vm2535_vm8, %v2542_v51, %v2544_v19 }
 0x170   : > { %v2547_v49 = vsel %vm2537_vm9, %v2533_v39, 1326507024  ;;  %v2122_v41 = vsub.s32 32, %v2121_v52  ;;  %v2123_v13 = vshll.u32 %v5146_v38, %v2121_v52  ;;  %v2126_v21 = vsub.s32 4294967266, %v2121_v52 }
 0x171   : > { %v2548_v11 = vsel %vm2536_vm6, %v2530_v22, %v2547_v49  ;;  %vm1707_vm12 = vcmp.eq.s32.totalorder %v5154_v23, 2  ;;  %v5179_v63 = vmul.u32.u64.low %v2550_v28, %v2545_v25  ;;  %v5180_v50 = vmul.u32.u64.high %v2550_v28, %v2545_v25, %v5179_v63 }
 0x172   : > { %v2549_v24 = vsel %vm2535_vm8, %v2546_v8, %v2548_v11  ;;  %v2124_v29 = vshrl.u32 %v2106_v20, %v2122_v41  ;;  %v2127_v59 = vadd.s32 127, %v2126_v21  ;;  %v2541_v31 = vsel %vm2535_vm8, %v2538_v14, %v2540_v44 }
 0x173   : > { %vm1703_vm13 = vcmp.lt.s32.totalorder %v5154_v23, 2  ;;  %v5185_v47 = vmul.u32.u64.low %v2550_v28, %v2549_v24  ;;  %v5186_v5 = vmul.u32.u64.high %v2550_v28, %v2549_v24, %v5185_v47  ;;  %v2557_v43 = vmul.u32 %v2550_v28, %v2541_v31 }
 0x174   : > { %v3855_v62 = vpop.eup %3854  ;;  %v2125_v9 = vor.u32 %v2124_v29, %v2123_v13  ;;  %v2128_v38 = vshll.u32 %v2127_v59, 23  ;;  %v2560_v0 = vadd.s32 1, %v5180_v50  ;;  %vm2875_vm15 = vcmask 318464  }
 0x175   : > { %v3857_v1 = vpop.eup %3856  ;;  %v1708_v7 = vxor.u32 2147483648, %v3855_v62  ;;  %vm2559_vm14 = vc.u32 %v5186_v5, %v5179_v63  ;;  %vm2052_vm0 = vcmp.lt.s32.totalorder %v4950_v40, 0  ;;  %v2136_v55 = vsub.s32 4, %v5135_v3 }
 0x176   : > { %v1705_v10 = vxor.u32 2147483648, %v3857_v1  ;;  %v2129_v42 = vor.u32 4788187, %v2128_v38  ;;  %v2132_v61 = vcvt.s32.f32 %v2125_v9  ;;  %v2561_v56 = vsel %vm2559_vm14, %v2560_v0, %v5180_v50 }
 0x177   : > { %v1709_v12 = vsel %vm1707_vm12, %v1708_v7, %v3857_v1  ;;  %v1931_v45 = vsel %vm1929_vm10, %v1708_v7, %v3857_v1  ;;  %v2562_v2 = vadd.s32 %v2561_v56, %v2557_v43  ;;  %vm5208_vm1 = vcmp.le.f32.partialorder %v2050_v17, 0.7853982 }
 0x178   : > { %v1706_v18 = vsel %vm1704_vm2, %v3855_v62, %v1705_v10  ;;  %v1928_v54 = vsel %vm1926_vm3, %v3855_v62, %v1705_v10  ;;  %v2130_v6 = vand.u32 2147483647, %v2129_v42  ;;  %v2137_v36 = vsel %vm2052_vm0, %v2136_v55, %v5135_v3 }
 0x179   : > { %v1710_v26 = vsel %vm1703_vm13, %v1706_v18, %v1709_v12  ;;  %v1932_v46 = vsel %vm1925_vm4, %v1928_v54, %v1931_v45  ;;  %v2563_v16 = vadd.s32 536870912, %v2562_v2  ;;  %v2139_v3 = vsel %vm5208_vm1, 0, %v2137_v36 }
 0x17a   : > { %v1711_v33 = vsel %vm1700_vm7, nan, %v1710_v26  ;;  %v1933_v35 = vsel %vm1700_vm7, nan, %v1932_v46  ;;  %v2133_v37 = vmul.f32 %v2132_v61, %v2130_v6  ;;  %v2143_v52 = vadd.s32 3, %v2139_v3 }
 0x17b   : > { %v1718_v23 = vrot.slane %v1711_v33, 3  ;;  %v1715_v60 = vcombine.high %v1711_v33, %v1711_v33  ;;  %1942 = vst [vmem:[#allocation2 + $0x70] sm:$0x7] %v1933_v35  ;;  %v1937_v15 = vcombine.high %v1933_v35, %v1933_v35  ;;  %v5214_v48 = vshrl.u32 %v2563_v16, 30 }
 0x17c   : > { %v2134_v32 = vxor.u32 2147483648, %v2133_v37  ;;  %v2366_v41 = vand.u32 3, %v2139_v3  ;;  %v2144_v21 = vand.u32 3, %v2143_v52  ;;  %v2558_v50 = vadd.s32 %v5179_v63, %v5186_v5 }
 0x17d   : > { %1726 = vst [vmem:[#allocation2 + $0x50] sm:$0xe0] %v1718_v23  ;;  %v1719_v30 = vrot.slane %v1715_v60, 3  ;;  %1943 = vst [vmem:[#allocation2 + $0x78] sm:$0x7] %v1937_v15  ;;  %v2859_v22 = vpop.trf.xlu0  ;;  %v2565_v39 = vshll.u32 %v5214_v48, 30  ;;  %vm2142_vm6 = vweird.f32 %v4950_v40 }
 0x17e   : > { %2876 = vst.msk [vmem:[%s4107_s22] sm:$0xff] %vm2875_vm15, %v2859_v22  ;;  %v2135_v20 = vsel %vm2052_vm0, %v2134_v32, %v2133_v37  ;;  %vm2368_vm10 = vcmp.eq.s32.totalorder %v2366_v41, 0  ;;  %vm2146_vm3 = vcmp.eq.s32.totalorder %v2144_v21, 0  ;;  %vm2149_vm4 = vcmp.eq.s32.totalorder %v2144_v21, 2 }
 0x17f   : > { %1727 = vst [vmem:[#allocation2 + $0x58] sm:$0xe0] %v1719_v30  ;;  %v2913_v34 = vpop.trf.xlu1  ;;  %v2138_v17 = vsel %vm5208_vm1, %v4950_v40, %v2135_v20  ;;  %v2566_v28 = vsub.s32 %v2562_v2, %v2565_v39  ;;  %vm2371_vm5 = vcmp.eq.s32.totalorder %v2366_v41, 2  ;;  %vm2145_vm7 = vcmp.lt.s32.totalorder %v2144_v21, 2 }
 0x180   : > { %2929 = vst.msk [vmem:[%s4107_s22 + $0x80] sm:$0xff] %vm2875_vm15, %v2913_v34  ;;  %3858 = vcosq.f32 %v2138_v17  ;;  %vm2367_vm8 = vcmp.lt.s32.totalorder %v2366_v41, 2  ;;  %vm2504_vm9 = vcmp.lt.s32.totalorder %v5067_v58, 0  ;;  %v2588_v34 = vsub.s32 4, %v5214_v48 }
 0x181   : > { %v2860_v51 = vpop.trf.xlu0  ;;  %3860 = vsinq.f32 %v2138_v17  ;;  %v2568_v8 = vsub.s32 0, %v2566_v28  ;;  %vm5266_vm11 = vcmp.le.f32.partialorder %v2502_v4, 0.7853982 }
 0x182   : > { %2877 = vst.msk [vmem:[%s4107_s22 + $0x8] sm:$0xff] %vm2875_vm15, %v2860_v51 }
 0x183   : > { %v2914_v57 = vpop.trf.xlu1  ;;  %v3625_v25 = vmin.u32 %v2568_v8, %v2566_v28 }
 0x184   : > { %v2947_v53 = vld [vmem:[#allocation2 + $0x50] sm:$0xff]  ;;  %2930 = vst.msk [vmem:[%s4107_s22 + $0x88] sm:$0xff] %vm2875_vm15, %v2914_v57  ;;  %v2589_v57 = vsel %vm2504_vm9, %v2588_v34, %v5214_v48 }
 0x185   : > { %2952 = vxpose.xlu0.b32.cont [3/5] (short) %v2947_v53, 128  ;;  %v2861_v19 = vpop.trf.xlu0  ;;  %v2570_v13 = vclz %v3625_v25 }
 0x186   : > { %v3000_v14 = vld [vmem:[#allocation2 + $0x58] sm:$0xff]  ;;  %2878 = vst.msk [vmem:[%s4107_s22 + $0x10] sm:$0xff] %vm2875_vm15, %v2861_v19 }
 0x187   : > { %3005 = vxpose.xlu1.b32.cont [3/5] (short) %v3000_v14, 128  ;;  %v2915_v44 = vpop.trf.xlu1  ;;  %v3626_v62 = vadd.s32 4294967294, %v2570_v13  ;;  %v2591_v14 = vsel %vm5266_vm11, 0, %v2589_v57 }
 0x188   : > { %2931 = vst.msk [vmem:[%s4107_s22 + $0x90] sm:$0xff] %vm2875_vm15, %v2915_v44  ;;  %v2595_v8 = vadd.s32 3, %v2591_v14 }
 0x189   : > { %v2862_v49 = vpop.trf.xlu0  ;;  %vm3627_vm2 = vcmp.lt.s32.totalorder %v3626_v62, 0 }
 0x18a   : > { %2879 = vst.msk [vmem:[%s4107_s22 + $0x18] sm:$0xff] %vm2875_vm15, %v2862_v49  ;;  %v2573_v7 = vsel %vm3627_vm2, 0, %v3626_v62  ;;  %v2596_v25 = vand.u32 3, %v2595_v8  ;;  %v2818_v49 = vand.u32 3, %v2591_v14  ;;  %vm2594_vm2 = vweird.f32 %v5067_v58 }
 0x18b   : > { %v2916_v11 = vpop.trf.xlu1  ;;  %v2574_v10 = vsub.s32 32, %v2573_v7  ;;  %v2575_v47 = vshll.u32 %v2566_v28, %v2573_v7  ;;  %v2578_v12 = vsub.s32 4294967266, %v2573_v7 }
 0x18c   : > { %2932 = vst.msk [vmem:[%s4107_s22 + $0x98] sm:$0xff] %vm2875_vm15, %v2916_v11  ;;  %vm2601_vm12 = vcmp.eq.s32.totalorder %v2596_v25, 2  ;;  %vm2823_vm13 = vcmp.eq.s32.totalorder %v2818_v49, 2  ;;  %vm2598_vm14 = vcmp.eq.s32.totalorder %v2596_v25, 0  ;;  %vm2820_vm0 = vcmp.eq.s32.totalorder %v2818_v49, 0 }
 0x18d   : > { %v2863_v24 = vpop.trf.xlu0  ;;  %v3859_v1 = vpop.eup %3858  ;;  %v2576_v38 = vshrl.u32 %v2558_v50, %v2574_v10  ;;  %v2579_v18 = vadd.s32 127, %v2578_v12  ;;  %vm2597_vm1 = vcmp.lt.s32.totalorder %v2596_v25, 2 }
 0x18e   : > { %2880 = vst.msk [vmem:[%s4107_s22 + $0x20] sm:$0xff] %vm2875_vm15, %v2863_v24  ;;  %v3861_v59 = vpop.eup %3860  ;;  %v2150_v31 = vxor.u32 2147483648, %v3859_v1 }
 0x18f   : > { %v2917_v29 = vpop.trf.xlu1  ;;  %v2147_v63 = vxor.u32 2147483648, %v3861_v59  ;;  %v2577_v42 = vor.u32 %v2576_v38, %v2575_v47  ;;  %v2580_v61 = vshll.u32 %v2579_v18, 23 }
 0x190   : > { %2933 = vst.msk [vmem:[%s4107_s22 + $0xa0] sm:$0xff] %vm2875_vm15, %v2917_v29  ;;  %v2151_v45 = vsel %vm2149_vm4, %v2150_v31, %v3861_v59  ;;  %v2373_v9 = vsel %vm2371_vm5, %v2150_v31, %v3861_v59 }
 0x191   : > { %v2864_v5 = vpop.trf.xlu0  ;;  %v2148_v54 = vsel %vm2146_vm3, %v3859_v1, %v2147_v63  ;;  %v2370_v43 = vsel %vm2368_vm10, %v3859_v1, %v2147_v63  ;;  %v2581_v30 = vor.u32 4788187, %v2580_v61  ;;  %v2584_v37 = vcvt.s32.f32 %v2577_v42 }
 0x192   : > { %2881 = vst.msk [vmem:[%s4107_s22 + $0x28] sm:$0xff] %vm2875_vm15, %v2864_v5  ;;  %v2152_v26 = vsel %vm2145_vm7, %v2148_v54, %v2151_v45  ;;  %v2374_v46 = vsel %vm2367_vm8, %v2370_v43, %v2373_v9  ;;  %vm2819_vm10 = vcmp.lt.s32.totalorder %v2818_v49, 2 }
 0x193   : > { %v2918_v0 = vpop.trf.xlu1  ;;  %v2153_v33 = vsel %vm2142_vm6, nan, %v2152_v26  ;;  %v2375_v35 = vsel %vm2142_vm6, nan, %v2374_v46  ;;  %v2582_v40 = vand.u32 2147483647, %v2581_v30 }
 0x194   : > { %2934 = vst.msk [vmem:[%s4107_s22 + $0xa8] sm:$0xff] %vm2875_vm15, %v2918_v0  ;;  %v2160_v60 = vrot.slane %v2153_v33, 5  ;;  %v2382_v6 = vrot.slane %v2375_v35, 2  ;;  %v2157_v15 = vcombine.high %v2153_v33, %v2153_v33  ;;  %v2379_v56 = vcombine.high %v2375_v35, %v2375_v35 }
 0x195   : > { %v2865_v23 = vpop.trf.xlu0  ;;  %v2585_v32 = vmul.f32 %v2584_v37, %v2582_v40 }
 0x196   : > { %2882 = vst.msk [vmem:[%s4107_s22 + $0x30] sm:$0xff] %vm2875_vm15, %v2865_v23  ;;  %2168 = vst [vmem:[#allocation2 + $0x70] sm:$0x38] %v2160_v60  ;;  %v2161_v55 = vrot.slane %v2157_v15, 5  ;;  %v2383_v22 = vrot.slane %v2379_v56, 2 }
 0x197   : > { %v2919_v2 = vpop.trf.xlu1  ;;  %2390 = vst [vmem:[#allocation2 + $0x90] ss:$-28 sps:$4 sm:$0xc1] %v2382_v6   ;;  %v2586_v36 = vxor.u32 2147483648, %v2585_v32 }
 0x198   : > { %2935 = vst.msk [vmem:[%s4107_s22 + $0xb0] sm:$0xff] %vm2875_vm15, %v2919_v2  ;;  %2169 = vst [vmem:[#allocation2 + $0x78] sm:$0x38] %v2161_v55 }
 0x199   : > { %v2866_v27 = vpop.trf.xlu0  ;;  %2391 = vst [vmem:[#allocation2 + $0x98] ss:$-28 sps:$4 sm:$0xc1] %v2383_v22   ;;  %v2587_v39 = vsel %vm2504_vm9, %v2586_v36, %v2585_v32 }
 0x19a   : > { %2883 = vst.msk [vmem:[%s4107_s22 + $0x38] sm:$0xff] %vm2875_vm15, %v2866_v27  ;;  %v2590_v4 = vsel %vm5266_vm11, %v5067_v58, %v2587_v39 }
 0x19b   : > { %v2920_v16 = vpop.trf.xlu1  ;;  %3862 = vcosq.f32 %v2590_v4 }
 0x19c   : > { %2936 = vst.msk [vmem:[%s4107_s22 + $0xb8] sm:$0xff] %vm2875_vm15, %v2920_v16  ;;  %3864 = vsinq.f32 %v2590_v4 }
 0x19d   : > { %v2867_v17 = vpop.trf.xlu0 }
 0x19e   : > { %2884 = vst.msk [vmem:[%s4107_s22 + $0x40] sm:$0xff] %vm2875_vm15, %v2867_v17  ;;  %v2948_v51 = vld [vmem:[#allocation2 + $0x70] sm:$0xff] }
 0x19f   : > { %v2921_v53 = vpop.trf.xlu1  ;;  %2953 = vxpose.xlu0.b32.cont [4/5] (short) %v2948_v51, 128 }
 0x1a0   : > { %2937 = vst.msk [vmem:[%s4107_s22 + $0xc0] sm:$0xff] %vm2875_vm15, %v2921_v53  ;;  %v3001_v3 = vld [vmem:[#allocation2 + $0x78] sm:$0xff] }
 0x1a1   : > { %v2868_v28 = vpop.trf.xlu0  ;;  %3006 = vxpose.xlu1.b32.cont [4/5] (short) %v3001_v3, 128 }
 0x1a2   : > { %2885 = vst.msk [vmem:[%s4107_s22 + $0x48] sm:$0xff] %vm2875_vm15, %v2868_v28 }
 0x1a3   : > { %v2922_v48 = vpop.trf.xlu1 }
 0x1a4   : > { %2938 = vst.msk [vmem:[%s4107_s22 + $0xc8] sm:$0xff] %vm2875_vm15, %v2922_v48 }
 0x1a5   : > { %v2869_v19 = vpop.trf.xlu0 }
 0x1a6   : > { %2886 = vst.msk [vmem:[%s4107_s22 + $0x50] sm:$0xff] %vm2875_vm15, %v2869_v19 }
 0x1a7   : > { %v2923_v52 = vpop.trf.xlu1 }
 0x1a8   : > { %2939 = vst.msk [vmem:[%s4107_s22 + $0xd0] sm:$0xff] %vm2875_vm15, %v2923_v52  ;;  %v3863_v21 = vpop.eup %3862 }
 0x1a9   : > { %v2870_v44 = vpop.trf.xlu0  ;;  %v3865_v11 = vpop.eup %3864  ;;  %v2602_v62 = vxor.u32 2147483648, %v3863_v21 }
 0x1aa   : > { %2887 = vst.msk [vmem:[%s4107_s22 + $0x58] sm:$0xff] %vm2875_vm15, %v2870_v44  ;;  %v2599_v50 = vxor.u32 2147483648, %v3865_v11 }
 0x1ab   : > { %v2924_v41 = vpop.trf.xlu1  ;;  %v2603_v1 = vsel %vm2601_vm12, %v2602_v62, %v3865_v11  ;;  %v2825_v7 = vsel %vm2823_vm13, %v2602_v62, %v3865_v11 }
 0x1ac   : > { %2940 = vst.msk [vmem:[%s4107_s22 + $0xd8] sm:$0xff] %vm2875_vm15, %v2924_v41  ;;  %v2600_v59 = vsel %vm2598_vm14, %v3863_v21, %v2599_v50  ;;  %v2822_v31 = vsel %vm2820_vm0, %v3863_v21, %v2599_v50 }
 0x1ad   : > { %v2871_v13 = vpop.trf.xlu0  ;;  %v2604_v10 = vsel %vm2597_vm1, %v2600_v59, %v2603_v1  ;;  %v2826_v47 = vsel %vm2819_vm10, %v2822_v31, %v2825_v7 }
 0x1ae   : > { %2888 = vst.msk [vmem:[%s4107_s22 + $0x60] sm:$0xff] %vm2875_vm15, %v2871_v13  ;;  %v2605_v63 = vsel %vm2594_vm2, nan, %v2604_v10  ;;  %v2827_v5 = vsel %vm2594_vm2, nan, %v2826_v47 }
 0x1af   : > { %v2925_v24 = vpop.trf.xlu1  ;;  %v2612_v45 = vrot.slane %v2605_v63, 7  ;;  %v2831_v58 = vcombine.low %v2827_v5, %v2827_v5  ;;  %2837 = vst [vmem:[#allocation2 + $0x98] sm:$0x70] %v2827_v5  ;;  %v2609_v9 = vcombine.high %v2605_v63, %v2605_v63 }
 0x1b0   : > { %2941 = vst.msk [vmem:[%s4107_s22 + $0xe0] sm:$0xff] %vm2875_vm15, %v2925_v24 }
 0x1b1   : > { %v2872_v29 = vpop.trf.xlu0  ;;  %2620 = vst [vmem:[#allocation2 + $0x90] sm:$0xe] %v2612_v45  ;;  %2836 = vst [vmem:[#allocation2 + $0x90] sm:$0x70] %v2831_v58  ;;  %v2613_v18 = vrot.slane %v2609_v9, 7 }
 0x1b2   : > { %2889 = vst.msk [vmem:[%s4107_s22 + $0x68] sm:$0xff] %vm2875_vm15, %v2872_v29 }
 0x1b3   : > { %v2926_v12 = vpop.trf.xlu1  ;;  %2621 = vst [vmem:[#allocation2 + $0x98] sm:$0xe] %v2613_v18 }
 0x1b4   : > { %2942 = vst.msk [vmem:[%s4107_s22 + $0xe8] sm:$0xff] %vm2875_vm15, %v2926_v12 }
 0x1b5   : > { %v2873_v38 = vpop.trf.xlu0 }
 0x1b6   : > { %2890 = vst.msk [vmem:[%s4107_s22 + $0x70] sm:$0xff] %vm2875_vm15, %v2873_v38 }
 0x1b7   : > { %v2927_v54 = vpop.trf.xlu1 }
 0x1b8   : > { %2943 = vst.msk [vmem:[%s4107_s22 + $0xf0] sm:$0xff] %vm2875_vm15, %v2927_v54  ;;  %v2949_v26 = vld [vmem:[#allocation2 + $0x90] sm:$0xff] }
 0x1b9   : > { %v2874_v43 = vpop.trf.xlu0  ;;  %2954 = vxpose.xlu0.b32.end [5/5] (short) %v2949_v26, 128 }
 0x1ba   : > { %2891 = vst.msk [vmem:[%s4107_s22 + $0x78] sm:$0xff] %vm2875_vm15, %v2874_v43  ;;  %v3002_v46 = vld [vmem:[#allocation2 + $0x98] sm:$0xff] }
 0x1bb   : > { %v2928_v0 = vpop.trf.xlu1  ;;  %3007 = vxpose.xlu1.b32.end [5/5] (short) %v3002_v46, 128 }
 0x1bc   : > { %2944 = vst.msk [vmem:[%s4107_s22 + $0xf8] sm:$0xff] %vm2875_vm15, %v2928_v0 }
 0x225   : > { %v2966_v42 = vpop.trf.xlu0 }
 0x226   : > { %2982 = vst.msk [vmem:[%s4107_s22 + $0x100] sm:$0xff] %vm2875_vm15, %v2966_v42 }
 0x227   : > { %v3019_v61 = vpop.trf.xlu1 }
 0x228   : > { %3035 = vst.msk [vmem:[%s4107_s22 + $0x180] sm:$0xff] %vm2875_vm15, %v3019_v61 }
 0x229   : > { %v2967_v33 = vpop.trf.xlu0 }
 0x22a   : > { %2983 = vst.msk [vmem:[%s4107_s22 + $0x108] sm:$0xff] %vm2875_vm15, %v2967_v33 }
 0x22b   : > { %v3020_v35 = vpop.trf.xlu1 }
 0x22c   : > { %3036 = vst.msk [vmem:[%s4107_s22 + $0x188] sm:$0xff] %vm2875_vm15, %v3020_v35 }
 0x22d   : > { %v2968_v23 = vpop.trf.xlu0 }
 0x22e   : > { %2984 = vst.msk [vmem:[%s4107_s22 + $0x110] sm:$0xff] %vm2875_vm15, %v2968_v23 }
 0x22f   : > { %v3021_v60 = vpop.trf.xlu1 }
 0x230   : > { %3037 = vst.msk [vmem:[%s4107_s22 + $0x190] sm:$0xff] %vm2875_vm15, %v3021_v60 }
 0x231   : > { %v2969_v6 = vpop.trf.xlu0 }
 0x232   : > { %2985 = vst.msk [vmem:[%s4107_s22 + $0x118] sm:$0xff] %vm2875_vm15, %v2969_v6 }
 0x233   : > { %v3022_v15 = vpop.trf.xlu1 }
 0x234   : > { %3038 = vst.msk [vmem:[%s4107_s22 + $0x198] sm:$0xff] %vm2875_vm15, %v3022_v15 }
 0x235   : > { %v2970_v56 = vpop.trf.xlu0 }
 0x236   : > { %2986 = vst.msk [vmem:[%s4107_s22 + $0x120] sm:$0xff] %vm2875_vm15, %v2970_v56 }
 0x237   : > { %v3023_v30 = vpop.trf.xlu1 }
 0x238   : > { %3039 = vst.msk [vmem:[%s4107_s22 + $0x1a0] sm:$0xff] %vm2875_vm15, %v3023_v30 }
 0x239   : > { %v2971_v37 = vpop.trf.xlu0 }
 0x23a   : > { %2987 = vst.msk [vmem:[%s4107_s22 + $0x128] sm:$0xff] %vm2875_vm15, %v2971_v37 }
 0x23b   : > { %v3024_v2 = vpop.trf.xlu1 }
 0x23c   : > { %3040 = vst.msk [vmem:[%s4107_s22 + $0x1a8] sm:$0xff] %vm2875_vm15, %v3024_v2 }
 0x23d   : > { %v2972_v55 = vpop.trf.xlu0 }
 0x23e   : > { %2988 = vst.msk [vmem:[%s4107_s22 + $0x130] sm:$0xff] %vm2875_vm15, %v2972_v55 }
 0x23f   : > { %v3025_v22 = vpop.trf.xlu1 }
 0x240   : > { %3041 = vst.msk [vmem:[%s4107_s22 + $0x1b0] sm:$0xff] %vm2875_vm15, %v3025_v22 }
 0x241   : > { %v2973_v40 = vpop.trf.xlu0 }
 0x242   : > { %2989 = vst.msk [vmem:[%s4107_s22 + $0x138] sm:$0xff] %vm2875_vm15, %v2973_v40 }
 0x243   : > { %v3026_v27 = vpop.trf.xlu1 }
 0x244   : > { %3042 = vst.msk [vmem:[%s4107_s22 + $0x1b8] sm:$0xff] %vm2875_vm15, %v3026_v27 }
 0x245   : > { %v2974_v32 = vpop.trf.xlu0 }
 0x246   : > { %2990 = vst.msk [vmem:[%s4107_s22 + $0x140] sm:$0xff] %vm2875_vm15, %v2974_v32 }
 0x247   : > { %v3027_v16 = vpop.trf.xlu1 }
 0x248   : > { %3043 = vst.msk [vmem:[%s4107_s22 + $0x1c0] sm:$0xff] %vm2875_vm15, %v3027_v16 }
 0x249   : > { %v2975_v34 = vpop.trf.xlu0 }
 0x24a   : > { %2991 = vst.msk [vmem:[%s4107_s22 + $0x148] sm:$0xff] %vm2875_vm15, %v2975_v34 }
 0x24b   : > { %v3028_v20 = vpop.trf.xlu1 }
 0x24c   : > { %3044 = vst.msk [vmem:[%s4107_s22 + $0x1c8] sm:$0xff] %vm2875_vm15, %v3028_v20 }
 0x24d   : > { %v2976_v36 = vpop.trf.xlu0 }
 0x24e   : > { %2992 = vst.msk [vmem:[%s4107_s22 + $0x150] sm:$0xff] %vm2875_vm15, %v2976_v36 }
 0x24f   : > { %v3029_v17 = vpop.trf.xlu1 }
 0x250   : > { %3045 = vst.msk [vmem:[%s4107_s22 + $0x1d0] sm:$0xff] %vm2875_vm15, %v3029_v17 }
 0x251   : > { %v2977_v51 = vpop.trf.xlu0 }
 0x252   : > { %2993 = vst.msk [vmem:[%s4107_s22 + $0x158] sm:$0xff] %vm2875_vm15, %v2977_v51 }
 0x253   : > { %v3030_v39 = vpop.trf.xlu1 }
 0x254   : > { %3046 = vst.msk [vmem:[%s4107_s22 + $0x1d8] sm:$0xff] %vm2875_vm15, %v3030_v39 }
 0x255   : > { %v2978_v53 = vpop.trf.xlu0 }
 0x256   : > { %2994 = vst.msk [vmem:[%s4107_s22 + $0x160] sm:$0xff] %vm2875_vm15, %v2978_v53 }
 0x257   : > { %v3031_v57 = vpop.trf.xlu1 }
 0x258   : > { %3047 = vst.msk [vmem:[%s4107_s22 + $0x1e0] sm:$0xff] %vm2875_vm15, %v3031_v57 }
 0x259   : > { %v2979_v4 = vpop.trf.xlu0 }
 0x25a   : > { %2995 = vst.msk [vmem:[%s4107_s22 + $0x168] sm:$0xff] %vm2875_vm15, %v2979_v4 }
 0x25b   : > { %v3032_v3 = vpop.trf.xlu1 }
 0x25c   : > { %3048 = vst.msk [vmem:[%s4107_s22 + $0x1e8] sm:$0xff] %vm2875_vm15, %v3032_v3 }
 0x25d   : > { %v2980_v28 = vpop.trf.xlu0 }
 0x25e   : > { %2996 = vst.msk [vmem:[%s4107_s22 + $0x170] sm:$0xff] %vm2875_vm15, %v2980_v28 }
 0x25f   : > { %v3033_v14 = vpop.trf.xlu1 }
 0x260   : > { %3049 = vst.msk [vmem:[%s4107_s22 + $0x1f0] sm:$0xff] %vm2875_vm15, %v3033_v14  ;;  %3057 = sbr.rel (!%p5614_p10) target bundleno = 677 (0x2a5), region = 36 }
 0x261   : > { %v2981_v48 = vpop.trf.xlu0 }
 0x262   : > { %2997 = vst.msk [vmem:[%s4107_s22 + $0x178] sm:$0xff] %vm2875_vm15, %v2981_v48 }
 0x263   : > { %v3034_v19 = vpop.trf.xlu1 }
 0x264   : > { %3050 = vst.msk [vmem:[%s4107_s22 + $0x1f8] sm:$0xff] %vm2875_vm15, %v3034_v19 }
 0x265   : > { %s5625_s23 = smov (!%p3060_p11, %s3059_s23), 64 }
 0x266   : > { %s3638_s27 = sshll.u32 %s5625_s23, 7 }
 0x267   : > { %p3641_p12 = scmp.eq.s32.totalorder %s3638_s27, 0 }
 0x268   : > { %s5386_s17 = sshrl.u32 (!%p3641_p12), %s5625_s23, 6 }
 0x269   : > { %3068 = sbr.rel (%p3641_p12) target bundleno = 677 (0x2a5), region = 40  ;;  %p3642_p4 = scmp.le.s32.totalorder (!%p3641_p12), %s5386_s17, 0 }
 0x26e   : > { %3483 = sbr.rel (%p3642_p4) target bundleno = 660 (0x294), region = 123  ;;  %s5615_s10 = smov (!%p3642_p4), %s5380_s26 }
 0x26f   : > { %s5616_s28 = smov (!%p3642_p4), %s4107_s22  ;;  %s5395_s29 = smov (!%p3642_p4), 0  }
 0x270   : > { %s5397_s30 = smov (!%p3642_p4), 0  }
 0x273 LB: >> { %v3257_v8 = vld [vmem:[%s3968_s28] sm:$0xff]  ;;  %v3259_v52 = vld [vmem:[%s3968_s28 + $0x8] sm:$0xff]  ;;  %v3261_v44 = vld [vmem:[%s3968_s28 + $0x10] sm:$0xff]  ;;  %s3385_s2 = sadd.s32 1, %s3972_s29  ;;  %s3251_s30 = sadd.s32 1, %s3976_s30   ;;  %s3976_s30 = sphi %s5397_s30, %s3251_s30   ;;  %s3972_s29 = sphi %s5395_s29, %s5619_s29   ;;  %s3968_s28 = sphi %s5616_s28, %s5618_s28   ;;  %s3964_s10 = sphi %s5615_s10, %s5617_s10  }
 0x274   : >> { %3258 = vst [vmem:[%s3964_s10] sm:$0xff] %v3257_v8  ;;  %3260 = vst [vmem:[%s3964_s10 + $0x8] sm:$0xff] %v3259_v52  ;;  %v3263_v25 = vld [vmem:[%s3968_s28 + $0x18] sm:$0xff]  ;;  %v3265_v49 = vld [vmem:[%s3968_s28 + $0x20] sm:$0xff]  ;;  %p3386_p5 = scmp.ge.s32.totalorder %s3385_s2, %s5386_s17  ;;  %p3250_p6 = scmp.ge.s32.totalorder %s3251_s30, %s5386_s17 }
 0x275   : >> { %3262 = vst [vmem:[%s3964_s10 + $0x10] sm:$0xff] %v3261_v44  ;;  %v3267_v41 = vld [vmem:[%s3968_s28 + $0x28] sm:$0xff]  ;;  %3264 = vst [vmem:[%s3964_s10 + $0x18] sm:$0xff] %v3263_v25  ;;  %v3269_v13 = vld [vmem:[%s3968_s28 + $0x30] sm:$0xff] }
 0x276   : >> { %3266 = vst [vmem:[%s3964_s10 + $0x20] sm:$0xff] %v3265_v49  ;;  %3268 = vst [vmem:[%s3964_s10 + $0x28] sm:$0xff] %v3267_v41  ;;  %v3271_v21 = vld [vmem:[%s3968_s28 + $0x38] sm:$0xff]  ;;  %v3273_v11 = vld [vmem:[%s3968_s28 + $0x40] sm:$0xff]  ;;  %s5627_s2 = smov (%p3386_p5, %s3385_s2), 0 }
 0x277   : >> { %3270 = vst [vmem:[%s3964_s10 + $0x30] sm:$0xff] %v3269_v13  ;;  %3272 = vst [vmem:[%s3964_s10 + $0x38] sm:$0xff] %v3271_v21  ;;  %v3275_v62 = vld [vmem:[%s3968_s28 + $0x48] sm:$0xff]  ;;  %v3277_v24 = vld [vmem:[%s3968_s28 + $0x50] sm:$0xff]  ;;  %s3643_s3 = sshll.u32 %s5627_s2, 9  ;;  %s5619_s29 = smov %s5627_s2 }
 0x278   : >> { %3274 = vst [vmem:[%s3964_s10 + $0x40] sm:$0xff] %v3273_v11  ;;  %v3279_v50 = vld [vmem:[%s3968_s28 + $0x58] sm:$0xff]  ;;  %3276 = vst [vmem:[%s3964_s10 + $0x48] sm:$0xff] %v3275_v62  ;;  %v3281_v1 = vld [vmem:[%s3968_s28 + $0x60] sm:$0xff]  ;;  %s5453_s4 = scalar_lea.vmem %s4107_s22, %s3643_s3 [#allocation5]   ;;  %s5456_s5 = scalar_lea.vmem %s5380_s26, %s3643_s3  }
 0x279   : >> { %3278 = vst [vmem:[%s3964_s10 + $0x50] sm:$0xff] %v3277_v24  ;;  %3280 = vst [vmem:[%s3964_s10 + $0x58] sm:$0xff] %v3279_v50  ;;  %v3283_v7 = vld [vmem:[%s3968_s28 + $0x68] sm:$0xff]  ;;  %v3285_v29 = vld [vmem:[%s3968_s28 + $0x70] sm:$0xff] }
 0x27a   : >> { %3282 = vst [vmem:[%s3964_s10 + $0x60] sm:$0xff] %v3281_v1  ;;  %3284 = vst [vmem:[%s3964_s10 + $0x68] sm:$0xff] %v3283_v7  ;;  %v3287_v59 = vld [vmem:[%s3968_s28 + $0x78] sm:$0xff]  ;;  %v3289_v31 = vld [vmem:[%s3968_s28 + $0x80] sm:$0xff] }
 0x27b   : >> { %3286 = vst [vmem:[%s3964_s10 + $0x70] sm:$0xff] %v3285_v29  ;;  %v3291_v10 = vld [vmem:[%s3968_s28 + $0x88] sm:$0xff]  ;;  %3288 = vst [vmem:[%s3964_s10 + $0x78] sm:$0xff] %v3287_v59  ;;  %v3293_v47 = vld [vmem:[%s3968_s28 + $0x90] sm:$0xff] }
 0x27c   : >> { %3290 = vst [vmem:[%s3964_s10 + $0x80] sm:$0xff] %v3289_v31  ;;  %3292 = vst [vmem:[%s3964_s10 + $0x88] sm:$0xff] %v3291_v10  ;;  %v3295_v12 = vld [vmem:[%s3968_s28 + $0x98] sm:$0xff]  ;;  %v3297_v63 = vld [vmem:[%s3968_s28 + $0xa0] sm:$0xff] }
 0x27d   : >> { %3294 = vst [vmem:[%s3964_s10 + $0x90] sm:$0xff] %v3293_v47  ;;  %3296 = vst [vmem:[%s3964_s10 + $0x98] sm:$0xff] %v3295_v12  ;;  %v3299_v5 = vld [vmem:[%s3968_s28 + $0xa8] sm:$0xff]  ;;  %v3301_v45 = vld [vmem:[%s3968_s28 + $0xb0] sm:$0xff] }
 0x27e   : >> { %3298 = vst [vmem:[%s3964_s10 + $0xa0] sm:$0xff] %v3297_v63  ;;  %v3303_v58 = vld [vmem:[%s3968_s28 + $0xb8] sm:$0xff]  ;;  %3300 = vst [vmem:[%s3964_s10 + $0xa8] sm:$0xff] %v3299_v5  ;;  %v3305_v9 = vld [vmem:[%s3968_s28 + $0xc0] sm:$0xff] }
 0x27f   : >> { %3302 = vst [vmem:[%s3964_s10 + $0xb0] sm:$0xff] %v3301_v45  ;;  %3304 = vst [vmem:[%s3964_s10 + $0xb8] sm:$0xff] %v3303_v58  ;;  %v3307_v38 = vld [vmem:[%s3968_s28 + $0xc8] sm:$0xff]  ;;  %v3309_v18 = vld [vmem:[%s3968_s28 + $0xd0] sm:$0xff] }
 0x280   : >> { %3306 = vst [vmem:[%s3964_s10 + $0xc0] sm:$0xff] %v3305_v9  ;;  %3308 = vst [vmem:[%s3964_s10 + $0xc8] sm:$0xff] %v3307_v38  ;;  %v3311_v54 = vld [vmem:[%s3968_s28 + $0xd8] sm:$0xff]  ;;  %v3313_v43 = vld [vmem:[%s3968_s28 + $0xe0] sm:$0xff] }
 0x281   : >> { %3310 = vst [vmem:[%s3964_s10 + $0xd0] sm:$0xff] %v3309_v18  ;;  %v3315_v0 = vld [vmem:[%s3968_s28 + $0xe8] sm:$0xff]  ;;  %3312 = vst [vmem:[%s3964_s10 + $0xd8] sm:$0xff] %v3311_v54  ;;  %v3317_v26 = vld [vmem:[%s3968_s28 + $0xf0] sm:$0xff] }
 0x282   : >> { %3314 = vst [vmem:[%s3964_s10 + $0xe0] sm:$0xff] %v3313_v43  ;;  %3316 = vst [vmem:[%s3964_s10 + $0xe8] sm:$0xff] %v3315_v0  ;;  %v3319_v46 = vld [vmem:[%s3968_s28 + $0xf8] sm:$0xff]  ;;  %v3321_v42 = vld [vmem:[%s3968_s28 + $0x100] sm:$0xff] }
 0x283   : >> { %3318 = vst [vmem:[%s3964_s10 + $0xf0] sm:$0xff] %v3317_v26  ;;  %3320 = vst [vmem:[%s3964_s10 + $0xf8] sm:$0xff] %v3319_v46  ;;  %v3323_v61 = vld [vmem:[%s3968_s28 + $0x108] sm:$0xff]  ;;  %v3325_v33 = vld [vmem:[%s3968_s28 + $0x110] sm:$0xff] }
 0x284   : >> { %3322 = vst [vmem:[%s3964_s10 + $0x100] sm:$0xff] %v3321_v42  ;;  %v3327_v35 = vld [vmem:[%s3968_s28 + $0x118] sm:$0xff]  ;;  %3324 = vst [vmem:[%s3964_s10 + $0x108] sm:$0xff] %v3323_v61  ;;  %v3329_v23 = vld [vmem:[%s3968_s28 + $0x120] sm:$0xff] }
 0x285   : >> { %3326 = vst [vmem:[%s3964_s10 + $0x110] sm:$0xff] %v3325_v33  ;;  %3328 = vst [vmem:[%s3964_s10 + $0x118] sm:$0xff] %v3327_v35  ;;  %v3331_v60 = vld [vmem:[%s3968_s28 + $0x128] sm:$0xff]  ;;  %v3333_v6 = vld [vmem:[%s3968_s28 + $0x130] sm:$0xff] }
 0x286   : >> { %3330 = vst [vmem:[%s3964_s10 + $0x120] sm:$0xff] %v3329_v23  ;;  %3332 = vst [vmem:[%s3964_s10 + $0x128] sm:$0xff] %v3331_v60  ;;  %v3335_v15 = vld [vmem:[%s3968_s28 + $0x138] sm:$0xff]  ;;  %v3337_v56 = vld [vmem:[%s3968_s28 + $0x140] sm:$0xff] }
 0x287   : >> { %3334 = vst [vmem:[%s3964_s10 + $0x130] sm:$0xff] %v3333_v6  ;;  %v3339_v30 = vld [vmem:[%s3968_s28 + $0x148] sm:$0xff]  ;;  %3336 = vst [vmem:[%s3964_s10 + $0x138] sm:$0xff] %v3335_v15  ;;  %v3341_v37 = vld [vmem:[%s3968_s28 + $0x150] sm:$0xff] }
 0x288   : >> { %3338 = vst [vmem:[%s3964_s10 + $0x140] sm:$0xff] %v3337_v56  ;;  %3340 = vst [vmem:[%s3964_s10 + $0x148] sm:$0xff] %v3339_v30  ;;  %v3343_v2 = vld [vmem:[%s3968_s28 + $0x158] sm:$0xff]  ;;  %v3345_v55 = vld [vmem:[%s3968_s28 + $0x160] sm:$0xff] }
 0x289   : >> { %3342 = vst [vmem:[%s3964_s10 + $0x150] sm:$0xff] %v3341_v37  ;;  %3344 = vst [vmem:[%s3964_s10 + $0x158] sm:$0xff] %v3343_v2  ;;  %v3347_v22 = vld [vmem:[%s3968_s28 + $0x168] sm:$0xff]  ;;  %v3349_v40 = vld [vmem:[%s3968_s28 + $0x170] sm:$0xff] }
 0x28a   : >> { %3346 = vst [vmem:[%s3964_s10 + $0x160] sm:$0xff] %v3345_v55  ;;  %v3351_v27 = vld [vmem:[%s3968_s28 + $0x178] sm:$0xff]  ;;  %3348 = vst [vmem:[%s3964_s10 + $0x168] sm:$0xff] %v3347_v22  ;;  %v3353_v32 = vld [vmem:[%s3968_s28 + $0x180] sm:$0xff] }
 0x28b   : >> { %3350 = vst [vmem:[%s3964_s10 + $0x170] sm:$0xff] %v3349_v40  ;;  %3352 = vst [vmem:[%s3964_s10 + $0x178] sm:$0xff] %v3351_v27  ;;  %v3355_v16 = vld [vmem:[%s3968_s28 + $0x188] sm:$0xff]  ;;  %v3357_v34 = vld [vmem:[%s3968_s28 + $0x190] sm:$0xff] }
 0x28c   : >> { %3354 = vst [vmem:[%s3964_s10 + $0x180] sm:$0xff] %v3353_v32  ;;  %3356 = vst [vmem:[%s3964_s10 + $0x188] sm:$0xff] %v3355_v16  ;;  %v3359_v20 = vld [vmem:[%s3968_s28 + $0x198] sm:$0xff]  ;;  %v3361_v36 = vld [vmem:[%s3968_s28 + $0x1a0] sm:$0xff] }
 0x28d   : >> { %3358 = vst [vmem:[%s3964_s10 + $0x190] sm:$0xff] %v3357_v34  ;;  %v3363_v17 = vld [vmem:[%s3968_s28 + $0x1a8] sm:$0xff]  ;;  %3360 = vst [vmem:[%s3964_s10 + $0x198] sm:$0xff] %v3359_v20  ;;  %v3365_v51 = vld [vmem:[%s3968_s28 + $0x1b0] sm:$0xff] }
 0x28e   : >> { %3362 = vst [vmem:[%s3964_s10 + $0x1a0] sm:$0xff] %v3361_v36  ;;  %3364 = vst [vmem:[%s3964_s10 + $0x1a8] sm:$0xff] %v3363_v17  ;;  %v3367_v39 = vld [vmem:[%s3968_s28 + $0x1b8] sm:$0xff]  ;;  %v3369_v53 = vld [vmem:[%s3968_s28 + $0x1c0] sm:$0xff] }
 0x28f   : >> { %3366 = vst [vmem:[%s3964_s10 + $0x1b0] sm:$0xff] %v3365_v51  ;;  %3368 = vst [vmem:[%s3964_s10 + $0x1b8] sm:$0xff] %v3367_v39  ;;  %v3371_v57 = vld [vmem:[%s3968_s28 + $0x1c8] sm:$0xff]  ;;  %v3373_v4 = vld [vmem:[%s3968_s28 + $0x1d0] sm:$0xff]  ;;  %3253 = sbr.rel (!%p3250_p6) target bundleno = 627 (0x273), region = 129 }
 0x290   : >> { %3370 = vst [vmem:[%s3964_s10 + $0x1c0] sm:$0xff] %v3369_v53  ;;  %v3375_v3 = vld [vmem:[%s3968_s28 + $0x1d8] sm:$0xff]  ;;  %3372 = vst [vmem:[%s3964_s10 + $0x1c8] sm:$0xff] %v3371_v57  ;;  %v3377_v28 = vld [vmem:[%s3968_s28 + $0x1e0] sm:$0xff] }
 0x291   : >> { %3374 = vst [vmem:[%s3964_s10 + $0x1d0] sm:$0xff] %v3373_v4  ;;  %3376 = vst [vmem:[%s3964_s10 + $0x1d8] sm:$0xff] %v3375_v3  ;;  %v3379_v14 = vld [vmem:[%s3968_s28 + $0x1e8] sm:$0xff]  ;;  %v3381_v48 = vld [vmem:[%s3968_s28 + $0x1f0] sm:$0xff] }
 0x292   : >> { %3378 = vst [vmem:[%s3964_s10 + $0x1e0] sm:$0xff] %v3377_v28  ;;  %3380 = vst [vmem:[%s3964_s10 + $0x1e8] sm:$0xff] %v3379_v14  ;;  %v3383_v19 = vld [vmem:[%s3968_s28 + $0x1f8] sm:$0xff]  ;;  %s5618_s28 = smov %s5453_s4 }
 0x293   : >> { %3382 = vst [vmem:[%s3964_s10 + $0x1f0] sm:$0xff] %v3381_v48  ;;  %3384 = vst [vmem:[%s3964_s10 + $0x1f8] sm:$0xff] %v3383_v19  ;;  %s5617_s10 = smov %s5456_s5 }
 0x294 PF: > { %s5561_s6 = sand.u32 63, %s5625_s23   ;;  %s3655_s12 = sshll.u32 %s5386_s17, 9 }
 0x295   : > { %s3396_s13 = scalar_lea.vmem %s4107_s22, %s3655_s12 [#allocation5]   ;;  %s3398_s15 = scalar_lea.vmem %s5380_s26, %s3655_s12  }
 0x296   : > { %p3648_p8 = scmp.le.s32.totalorder %s5561_s6, 0 }
 0x297   : > { %s3978_s18 = smov (!%p3648_p8), %s3398_s15   ;;  %s3982_s19 = smov (!%p3648_p8), %s3396_s13  }
 0x298   : > { %3497 = sbr.rel (%p3648_p8) target bundleno = 677 (0x2a5), region = 134  ;;  %s3986_s20 = smov (!%p3648_p8), 0  }
 0x299   : > { %s3990_s21 = smov (!%p3648_p8), 0  }
 0x29d LB: >> { %v3408_v8 = vld [vmem:[%s3984_s19] sm:$0xff]  ;;  %s3410_s9 = sadd.s32 1, %s3988_s20  ;;  %s3402_s21 = sadd.s32 1, %s3992_s21   ;;  %s3992_s21 = sphi %s3990_s21, %s3402_s21   ;;  %s3988_s20 = sphi %s3986_s20, %s3987_s20   ;;  %s3984_s19 = sphi %s3982_s19, %s3415_s19   ;;  %s3980_s18 = sphi %s3978_s18, %s3416_s18  }
 0x29e   : >> { %3409 = vst [vmem:[%s3980_s18] sm:$0xff] %v3408_v8  ;;  %p3411_p13 = scmp.ge.s32.totalorder %s3410_s9, %s5561_s6  ;;  %p3401_p1 = scmp.ge.s32.totalorder %s3402_s21, %s5561_s6 }
 0x2a0   : >> { %s5629_s9 = smov (%p3411_p13, %s3410_s9), 0  ;;  %3404 = sbr.rel (!%p3401_p1) target bundleno = 669 (0x29d), region = 140 }
 0x2a1   : >> { %s3649_s22 = sshll.u32 %s5629_s9, 3  ;;  %s3987_s20 = smov %s5629_s9  }
 0x2a2   : >> { %s3415_s19 = scalar_lea.vmem %s3396_s13, %s3649_s22 [#allocation5]   ;;  %s3416_s18 = scalar_lea.vmem %s3398_s15, %s3649_s22  }
 0x2a5 PF: > { %p11_p2 = scmp.ge.s32.totalorder %s4034_s11, 4   ;;  %s5620_s6 = smov %s3952_s7 }
 0x2a6   : > { %s5621_s7 = smov %s3956_s8  ;;  %s5622_s8 = smov %s4044_s14 }
 0x2a7   : > { %s5623_s9 = smov %s4034_s11  ;;  %13 = sbr.rel (!%p11_p2) target bundleno = 3 (0x3), region = 151 }
 0x2ac   :  { %3432 = vsyncpa [#allocation4], 1 }
 0x2ad   :  { %3434 = vsyncpa [#allocation4 + $0x1], 1 }

// kernel: tpu_custom_call.1
= control target key start
LH: loop header
LB: loop body
LE: loop exit
PB: predicated region body
PF: predicated region fallthrough
CT: control target
= control target key end

     0   :  { %6 = vsyncpa [#allocation3], 0  ;;  %s4621_s0 = inlined_call_operand.hbm [shape: f32[3,1000], index: 0, kind: input, shape index: {}]   ;;  %s4622_s1 = inlined_call_operand.hbm [shape: f32[39,1000], index: 1, kind: output, shape index: {}]  }
   0x1   :  { %8 = vsyncpa [#allocation3 + $0x1], 0 }
   0x2   :  { %9 = vsyncpa [#allocation4], 0 }
   0x3   :  { %11 = vsyncpa [#allocation4 + $0x1], 0  ;;  %s3293_s6 = smov 0   ;;  %s3295_s7 = smov 0  }
   0x4   :  { %s3297_s8 = smov 0   ;;  %s3299_s9 = smov 0  }
   0x5 LB: > { %s3314_s10 = sadd.s32 4294967295, %s3270_s9   ;;  %s2914_s11 = sadd.s32 4294967294, %s3270_s9   ;;  %s3270_s9 = sphi %s3299_s9, %s4659_s9   ;;  %s3266_s8 = sphi %s3297_s8, %s4658_s8   ;;  %s3262_s7 = sphi %s3295_s7, %s4657_s7   ;;  %s3258_s6 = sphi %s3293_s6, %s4656_s6  }
   0x6   : > { %s3318_s12 = sadd.s32 1, %s3270_s9   ;;  %s24_s13 = sadd.s32 1, %s3266_s8 }
   0x7   : > { %s21_s14 = ssub.s32 %s3270_s9, %s3318_s12  ;;  %p31_p0 = scmp.ne.s32.totalorder %s3266_s8, %s3262_s7 }
   0x8   : > { %p22_p1 = scmp.eq.s32.totalorder %s21_s14, 0  ;;  %p32_p2 = scmp.eq.s32.totalorder %s3270_s9, 0 }
   0x9   : > { %p37_p3 = scmp.ne.s32.totalorder %s3262_s7, %s3258_s6  ;;  %p38_p4 = scmp.eq.s32.totalorder %s3314_s10, 0 }
   0xa   : > { %s3330_s15 = scalar_select %p22_p1, %s3266_s8, %s24_s13  }
   0xb   : > { %p3332_p5 = por %p32_p2, %p31_p0  ;;  %p3336_p6 = por %p38_p4, %p37_p3 }
   0xc   : > { %p61_p7 = scmp.eq.s32.totalorder %s3314_s10, 1  ;;  %p67_p8 = scmp.eq.s32.totalorder %s2914_s11, 1 }
   0xd   : > { %s4626_s17 = scalar_select %p3336_p6, 1, 0 }
   0xe   : > { %p3085_p10 = scmp.lt.s32.totalorder %s3270_s9, 2  ;;  %p3343_p11 = por %p61_p7, %p31_p0 }
   0xf   : > { %p3347_p12 = por %p67_p8, %p37_p3  ;;  %s87_s20 = sand.u32 1, %s3266_s8  }
  0x10   : > { %s4627_s18 = scalar_select %p3343_p11, 1, 0 }
  0x11   : > { %s4628_s19 = scalar_select %p3347_p12, 1, 0 }
  0x12   : > { %s3022_s21 = sshll.u32 %s3270_s9, 8  ;;  %s2917_s22 = sshll.u32 %s87_s20, 4 }
  0x13   : > { %s3356_s25 = scalar_lea.hbm %s4621_s0, %s3022_s21  ;;  %s91_s26 = scalar_lea.vmem [#allocation2], %s2917_s22 }
  0x14   : > { %s99_s27 = sshll.u32 %s91_s26, 4  ;;  %p3360_p13 = pnand %p3085_p10, %p3332_p5  ;;  %s3364_s27 = int_to_ptr.vmem [resolvable:$true] %s99_s27 }
  0x15   : > { %s88_s29 = scalar_lea.sflag [#allocation3], %s87_s20  ;;  %s3178_s30 = scalar_lea.hbm %s3356_s25, 256 }
  0x16   : > { %p3179_p2 = scmp.ne.s32.totalorder %s3356_s25, %s3178_s30  ;;  %p3180_p3 = pneg %p3360_p13 }
  0x17   : > { %s3183_s4 = scalar_lea.hbm %s4621_s0, 512  ;;  %p3184_p5 = scmp.lt.s32.totalorder %s3356_s25, %s4621_s0 }
  0x18   : > { %p3181_p4 = pnand %p3180_p3, %p3179_p2  ;;  %p3185_p8 = scmp.lt.s32.totalorder %s3183_s4, %s3178_s30 }
  0x1a   : > { %p3182_p7 = pneg %p3181_p4  ;;  %p3186_p10 = por %p3185_p8, %p3184_p5 }
  0x1c   : > { %p3187_p9 = pnand %p3186_p10, %p3182_p7 }
  0x1e   : > { %3190 = shalt.err (!%p3187_p9)
}
  0x1f   : > { %s3191_s13 = scalar_lea.vmem %s3364_s27, 256  ;;  %s3272_s14 = smov [#allocation2]  }
  0x20   : > { %p3192_p0 = scmp.ne.s32.totalorder %s3364_s27, %s3191_s13  ;;  %s3196_s16 = sshll.u32 %s3272_s14, 4  ;;  %s3197_s16 = int_to_ptr.vmem [resolvable:$false] %s3196_s16 }
  0x21   : > { %s3198_s20 = scalar_lea.vmem %s3197_s16, 512  ;;  %p3199_p4 = scmp.lt.s32.totalorder %s3364_s27, %s3197_s16 }
  0x22   : > { %p3194_p1 = pnand %p3192_p0, %p3180_p3  ;;  %p3200_p12 = scmp.lt.s32.totalorder %s3198_s20, %s3191_s13 }
  0x24   : > { %p3195_p2 = pneg %p3194_p1  ;;  %p3201_p11 = por %p3200_p12, %p3199_p4 }
  0x26   : > { %p3202_p6 = pnand %p3201_p11, %p3195_p2 }
  0x28   : > { %3205 = shalt.err (!%p3202_p6)
}
  0x29   : > { %3080 = dma.hbm_to_vmem [thread:$0]  (!%p3360_p13), %s3356_s25, 256, %s3364_s27, %s88_s29  }
  0x2a   : > { %p4630_p9 = scmp.lt.s32.totalorder %s3270_s9, 3  ;;  %p4631_p7 = scmp.ge.s32.totalorder %s3270_s9, 1 }
  0x2c   : > { %p105_p0 = pnand %p4631_p7, %p4630_p9 }
  0x2d   : > { %s3391_s21 = sand.u32 (!%p105_p0), 1, %s3262_s7   ;;  %p4632_p6 = scmp.ne.s32.totalorder (!%p105_p0), %s4626_s17, 0 }
  0x2e   : > { %108 = sbr.rel (%p105_p0) target bundleno = 439 (0x1b7), region = 24  ;;  %s2921_s22 = sshll.u32 (!%p105_p0), %s3391_s21, 4 }
  0x2f   : > { %s111_s23 = scalar_lea.sflag (!%p105_p0), [#allocation3], %s3391_s21  ;;  %s114_s24 = scalar_lea.vmem (!%p105_p0), [#allocation2], %s2921_s22 }
  0x33   : > { %3249 = dma.done.wait (%p4632_p6), %s111_s23, 256  }
  0x34   : > { %3251 = vsyncadd (%p4632_p6), %s111_s23, 4294967040  ;;  %s3024_s25 = smul.u32 160, %s3391_s21  ;;  %v3400_v0 = vld [vmem:[%s114_s24] sm:$0x77]  ;;  %v3402_v1 = vld [vmem:[%s114_s24 + $0x8] sm:$0x77] }
  0x35   : > { %v139_v2 = vcombine.high %v3400_v0, %v3400_v0  ;;  %v140_v3 = vcombine.high %v3402_v1, %v3402_v1  ;;  %v147_v4 = vand.u32 2147483647, %v3400_v0  ;;  %v150_v5 = vand.u32 2139095040, %v3400_v0  ;;  %s3023_s17 = sshll.u32 %s3314_s10, 9  ;;  %s2828_s10 = scalar_lea.sflag [#allocation4], %s3391_s21 }
  0x36   : > { %s3404_s26 = scalar_lea.vmem [#allocation5], %s3024_s25  ;;  %v251_v6 = vand.u32 2147483647, %v3402_v1  ;;  %v254_v7 = vand.u32 2139095040, %v3402_v1  ;;  %v3421_v9 = vmul.f32 2.0, %v3400_v0  ;;  %v3429_v23 = vmul.f32 2.0, %v3402_v1  ;;  %s4573_s30 = scalar_lea.hbm %s4622_s1, %s3023_s17 }
  0x37   : > { %143 = vst [vmem:[%s3404_s26] sm:$0x7] %v3400_v0  ;;  %145 = vst [vmem:[%s3404_s26 + $0x10] sm:$0x7] %v3402_v1  ;;  %v151_v8 = vshrl.u32 %v150_v5, 23  ;;  %v154_v10 = vand.u32 8388607, %v147_v4 }
  0x38   : > { %144 = vst [vmem:[%s3404_s26 + $0x8] sm:$0x7] %v139_v2  ;;  %146 = vst [vmem:[%s3404_s26 + $0x18] sm:$0x7] %v140_v3  ;;  %v255_v11 = vshrl.u32 %v254_v7, 23  ;;  %v602_v15 = vand.u32 2139095040, %v3421_v9 }
  0x39   : > { %v258_v12 = vand.u32 8388607, %v251_v6  ;;  %v2922_v13 = vadd.s32 4294967169, %v151_v8  ;;  %v155_v17 = vor.u32 8388608, %v154_v10  ;;  %v599_v27 = vand.u32 2147483647, %v3421_v9 }
  0x3a   : > { %v2926_v14 = vadd.s32 4294967169, %v255_v11  ;;  %v603_v20 = vshrl.u32 %v602_v15, 23  ;;  %v3273_v33 = vmov 683565275   ;;  %v3274_v35 = vmov 2475754826  }
  0x3b   : > { %v157_v16 = vadd.s32 1, %v2922_v13  ;;  %v259_v18 = vor.u32 8388608, %v258_v12  ;;  %v3432_v28 = vshll.u32 %v155_v17, 8  ;;  %v3275_v37 = vmov 2131351028   ;;  %s2841_s27 = sshll.u32 %s3404_s26, 4  ;;  %s4575_s27 = int_to_ptr.vmem [resolvable:$true] %s2841_s27 }
  0x3c   : > { %v261_v19 = vadd.s32 1, %v2926_v14  ;;  %v2938_v22 = vadd.s32 4294967169, %v603_v20  ;;  %v3276_v39 = vmov 2102212464   ;;  %v3277_v41 = vmov 920167782  }
  0x3d   : > { %vm158_vm0 = vcmp.gt.s32.totalorder %v157_v16, 0  ;;  %v3436_v31 = vshll.u32 %v259_v18, 8  ;;  %v3278_v49 = vmov 1326507024   ;;  %vm149_vm13 = vcmp.lt.s32.totalorder %v3400_v0, 0  ;;  %s3206_s2 = scalar_lea.vmem %s4575_s27, 2560 }
  0x3e   : > { %v159_v21 = vsel %vm158_vm0, %v157_v16, 0  ;;  %vm262_vm1 = vcmp.gt.s32.totalorder %v261_v19, 0  ;;  %v3443_v43 = vadd.s32 1, %v2938_v22  ;;  %vm3519_vm14 = vcmp.le.f32.partialorder %v147_v4, 0.7853982  ;;  %p3207_p11 = scmp.ne.s32.totalorder %s4575_s27, %s3206_s2  ;;  %p4653_p12 = scmp.ne.s32.totalorder %s4627_s18, 0 }
  0x3f   : > { %v160_v24 = vshrl.u32 %v159_v21, 5  ;;  %v161_v25 = vand.u32 31, %v159_v21  ;;  %v263_v26 = vsel %vm262_vm1, %v261_v19, 0  ;;  %vm253_vm15 = vcmp.lt.s32.totalorder %v3402_v1, 0  ;;  %s3279_s3 = smov [#allocation5]  }
  0x40   : > { %v3434_v29 = vshrl.u32 %v263_v26, 5  ;;  %v265_v30 = vand.u32 31, %v263_v26  ;;  %vm610_vm11 = vcmp.gt.s32.totalorder %v3443_v43, 0  ;;  %p3208_p13 = pnand %p3207_p11, %p4653_p12  ;;  %s3210_s4 = sshll.u32 %s3279_s3, 4  ;;  %s3211_s4 = int_to_ptr.vmem [resolvable:$false] %s3210_s4 }
  0x41   : > { %v162_v32 = vsub.s32 32, %v161_v25  ;;  %v164_v34 = vshll.u32 %v3273_v33, %v161_v25  ;;  %v167_v36 = vshll.u32 %v3274_v35, %v161_v25  ;;  %v170_v38 = vshll.u32 %v3275_v37, %v161_v25  ;;  %s3212_s5 = scalar_lea.vmem %s3211_s4, 5120  ;;  %p3213_p3 = scmp.lt.s32.totalorder %s4575_s27, %s3211_s4 }
  0x42   : > { %v173_v40 = vshll.u32 %v3276_v39, %v161_v25  ;;  %v176_v42 = vshll.u32 %v3277_v41, %v161_v25  ;;  %vm179_vm2 = vcmp.lt.s32.totalorder %v160_v24, 1  ;;  %vm180_vm3 = vcmp.lt.s32.totalorder %v160_v24, 2  ;;  %p3209_p1 = pneg %p3208_p13  ;;  %p3214_p5 = scmp.lt.s32.totalorder %s3212_s5, %s3206_s2 }
  0x43   : > { %v163_v44 = vshrl.u32 %v3273_v33, %v162_v32  ;;  %v165_v45 = vshrl.u32 %v3274_v35, %v162_v32  ;;  %v168_v46 = vshrl.u32 %v3275_v37, %v162_v32  ;;  %v171_v47 = vshrl.u32 %v3276_v39, %v162_v32 }
  0x44   : > { %v174_v48 = vshrl.u32 %v3277_v41, %v162_v32  ;;  %v177_v50 = vshrl.u32 %v3278_v49, %v162_v32  ;;  %vm182_vm4 = vcmp.lt.s32.totalorder %v160_v24, 4  ;;  %v266_v54 = vsub.s32 32, %v265_v30  ;;  %p3215_p8 = por %p3214_p5, %p3213_p3 }
  0x45   : > { %v166_v51 = vor.u32 %v165_v45, %v164_v34  ;;  %v169_v52 = vor.u32 %v168_v46, %v167_v36  ;;  %v172_v53 = vor.u32 %v171_v47, %v170_v38  ;;  %vm181_vm5 = vcmp.lt.s32.totalorder %v160_v24, 3 }
  0x46   : > { %v175_v55 = vor.u32 %v174_v48, %v173_v40  ;;  %v178_v56 = vor.u32 %v177_v50, %v176_v42  ;;  %v268_v57 = vshll.u32 %v3273_v33, %v265_v30  ;;  %v271_v3 = vshll.u32 %v3274_v35, %v265_v30  ;;  %p3216_p10 = pnand %p3215_p8, %p3209_p1 }
  0x47   : > { %v183_v58 = vsel %vm179_vm2, %v163_v44, %v166_v51  ;;  %v184_v59 = vsel %vm182_vm4, %v172_v53, 2102212464  ;;  %v187_v60 = vsel %vm179_vm2, %v166_v51, %v169_v52  ;;  %v191_v61 = vsel %vm179_vm2, %v169_v52, %v172_v53 }
  0x48   : > { %v185_v62 = vsel %vm181_vm5, %v169_v52, %v184_v59  ;;  %v188_v63 = vsel %vm182_vm4, %v175_v55, 920167782  ;;  %v192_v2 = vsel %vm182_vm4, %v178_v56, 1326507024  ;;  %v267_v8 = vshrl.u32 %v3273_v33, %v266_v54 }
  0x49   : > { %v189_v5 = vsel %vm181_vm5, %v172_v53, %v188_v63  ;;  %v193_v7 = vsel %vm181_vm5, %v175_v55, %v192_v2  ;;  %v269_v10 = vshrl.u32 %v3274_v35, %v266_v54  ;;  %v186_v11 = vsel %vm180_vm3, %v183_v58, %v185_v62 }
  0x4a   : > { %v190_v12 = vsel %vm180_vm3, %v187_v60, %v189_v5  ;;  %v194_v13 = vsel %vm180_vm3, %v191_v61, %v193_v7  ;;  %v272_v14 = vshrl.u32 %v3275_v37, %v266_v54  ;;  %v274_v21 = vshll.u32 %v3275_v37, %v265_v30 }
  0x4b   : > { %v3463_v15 = vmul.u32.u64.low %v3432_v28, %v194_v13  ;;  %v3464_v16 = vmul.u32.u64.high %v3432_v28, %v194_v13, %v3463_v15  ;;  %v3467_v17 = vmul.u32.u64.low %v3432_v28, %v190_v12  ;;  %v3468_v18 = vmul.u32.u64.high %v3432_v28, %v190_v12, %v3467_v17 }
  0x4c   : > { %v270_v19 = vor.u32 %v269_v10, %v268_v57  ;;  %v273_v20 = vor.u32 %v272_v14, %v271_v3  ;;  %v275_v22 = vshrl.u32 %v3276_v39, %v266_v54  ;;  %v277_v24 = vshll.u32 %v3276_v39, %v265_v30 }
  0x4d   : > { %v278_v25 = vshrl.u32 %v3277_v41, %v266_v54  ;;  %v280_v26 = vshll.u32 %v3277_v41, %v265_v30  ;;  %v281_v32 = vshrl.u32 %v3278_v49, %v266_v54  ;;  %v202_v34 = vmul.u32 %v3432_v28, %v186_v11 }
  0x4e   : > { %v276_v36 = vor.u32 %v275_v22, %v274_v21  ;;  %vm283_vm6 = vcmp.lt.s32.totalorder %v3434_v29, 1  ;;  %vm284_vm7 = vcmp.lt.s32.totalorder %v3434_v29, 2  ;;  %vm204_vm8 = vc.u32 %v3464_v16, %v3467_v17 }
  0x4f   : > { %v205_v38 = vadd.s32 1, %v3468_v18  ;;  %v279_v40 = vor.u32 %v278_v25, %v277_v24  ;;  %vm285_vm9 = vcmp.lt.s32.totalorder %v3434_v29, 3  ;;  %v282_v42 = vor.u32 %v281_v32, %v280_v26 }
  0x50   : > { %vm286_vm10 = vcmp.lt.s32.totalorder %v3434_v29, 4  ;;  %v287_v30 = vsel %vm283_vm6, %v267_v8, %v270_v19  ;;  %v291_v44 = vsel %vm283_vm6, %v270_v19, %v273_v20  ;;  %v295_v47 = vsel %vm283_vm6, %v273_v20, %v276_v36 }
  0x51   : > { %v206_v28 = vsel %vm204_vm8, %v205_v38, %v3468_v18  ;;  %v288_v45 = vsel %vm286_vm10, %v276_v36, 2102212464  ;;  %v292_v46 = vsel %vm286_vm10, %v279_v40, 920167782  ;;  %v296_v52 = vsel %vm286_vm10, %v282_v42, 1326507024 }
  0x52   : > { %v207_v48 = vadd.s32 %v206_v28, %v202_v34  ;;  %v289_v50 = vsel %vm285_vm9, %v273_v20, %v288_v45  ;;  %v293_v51 = vsel %vm285_vm9, %v276_v36, %v292_v46  ;;  %v297_v55 = vsel %vm285_vm9, %v279_v40, %v296_v52 }
  0x53   : > { %v290_v53 = vsel %vm284_vm7, %v287_v30, %v289_v50  ;;  %v294_v54 = vsel %vm284_vm7, %v291_v44, %v293_v51  ;;  %v298_v57 = vsel %vm284_vm7, %v295_v47, %v297_v55  ;;  %v606_v62 = vand.u32 8388607, %v599_v27 }
  0x54   : > { %v208_v56 = vadd.s32 536870912, %v207_v48  ;;  %v3494_v58 = vmul.u32.u64.low %v3436_v31, %v294_v54  ;;  %v3495_v59 = vmul.u32.u64.high %v3436_v31, %v294_v54, %v3494_v58  ;;  %v611_v2 = vsel %vm610_vm11, %v3443_v43, 0 }
  0x55   : > { %v3498_v60 = vmul.u32.u64.low %v3436_v31, %v298_v57  ;;  %v3499_v61 = vmul.u32.u64.high %v3436_v31, %v298_v57, %v3498_v60  ;;  %v306_v3 = vmul.u32 %v3436_v31, %v290_v53  ;;  %v706_v5 = vand.u32 2139095040, %v3429_v23 }
  0x56   : > { %v209_v63 = vshrl.u32 %v208_v56, 30  ;;  %v309_v7 = vadd.s32 1, %v3495_v59  ;;  %v607_v8 = vor.u32 8388608, %v606_v62  ;;  %v613_v10 = vand.u32 31, %v611_v2 }
  0x57   : > { %vm308_vm12 = vc.u32 %v3499_v61, %v3494_v58  ;;  %v703_v15 = vand.u32 2147483647, %v3429_v23  ;;  %v707_v43 = vshrl.u32 %v706_v5, 23  ;;  %v3515_v18 = vmul.f32 4.0, %v3400_v0 }
  0x58   : > { %v210_v29 = vshll.u32 %v209_v63, 30  ;;  %v233_v12 = vsub.s32 4, %v209_v63  ;;  %v310_v13 = vsel %vm308_vm12, %v309_v7, %v3495_v59  ;;  %v614_v21 = vsub.s32 32, %v613_v10 }
  0x59   : > { %v311_v14 = vadd.s32 %v310_v13, %v306_v3  ;;  %v3523_v22 = vshll.u32 %v607_v8, 8  ;;  %v203_v24 = vadd.s32 %v3467_v17, %v3464_v16  ;;  %v3530_v32 = vshrl.u32 %v611_v2, 5 }
  0x5a   : > { %v3508_v11 = vsub.s32 %v207_v48, %v210_v29  ;;  %v234_v26 = vsel %vm149_vm13, %v233_v12, %v209_v63  ;;  %v3532_v36 = vadd.s32 4294967169, %v707_v43  ;;  %v3536_v4 = vand.u32 8388607, %v703_v15 }
  0x5b   : > { %v312_v20 = vadd.s32 536870912, %v311_v14  ;;  %v1041_v38 = vand.u32 2147483647, %v3515_v18  ;;  %v616_v42 = vshll.u32 %v3273_v33, %v613_v10  ;;  %v619_v16 = vshll.u32 %v3274_v35, %v613_v10 }
  0x5c   : > { %v213_v31 = vsub.s32 0, %v3508_v11  ;;  %v1044_v17 = vand.u32 2139095040, %v3515_v18  ;;  %v236_v30 = vsel %vm3519_vm14, 0, %v234_v26  ;;  %v617_v28 = vshrl.u32 %v3274_v35, %v614_v21 }
  0x5d   : > { %v313_v34 = vshrl.u32 %v312_v20, 30  ;;  %v620_v45 = vshrl.u32 %v3275_v37, %v614_v21  ;;  %v307_v47 = vadd.s32 %v3494_v58, %v3499_v61  ;;  %v615_v48 = vshrl.u32 %v3273_v33, %v614_v21 }
  0x5e   : > { %v2923_v25 = vmin.u32 %v213_v31, %v3508_v11  ;;  %v622_v50 = vshll.u32 %v3275_v37, %v613_v10  ;;  %v623_v52 = vshrl.u32 %v3276_v39, %v614_v21  ;;  %v625_v53 = vshll.u32 %v3276_v39, %v613_v10 }
  0x5f   : > { %v314_v44 = vshll.u32 %v313_v34, 30  ;;  %v626_v54 = vshrl.u32 %v3277_v41, %v614_v21  ;;  %v240_v55 = vadd.s32 3, %v236_v30  ;;  %v628_v56 = vshll.u32 %v3277_v41, %v613_v10 }
  0x60   : > { %v215_v40 = vclz %v2923_v25  ;;  %v629_v57 = vshrl.u32 %v3278_v49, %v614_v21  ;;  %v618_v60 = vor.u32 %v617_v28, %v616_v42  ;;  %v621_v61 = vor.u32 %v620_v45, %v619_v16 }
  0x61   : > { %v3550_v51 = vsub.s32 %v311_v14, %v314_v44  ;;  %v337_v3 = vsub.s32 4, %v313_v34  ;;  %v624_v29 = vor.u32 %v623_v52, %v622_v50  ;;  %v627_v7 = vor.u32 %v626_v54, %v625_v53 }
  0x62   : > { %v2924_v46 = vadd.s32 4294967294, %v215_v40  ;;  %vm631_vm1 = vcmp.lt.s32.totalorder %v3530_v32, 1  ;;  %v630_v12 = vor.u32 %v629_v57, %v628_v56  ;;  %vm634_vm2 = vcmp.lt.s32.totalorder %v3530_v32, 4 }
  0x63   : > { %v317_v58 = vsub.s32 0, %v3550_v51  ;;  %v3562_v14 = vand.u32 3, %v236_v30  ;;  %vm632_vm3 = vcmp.lt.s32.totalorder %v3530_v32, 2  ;;  %vm633_vm4 = vcmp.lt.s32.totalorder %v3530_v32, 3 }
  0x64   : > { %vm2925_vm0 = vcmp.lt.s32.totalorder %v2924_v46, 0  ;;  %vm3568_vm5 = vcmp.le.f32.partialorder %v251_v6, 0.7853982  ;;  %v338_v20 = vsel %vm253_vm15, %v337_v3, %v313_v34  ;;  %v636_v21 = vsel %vm634_vm2, %v624_v29, 2102212464 }
  0x65   : > { %v218_v59 = vsel %vm2925_vm0, 0, %v2924_v46  ;;  %v2927_v5 = vmin.u32 %v317_v58, %v3550_v51  ;;  %v639_v25 = vsel %vm631_vm1, %v618_v60, %v621_v61  ;;  %v640_v26 = vsel %vm634_vm2, %v627_v7, 920167782 }
  0x66   : > { %v219_v62 = vsub.s32 32, %v218_v59  ;;  %v220_v63 = vshll.u32 %v3508_v11, %v218_v59  ;;  %v223_v2 = vsub.s32 4294967266, %v218_v59  ;;  %v643_v40 = vsel %vm631_vm1, %v621_v61, %v624_v29 }
  0x67   : > { %v319_v13 = vclz %v2927_v5  ;;  %v641_v16 = vsel %vm633_vm4, %v624_v29, %v640_v26  ;;  %v644_v34 = vsel %vm634_vm2, %v630_v12, 1326507024  ;;  %v635_v30 = vsel %vm631_vm1, %v615_v48, %v618_v60 }
  0x68   : > { %v221_v8 = vshrl.u32 %v203_v24, %v219_v62  ;;  %v224_v10 = vadd.s32 127, %v223_v2  ;;  %v637_v44 = vsel %vm633_vm4, %v621_v61, %v636_v21  ;;  %v645_v28 = vsel %vm633_vm4, %v627_v7, %v644_v34 }
  0x69   : > { %v2928_v24 = vadd.s32 4294967294, %v319_v13  ;;  %v642_v50 = vsel %vm632_vm3, %v639_v25, %v641_v16  ;;  %v646_v52 = vsel %vm632_vm3, %v643_v40, %v645_v28  ;;  %v713_v48 = vadd.s32 1, %v3532_v36 }
  0x6a   : > { %v222_v11 = vor.u32 %v221_v8, %v220_v63  ;;  %v225_v43 = vshll.u32 %v224_v10, 23  ;;  %v638_v59 = vsel %vm632_vm3, %v635_v30, %v637_v44  ;;  %v711_v36 = vor.u32 8388608, %v3536_v4 }
  0x6b   : > { %vm2929_vm6 = vcmp.lt.s32.totalorder %v2928_v24, 0  ;;  %v3601_v58 = vmul.u32.u64.low %v3523_v22, %v646_v52  ;;  %v3602_v60 = vmul.u32.u64.high %v3523_v22, %v646_v52, %v3601_v58  ;;  %vm714_vm7 = vcmp.gt.s32.totalorder %v713_v48, 0 }
  0x6c   : > { %v226_v6 = vor.u32 4788187, %v225_v43  ;;  %v229_v42 = vcvt.s32.f32 %v222_v11  ;;  %v322_v46 = vsel %vm2929_vm6, 0, %v2928_v24  ;;  %v340_v29 = vsel %vm3568_vm5, 0, %v338_v20 }
  0x6d   : > { %v323_v53 = vsub.s32 32, %v322_v46  ;;  %v324_v54 = vshll.u32 %v3550_v51, %v322_v46  ;;  %v327_v56 = vsub.s32 4294967266, %v322_v46  ;;  %v3609_v51 = vand.u32 3, %v240_v55 }
  0x6e   : > { %v227_v45 = vand.u32 2147483647, %v226_v6  ;;  %v3605_v63 = vmul.u32.u64.low %v3523_v22, %v642_v50  ;;  %v3606_v2 = vmul.u32.u64.high %v3523_v22, %v642_v50, %v3605_v63  ;;  %v715_v7 = vsel %vm714_vm7, %v713_v48, 0 }
  0x6f   : > { %v325_v61 = vshrl.u32 %v307_v47, %v323_v53  ;;  %v328_v62 = vadd.s32 127, %v327_v56  ;;  %v654_v8 = vmul.u32 %v3523_v22, %v638_v59  ;;  %v3619_v10 = vshrl.u32 %v715_v7, 5 }
  0x70   : > { %v230_v57 = vmul.f32 %v229_v42, %v227_v45  ;;  %vm656_vm8 = vc.u32 %v3602_v60, %v3605_v63  ;;  %v657_v13 = vadd.s32 1, %v3606_v2  ;;  %v344_v11 = vadd.s32 3, %v340_v29 }
  0x71   : > { %v326_v5 = vor.u32 %v325_v61, %v324_v54  ;;  %v329_v32 = vshll.u32 %v328_v62, 23  ;;  %v717_v43 = vand.u32 31, %v715_v7  ;;  %v3625_v20 = vshll.u32 %v711_v36, 8 }
  0x72   : > { %v231_v3 = vxor.u32 2147483648, %v230_v57  ;;  %v658_v21 = vsel %vm656_vm8, %v657_v13, %v3606_v2  ;;  %vm735_vm9 = vcmp.lt.s32.totalorder %v3619_v10, 1  ;;  %vm736_vm10 = vcmp.lt.s32.totalorder %v3619_v10, 2 }
  0x73   : > { %v330_v55 = vor.u32 4788187, %v329_v32  ;;  %v333_v12 = vcvt.s32.f32 %v326_v5  ;;  %v659_v24 = vadd.s32 %v658_v21, %v654_v8  ;;  %v718_v25 = vsub.s32 32, %v717_v43 }
  0x74   : > { %v232_v47 = vsel %vm149_vm13, %v231_v3, %v230_v57  ;;  %v720_v19 = vshll.u32 %v3273_v33, %v717_v43  ;;  %v723_v26 = vshll.u32 %v3274_v35, %v717_v43  ;;  %v726_v6 = vshll.u32 %v3275_v37, %v717_v43 }
  0x75   : > { %v235_v4 = vsel %vm3519_vm14, %v3400_v0, %v232_v47  ;;  %v331_v22 = vand.u32 2147483647, %v330_v55  ;;  %v729_v42 = vshll.u32 %v3276_v39, %v717_v43  ;;  %v660_v16 = vadd.s32 536870912, %v659_v24 }
  0x76   : > { %3130 = vcosq.f32 %v235_v4  ;;  %v721_v34 = vshrl.u32 %v3274_v35, %v718_v25  ;;  %v724_v30 = vshrl.u32 %v3275_v37, %v718_v25  ;;  %v732_v44 = vshll.u32 %v3277_v41, %v717_v43 }
  0x77   : > { %3132 = vsinq.f32 %v235_v4  ;;  %v334_v40 = vmul.f32 %v333_v12, %v331_v22  ;;  %vm469_vm11 = vcmp.eq.s32.totalorder %v3562_v14, 2  ;;  %v727_v45 = vshrl.u32 %v3276_v39, %v718_v25 }
  0x78   : > { %v730_v46 = vshrl.u32 %v3277_v41, %v718_v25  ;;  %v733_v50 = vshrl.u32 %v3278_v49, %v718_v25  ;;  %vm466_vm12 = vcmp.eq.s32.totalorder %v3562_v14, 0  ;;  %v3642_v52 = vshrl.u32 %v660_v16, 30 }
  0x79   : > { %v335_v28 = vxor.u32 2147483648, %v334_v40  ;;  %v722_v53 = vor.u32 %v721_v34, %v720_v19  ;;  %v725_v54 = vor.u32 %v724_v30, %v723_v26  ;;  %vm738_vm13 = vcmp.lt.s32.totalorder %v3619_v10, 4 }
  0x7a   : > { %vm242_vm14 = vcmp.lt.s32.totalorder %v3609_v51, 2  ;;  %vm465_vm0 = vcmp.lt.s32.totalorder %v3562_v14, 2  ;;  %v719_v48 = vshrl.u32 %v3273_v33, %v718_v25  ;;  %v728_v57 = vor.u32 %v727_v45, %v726_v6 }
  0x7b   : > { %v336_v56 = vsel %vm253_vm15, %v335_v28, %v334_v40  ;;  %v731_v59 = vor.u32 %v730_v46, %v729_v42  ;;  %vm239_vm1 = vweird.f32 %v3400_v0  ;;  %v662_v61 = vshll.u32 %v3642_v52, 30 }
  0x7c   : > { %v339_v58 = vsel %vm3568_vm5, %v3402_v1, %v336_v56  ;;  %v734_v62 = vor.u32 %v733_v50, %v732_v44  ;;  %vm737_vm2 = vcmp.lt.s32.totalorder %v3619_v10, 3  ;;  %v740_v2 = vsel %vm738_vm13, %v728_v57, 2102212464 }
  0x7d   : > { %3134 = vcosq.f32 %v339_v58  ;;  %v743_v3 = vsel %vm735_vm9, %v722_v53, %v725_v54  ;;  %v744_v36 = vsel %vm738_vm13, %v731_v59, 920167782  ;;  %v3662_v5 = vand.u32 3, %v344_v11 }
  0x7e   : > { %3136 = vsinq.f32 %v339_v58  ;;  %v3664_v31 = vand.u32 3, %v340_v29  ;;  %v3666_v32 = vsub.s32 %v659_v24, %v662_v61  ;;  %v739_v7 = vsel %vm735_vm9, %v719_v48, %v722_v53 }
  0x7f   : > { %v741_v47 = vsel %vm737_vm2, %v725_v54, %v740_v2  ;;  %v745_v8 = vsel %vm737_vm2, %v728_v57, %v744_v36  ;;  %v747_v4 = vsel %vm735_vm9, %v725_v54, %v728_v57  ;;  %vm243_vm15 = vcmp.eq.s32.totalorder %v3609_v51, 0 }
  0x80   : > { %vm601_vm3 = vcmp.lt.s32.totalorder %v3421_v9, 0  ;;  %v665_v29 = vsub.s32 0, %v3666_v32  ;;  %v746_v55 = vsel %vm736_vm10, %v743_v3, %v745_v8  ;;  %v748_v12 = vsel %vm738_vm13, %v734_v62, 1326507024 }
  0x81   : > { %vm246_vm4 = vcmp.eq.s32.totalorder %v3609_v51, 2  ;;  %v749_v11 = vsel %vm737_vm2, %v731_v59, %v748_v12  ;;  %v3687_v43 = vmul.u32.u64.low %v3625_v20, %v746_v55  ;;  %v3688_v22 = vmul.u32.u64.high %v3625_v20, %v746_v55, %v3687_v43 }
  0x82   : > { %vm572_vm5 = vcmp.eq.s32.totalorder %v3664_v31, 2  ;;  %v2939_v25 = vmin.u32 %v665_v29, %v3666_v32  ;;  %v742_v19 = vsel %vm736_vm10, %v739_v7, %v741_v47  ;;  %v750_v26 = vsel %vm736_vm10, %v747_v4, %v749_v11 }
  0x83   : > { %v3131_v13 = vpop.eup %3130  ;;  %vm347_vm6 = vcmp.eq.s32.totalorder %v3662_v5, 0  ;;  %vm569_vm7 = vcmp.eq.s32.totalorder %v3664_v31, 0  ;;  %vm3701_vm8 = vcmp.le.f32.partialorder %v599_v27, 0.7853982  ;;  %vm346_vm9 = vcmp.lt.s32.totalorder %v3662_v5, 2 }
  0x84   : > { %v3133_v21 = vpop.eup %3132  ;;  %v247_v24 = vxor.u32 2147483648, %v3131_v13  ;;  %v3706_v42 = vmul.u32.u64.low %v3625_v20, %v750_v26  ;;  %v3707_v16 = vmul.u32.u64.high %v3625_v20, %v750_v26, %v3706_v42  ;;  %vm350_vm10 = vcmp.eq.s32.totalorder %v3662_v5, 2 }
  0x85   : > { %v244_v40 = vxor.u32 2147483648, %v3133_v21  ;;  %vm568_vm13 = vcmp.lt.s32.totalorder %v3664_v31, 2  ;;  %v667_v30 = vclz %v2939_v25  ;;  %vm343_vm2 = vweird.f32 %v3402_v1 }
  0x86   : > { %v248_v34 = vsel %vm246_vm4, %v247_v24, %v3133_v21  ;;  %v471_v10 = vsel %vm469_vm11, %v247_v24, %v3133_v21  ;;  %v685_v28 = vsub.s32 4, %v3642_v52  ;;  %v758_v45 = vmul.u32 %v3625_v20, %v742_v19 }
  0x87   : > { %v245_v27 = vsel %vm243_vm15, %v3131_v13, %v244_v40  ;;  %v468_v44 = vsel %vm466_vm12, %v3131_v13, %v244_v40  ;;  %v2940_v53 = vadd.s32 4294967294, %v667_v30  ;;  %v761_v54 = vadd.s32 1, %v3688_v22 }
  0x88   : > { %v249_v46 = vsel %vm242_vm14, %v245_v27, %v248_v34  ;;  %v472_v50 = vsel %vm465_vm0, %v468_v44, %v471_v10  ;;  %vm760_vm11 = vc.u32 %v3707_v16, %v3687_v43  ;;  %v1045_v51 = vshrl.u32 %v1044_v17, 23 }
  0x89   : > { %v250_v56 = vsel %vm239_vm1, nan, %v249_v46  ;;  %v473_v48 = vsel %vm239_vm1, nan, %v472_v50  ;;  %v655_v58 = vadd.s32 %v3605_v63, %v3602_v60  ;;  %vm2941_vm12 = vcmp.lt.s32.totalorder %v2940_v53, 0 }
  0x8a   : > { %v359_v20 = vrot.slane %v250_v56, 5  ;;  %v357_v14 = vcombine.high %v250_v56, %v250_v56  ;;  %v581_v57 = vrot.slane %v473_v48, 2  ;;  %v579_v59 = vcombine.high %v473_v48, %v473_v48  ;;  %v3135_v2 = vpop.eup %3134 }
  0x8b   : > { %v686_v61 = vsel %vm601_vm3, %v685_v28, %v3642_v52  ;;  %v762_v62 = vsel %vm760_vm11, %v761_v54, %v3688_v22  ;;  %v670_v36 = vsel %vm2941_vm12, 0, %v2940_v53  ;;  %v3137_v47 = vpop.eup %3136  ;;  %v351_v8 = vxor.u32 2147483648, %v3135_v2 }
  0x8c   : > { %367 = vst [vmem:[%s3404_s26] sm:$0x38] %v359_v20  ;;  %v360_v3 = vrot.slane %v357_v14, 5  ;;  %589 = vst [vmem:[%s3404_s26 + $0x20] ss:$-28 sps:$4 sm:$0xc1] %v581_v57   ;;  %v582_v17 = vrot.slane %v579_v59, 2  ;;  %v763_v7 = vadd.s32 %v762_v62, %v758_v45  ;;  %v672_v60 = vshll.u32 %v3666_v32, %v670_v36 }
  0x8d   : > { %v671_v4 = vsub.s32 32, %v670_v36  ;;  %v675_v63 = vsub.s32 4294967266, %v670_v36  ;;  %v348_v29 = vxor.u32 2147483648, %v3137_v47  ;;  %v688_v52 = vsel %vm3701_vm8, 0, %v686_v61 }
  0x8e   : > { %368 = vst [vmem:[%s3404_s26 + $0x8] sm:$0x38] %v360_v3  ;;  %590 = vst [vmem:[%s3404_s26 + $0x28] ss:$-28 sps:$4 sm:$0xc1] %v582_v17   ;;  %v764_v55 = vadd.s32 536870912, %v763_v7  ;;  %v352_v13 = vsel %vm350_vm10, %v351_v8, %v3137_v47  ;;  %v574_v11 = vsel %vm572_vm5, %v351_v8, %v3137_v47  ;;  %v759_v8 = vadd.s32 %v3687_v43, %v3707_v16 }
  0x8f   : > { %v1048_v12 = vand.u32 8388607, %v1041_v38  ;;  %v673_v22 = vshrl.u32 %v655_v58, %v671_v4  ;;  %v676_v21 = vadd.s32 127, %v675_v63  ;;  %v349_v32 = vsel %vm347_vm6, %v3135_v2, %v348_v29 }
  0x90   : > { %v571_v24 = vsel %vm569_vm7, %v3135_v2, %v348_v29  ;;  %v765_v25 = vshrl.u32 %v764_v55, 30  ;;  %v2954_v19 = vadd.s32 4294967169, %v1045_v51  ;;  %v353_v26 = vsel %vm346_vm9, %v349_v32, %v352_v13 }
  0x91   : > { %v575_v40 = vsel %vm568_vm13, %v571_v24, %v574_v11  ;;  %v674_v42 = vor.u32 %v673_v22, %v672_v60  ;;  %v677_v34 = vshll.u32 %v676_v21, 23  ;;  %v354_v10 = vsel %vm343_vm2, nan, %v353_v26 }
  0x92   : > { %v576_v30 = vsel %vm343_vm2, nan, %v575_v40  ;;  %v766_v27 = vshll.u32 %v765_v25, 30  ;;  %v789_v44 = vsub.s32 4, %v765_v25  ;;  %v361_v28 = vrot.slane %v354_v10, 5 }
  0x93   : > { %v358_v45 = vcombine.high %v354_v10, %v354_v10  ;;  %v583_v5 = vrot.slane %v576_v30, 2  ;;  %v580_v46 = vcombine.high %v576_v30, %v576_v30  ;;  %v678_v31 = vor.u32 4788187, %v677_v34 }
  0x94   : > { %v681_v50 = vcvt.s32.f32 %v674_v42  ;;  %vm705_vm14 = vcmp.lt.s32.totalorder %v3429_v23, 0  ;;  %v767_v53 = vsub.s32 %v763_v7, %v766_v27  ;;  %369 = vst [vmem:[%s3404_s26 + $0x10] sm:$0x38] %v361_v28  ;;  %v1051_v51 = vadd.s32 1, %v2954_v19 }
  0x95   : > { %v362_v54 = vrot.slane %v358_v45, 5  ;;  %591 = vst [vmem:[%s3404_s26 + $0x30] ss:$-28 sps:$4 sm:$0xc1] %v583_v5   ;;  %v584_v56 = vrot.slane %v580_v46, 2  ;;  %v790_v48 = vsel %vm705_vm14, %v789_v44, %v765_v25  ;;  %v692_v14 = vadd.s32 3, %v688_v52 }
  0x96   : > { %v679_v20 = vand.u32 2147483647, %v678_v31  ;;  %v769_v57 = vsub.s32 0, %v767_v53  ;;  %vm3774_vm0 = vcmp.le.f32.partialorder %v703_v15, 0.7853982  ;;  %v1049_v58 = vor.u32 8388608, %v1048_v12 }
  0x97   : > { %370 = vst [vmem:[%s3404_s26 + $0x18] sm:$0x38] %v362_v54  ;;  %592 = vst [vmem:[%s3404_s26 + $0x38] ss:$-28 sps:$4 sm:$0xc1] %v584_v56   ;;  %vm1052_vm1 = vcmp.gt.s32.totalorder %v1051_v51, 0  ;;  %vm691_vm9 = vweird.f32 %v3421_v9 }
  0x98   : > { %v682_v61 = vmul.f32 %v681_v50, %v679_v20  ;;  %v2943_v62 = vmin.u32 %v769_v57, %v767_v53  ;;  %v3780_v2 = vsel %vm3774_vm0, 0, %v790_v48  ;;  %v3783_v3 = vmul.f32 4.0, %v3402_v1 }
  0x99   : > { %v1053_v17 = vsel %vm1052_vm1, %v1051_v51, 0  ;;  %v3785_v7 = vand.u32 3, %v692_v14  ;;  %v3787_v15 = vand.u32 3, %v688_v52  ;;  %v3792_v4 = vadd.s32 3, %v3780_v2 }
  0x9a   : > { %v683_v36 = vxor.u32 2147483648, %v682_v61  ;;  %v771_v47 = vclz %v2943_v62  ;;  %v1055_v60 = vand.u32 31, %v1053_v17  ;;  %v3794_v63 = vshll.u32 %v1049_v58, 8 }
  0x9b   : > { %v1054_v12 = vshrl.u32 %v1053_v17, 5  ;;  %v1148_v13 = vand.u32 2139095040, %v3783_v3  ;;  %vm695_vm5 = vcmp.eq.s32.totalorder %v3785_v7, 0  ;;  %vm694_vm7 = vcmp.lt.s32.totalorder %v3785_v7, 2 }
  0x9c   : > { %v684_v29 = vsel %vm601_vm3, %v683_v36, %v682_v61  ;;  %v2944_v55 = vadd.s32 4294967294, %v771_v47  ;;  %v1056_v11 = vsub.s32 32, %v1055_v60  ;;  %v1058_v43 = vshll.u32 %v3273_v33, %v1055_v60 }
  0x9d   : > { %v687_v52 = vsel %vm3701_vm8, %v3421_v9, %v684_v29  ;;  %v1061_v16 = vshll.u32 %v3274_v35, %v1055_v60  ;;  %v1064_v22 = vshll.u32 %v3275_v37, %v1055_v60  ;;  %v1067_v21 = vshll.u32 %v3276_v39, %v1055_v60 }
  0x9e   : > { %3138 = vcosq.f32 %v687_v52  ;;  %vm2945_vm15 = vcmp.lt.s32.totalorder %v2944_v55, 0  ;;  %v1057_v24 = vshrl.u32 %v3273_v33, %v1056_v11  ;;  %v1059_v25 = vshrl.u32 %v3274_v35, %v1056_v11 }
  0x9f   : > { %3140 = vsinq.f32 %v687_v52  ;;  %v774_v32 = vsel %vm2945_vm15, 0, %v2944_v55  ;;  %v1062_v40 = vshrl.u32 %v3275_v37, %v1056_v11  ;;  %v1065_v34 = vshrl.u32 %v3276_v39, %v1056_v11 }
  0xa0   : > { %v775_v19 = vsub.s32 32, %v774_v32  ;;  %v776_v6 = vshll.u32 %v767_v53, %v774_v32  ;;  %v779_v26 = vsub.s32 4294967266, %v774_v32  ;;  %v1060_v42 = vor.u32 %v1059_v25, %v1058_v43 }
  0xa1   : > { %v1068_v10 = vshrl.u32 %v3277_v41, %v1056_v11  ;;  %v1070_v30 = vshll.u32 %v3277_v41, %v1055_v60  ;;  %v1063_v28 = vor.u32 %v1062_v40, %v1061_v16  ;;  %v1071_v45 = vshrl.u32 %v3278_v49, %v1056_v11 }
  0xa2   : > { %v777_v27 = vshrl.u32 %v759_v8, %v775_v19  ;;  %v780_v44 = vadd.s32 127, %v779_v26  ;;  %v1066_v5 = vor.u32 %v1065_v34, %v1064_v22  ;;  %vm1073_vm3 = vcmp.lt.s32.totalorder %v1054_v12, 1 }
  0xa3   : > { %v1069_v46 = vor.u32 %v1068_v10, %v1067_v21  ;;  %vm1074_vm4 = vcmp.lt.s32.totalorder %v1054_v12, 2  ;;  %v1072_v53 = vor.u32 %v1071_v45, %v1070_v30  ;;  %vm1075_vm6 = vcmp.lt.s32.totalorder %v1054_v12, 3 }
  0xa4   : > { %v778_v31 = vor.u32 %v777_v27, %v776_v6  ;;  %v781_v50 = vshll.u32 %v780_v44, 23  ;;  %vm1076_vm8 = vcmp.lt.s32.totalorder %v1054_v12, 4  ;;  %v1077_v54 = vsel %vm1073_vm3, %v1057_v24, %v1060_v42 }
  0xa5   : > { %v1081_v56 = vsel %vm1073_vm3, %v1060_v42, %v1063_v28  ;;  %v1085_v48 = vsel %vm1073_vm3, %v1063_v28, %v1066_v5  ;;  %v1078_v14 = vsel %vm1076_vm8, %v1066_v5, 2102212464  ;;  %v1082_v57 = vsel %vm1076_vm8, %v1069_v46, 920167782 }
  0xa6   : > { %v782_v51 = vor.u32 4788187, %v781_v50  ;;  %v785_v20 = vcvt.s32.f32 %v778_v31  ;;  %v1079_v58 = vsel %vm1075_vm6, %v1063_v28, %v1078_v14  ;;  %v1083_v61 = vsel %vm1075_vm6, %v1066_v5, %v1082_v57 }
  0xa7   : > { %v1086_v62 = vsel %vm1076_vm8, %v1072_v53, 1326507024  ;;  %v1149_v17 = vshrl.u32 %v1148_v13, 23  ;;  %v1084_v47 = vsel %vm1074_vm4, %v1081_v56, %v1083_v61  ;;  %v1145_v60 = vand.u32 2147483647, %v3783_v3 }
  0xa8   : > { %v783_v36 = vand.u32 2147483647, %v782_v51  ;;  %v1087_v8 = vsel %vm1075_vm6, %v1069_v46, %v1086_v62  ;;  %v1080_v29 = vsel %vm1074_vm4, %v1077_v54, %v1079_v58  ;;  %vm698_vm10 = vcmp.eq.s32.totalorder %v3785_v7, 2 }
  0xa9   : > { %v1088_v55 = vsel %vm1074_vm4, %v1085_v48, %v1087_v8  ;;  %v3824_v52 = vmul.u32.u64.low %v3794_v63, %v1084_v47  ;;  %v3825_v11 = vmul.u32.u64.high %v3794_v63, %v1084_v47, %v3824_v52  ;;  %v2958_v22 = vadd.s32 4294967169, %v1149_v17 }
  0xaa   : > { %v786_v43 = vmul.f32 %v785_v20, %v783_v36  ;;  %v3829_v16 = vmul.u32.u64.low %v3794_v63, %v1088_v55  ;;  %v3830_v13 = vmul.u32.u64.high %v3794_v63, %v1088_v55, %v3829_v16  ;;  %vm917_vm13 = vcmp.lt.s32.totalorder %v3787_v15, 2 }
  0xab   : > { %v3139_v21 = vpop.eup %3138  ;;  %vm918_vm2 = vcmp.eq.s32.totalorder %v3787_v15, 0  ;;  %vm921_vm11 = vcmp.eq.s32.totalorder %v3787_v15, 2  ;;  %v3837_v25 = vand.u32 3, %v3792_v4  ;;  %v3840_v19 = vand.u32 3, %v3780_v2 }
  0xac   : > { %v3141_v12 = vpop.eup %3140  ;;  %v699_v32 = vxor.u32 2147483648, %v3139_v21  ;;  %v787_v24 = vxor.u32 2147483648, %v786_v43  ;;  %v1096_v26 = vmul.u32 %v3794_v63, %v1080_v29  ;;  %v1099_v40 = vadd.s32 1, %v3825_v11 }
  0xad   : > { %v696_v6 = vxor.u32 2147483648, %v3141_v12  ;;  %v1152_v42 = vand.u32 8388607, %v1145_v60  ;;  %v1155_v27 = vadd.s32 1, %v2958_v22  ;;  %vm1098_vm12 = vc.u32 %v3830_v13, %v3824_v52 }
  0xae   : > { %v700_v34 = vsel %vm698_vm10, %v699_v32, %v3141_v12  ;;  %v788_v10 = vsel %vm705_vm14, %v787_v24, %v786_v43  ;;  %v923_v30 = vsel %vm921_vm11, %v699_v32, %v3141_v12  ;;  %v1100_v45 = vsel %vm1098_vm12, %v1099_v40, %v3825_v11 }
  0xaf   : > { %v697_v4 = vsel %vm695_vm5, %v3139_v21, %v696_v6  ;;  %v791_v2 = vsel %vm3774_vm0, %v3429_v23, %v788_v10  ;;  %v920_v63 = vsel %vm918_vm2, %v3139_v21, %v696_v6  ;;  %v1101_v46 = vadd.s32 %v1100_v45, %v1096_v26 }
  0xb0   : > { %v701_v44 = vsel %vm694_vm7, %v697_v4, %v700_v34  ;;  %3142 = vcosq.f32 %v791_v2  ;;  %v924_v28 = vsel %vm917_vm13, %v920_v63, %v923_v30  ;;  %vm1156_vm14 = vcmp.gt.s32.totalorder %v1155_v27, 0 }
  0xb1   : > { %v702_v59 = vsel %vm691_vm9, nan, %v701_v44  ;;  %3144 = vsinq.f32 %v791_v2  ;;  %v925_v5 = vsel %vm691_vm9, nan, %v924_v28  ;;  %v1102_v53 = vadd.s32 536870912, %v1101_v46 }
  0xb2   : > { %v811_v31 = vrot.slane %v702_v59, 7  ;;  %v809_v7 = vcombine.high %v702_v59, %v702_v59  ;;  %v1031_v50 = vcombine.low %v925_v5, %v925_v5  ;;  %1036 = vst [vmem:[%s3404_s26 + $0x28] sm:$0x70] %v925_v5  ;;  %v1157_v15 = vsel %vm1156_vm14, %v1155_v27, 0 }
  0xb3   : > { %v1159_v56 = vand.u32 31, %v1157_v15  ;;  %vm1024_vm0 = vcmp.eq.s32.totalorder %v3840_v19, 2  ;;  %v3870_v48 = vshrl.u32 %v1102_v53, 30  ;;  %vm799_vm1 = vcmp.eq.s32.totalorder %v3837_v25, 0 }
  0xb4   : > { %819 = vst [vmem:[%s3404_s26 + $0x20] sm:$0xe] %v811_v31  ;;  %v812_v54 = vrot.slane %v809_v7, 7  ;;  %1035 = vst [vmem:[%s3404_s26 + $0x20] sm:$0x70] %v1031_v50  ;;  %vm1021_vm15 = vcmp.eq.s32.totalorder %v3840_v19, 0  ;;  %vm795_vm5 = vweird.f32 %v3429_v23  ;;  %v1097_v43 = vadd.s32 %v3824_v52, %v3830_v13 }
  0xb5   : > { %v1153_v9 = vor.u32 8388608, %v1152_v42  ;;  %v1160_v51 = vsub.s32 32, %v1159_v56  ;;  %v1162_v20 = vshll.u32 %v3273_v33, %v1159_v56  ;;  %v3877_v14 = vmul.f32 8.0, %v3400_v0 }
  0xb6   : > { %820 = vst [vmem:[%s3404_s26 + $0x28] sm:$0xe] %v812_v54  ;;  %vm798_vm3 = vcmp.lt.s32.totalorder %v3837_v25, 2  ;;  %vm1020_vm4 = vcmp.lt.s32.totalorder %v3840_v19, 2  ;;  %v1104_v57 = vshll.u32 %v3870_v48, 30  ;;  %v1165_v58 = vshll.u32 %v3274_v35, %v1159_v56 }
  0xb7   : > { %v1168_v61 = vshll.u32 %v3275_v37, %v1159_v56  ;;  %v1171_v62 = vshll.u32 %v3276_v39, %v1159_v56  ;;  %v3886_v17 = vshrl.u32 %v1157_v15, 5  ;;  %v1163_v36 = vshrl.u32 %v3274_v35, %v1160_v51 }
  0xb8   : > { %v1166_v47 = vshrl.u32 %v3275_v37, %v1160_v51  ;;  %v1169_v8 = vshrl.u32 %v3276_v39, %v1160_v51  ;;  %vm802_vm6 = vcmp.eq.s32.totalorder %v3837_v25, 2  ;;  %v3892_v29 = vsub.s32 %v1101_v46, %v1104_v57 }
  0xb9   : > { %v1161_v55 = vshrl.u32 %v3273_v33, %v1160_v51  ;;  %v1172_v11 = vshrl.u32 %v3277_v41, %v1160_v51  ;;  %v1164_v16 = vor.u32 %v1163_v36, %v1162_v20  ;;  %v1174_v22 = vshll.u32 %v3277_v41, %v1159_v56 }
  0xba   : > { %v1175_v21 = vshrl.u32 %v3278_v49, %v1160_v51  ;;  %v1107_v12 = vsub.s32 0, %v3892_v29  ;;  %v1167_v32 = vor.u32 %v1166_v47, %v1165_v58  ;;  %v1170_v24 = vor.u32 %v1169_v8, %v1168_v61 }
  0xbb   : > { %v1173_v6 = vor.u32 %v1172_v11, %v1171_v62  ;;  %vm1177_vm7 = vcmp.lt.s32.totalorder %v3886_v17, 1  ;;  %vm1180_vm8 = vcmp.lt.s32.totalorder %v3886_v17, 4  ;;  %v3903_v26 = vshll.u32 %v1153_v9, 8 }
  0xbc   : > { %v1496_v40 = vand.u32 2139095040, %v3877_v14  ;;  %v2955_v52 = vmin.u32 %v1107_v12, %v3892_v29  ;;  %vm1179_vm9 = vcmp.lt.s32.totalorder %v3886_v17, 3  ;;  %v1181_v13 = vsel %vm1177_vm7, %v1161_v55, %v1164_v16 }
  0xbd   : > { %v3143_v42 = vpop.eup %3142  ;;  %v1182_v34 = vsel %vm1180_vm8, %v1170_v24, 2102212464  ;;  %v1176_v27 = vor.u32 %v1175_v21, %v1174_v22  ;;  %v1186_v2 = vsel %vm1180_vm8, %v1173_v6, 920167782  ;;  %vm1178_vm10 = vcmp.lt.s32.totalorder %v3886_v17, 2 }
  0xbe   : > { %v3145_v10 = vpop.eup %3144  ;;  %v803_v30 = vxor.u32 2147483648, %v3143_v42  ;;  %v1183_v4 = vsel %vm1179_vm9, %v1167_v32, %v1182_v34  ;;  %v1109_v44 = vclz %v2955_v52  ;;  %v1185_v28 = vsel %vm1177_vm7, %v1164_v16, %v1167_v32 }
  0xbf   : > { %v800_v63 = vxor.u32 2147483648, %v3145_v10  ;;  %v1127_v5 = vsub.s32 4, %v3870_v48  ;;  %v1184_v46 = vsel %vm1178_vm10, %v1181_v13, %v1183_v4  ;;  %v1187_v53 = vsel %vm1179_vm9, %v1170_v24, %v1186_v2 }
  0xc0   : > { %v804_v45 = vsel %vm802_vm6, %v803_v30, %v3145_v10  ;;  %v1026_v59 = vsel %vm1024_vm0, %v803_v30, %v3145_v10  ;;  %v2956_v50 = vadd.s32 4294967294, %v1109_v44  ;;  %v1188_v56 = vsel %vm1178_vm10, %v1185_v28, %v1187_v53 }
  0xc1   : > { %v801_v31 = vsel %vm799_vm1, %v3143_v42, %v800_v63  ;;  %v1023_v7 = vsel %vm1021_vm15, %v3143_v42, %v800_v63  ;;  %v1189_v9 = vsel %vm1177_vm7, %v1167_v32, %v1170_v24  ;;  %v1190_v25 = vsel %vm1180_vm8, %v1176_v27, 1326507024 }
  0xc2   : > { %v805_v15 = vsel %vm798_vm3, %v801_v31, %v804_v45  ;;  %v1027_v54 = vsel %vm1020_vm4, %v1023_v7, %v1026_v59  ;;  %vm2957_vm13 = vcmp.lt.s32.totalorder %v2956_v50, 0  ;;  %v1191_v8 = vsel %vm1179_vm9, %v1173_v6, %v1190_v25 }
  0xc3   : > { %v806_v51 = vsel %vm795_vm5, nan, %v805_v15  ;;  %v1028_v20 = vsel %vm795_vm5, nan, %v1027_v54  ;;  %v1112_v61 = vsel %vm2957_vm13, 0, %v2956_v50  ;;  %v1192_v55 = vsel %vm1178_vm10, %v1189_v9, %v1191_v8 }
  0xc4   : > { %v813_v19 = vrot.slane %v806_v51, 7  ;;  %v810_v57 = vcombine.high %v806_v51, %v806_v51  ;;  %v1032_v58 = vcombine.low %v1028_v20, %v1028_v20  ;;  %1038 = vst [vmem:[%s3404_s26 + $0x38] sm:$0x70] %v1028_v20  ;;  %v1113_v62 = vsub.s32 32, %v1112_v61 }
  0xc5   : > { %v1114_v36 = vshll.u32 %v3892_v29, %v1112_v61  ;;  %v1117_v47 = vsub.s32 4294967266, %v1112_v61  ;;  %v3955_v11 = vmul.u32.u64.low %v3903_v26, %v1188_v56  ;;  %v3956_v16 = vmul.u32.u64.high %v3903_v26, %v1188_v56, %v3955_v11 }
  0xc6   : > { %821 = vst [vmem:[%s3404_s26 + $0x30] sm:$0xe] %v813_v19  ;;  %v814_v23 = vrot.slane %v810_v57, 7  ;;  %1037 = vst [vmem:[%s3404_s26 + $0x30] sm:$0x70] %v1032_v58  ;;  %v1115_v22 = vshrl.u32 %v1097_v43, %v1113_v62  ;;  %v3959_v12 = vmul.u32.u64.low %v3903_v26, %v1192_v55  ;;  %v3960_v32 = vmul.u32.u64.high %v3903_v26, %v1192_v55, %v3959_v12 }
  0xc7   : > { %v1118_v21 = vadd.s32 127, %v1117_v47  ;;  %v1497_v29 = vshrl.u32 %v1496_v40, 23  ;;  %vm1043_vm2 = vcmp.lt.s32.totalorder %v3515_v18, 0  ;;  %v1200_v42 = vmul.u32 %v3903_v26, %v1184_v46 }
  0xc8   : > { %822 = vst [vmem:[%s3404_s26 + $0x38] sm:$0xe] %v814_v23  ;;  %v1116_v24 = vor.u32 %v1115_v22, %v1114_v36  ;;  %v1128_v17 = vsel %vm1043_vm2, %v1127_v5, %v3870_v48  ;;  %v1203_v52 = vadd.s32 1, %v3956_v16  ;;  %vm1202_vm11 = vc.u32 %v3960_v32, %v3955_v11 }
  0xc9   : > { %v1119_v6 = vshll.u32 %v1118_v21, 23  ;;  %v3971_v34 = vmul.f32 8.0, %v3402_v1  ;;  %vm3975_vm12 = vcmp.le.f32.partialorder %v1041_v38, 0.7853982  ;;  %v1493_v10 = vand.u32 2147483647, %v3877_v14 }
  0xca   : > { %v1123_v13 = vcvt.s32.f32 %v1116_v24  ;;  %v1204_v26 = vsel %vm1202_vm11, %v1203_v52, %v3956_v16  ;;  %v2970_v48 = vadd.s32 4294967169, %v1497_v29  ;;  %v1130_v27 = vsel %vm3975_vm12, 0, %v1128_v17 }
  0xcb   : > { %v1120_v43 = vor.u32 4788187, %v1119_v6  ;;  %v1205_v4 = vadd.s32 %v1204_v26, %v1200_v42  ;;  %v1600_v28 = vand.u32 2139095040, %v3971_v34  ;;  %v1134_v45 = vadd.s32 3, %v1130_v27 }
  0xcc   : > { %v1503_v2 = vadd.s32 1, %v2970_v48  ;;  %v1500_v38 = vand.u32 8388607, %v1493_v10  ;;  %v1597_v31 = vand.u32 2147483647, %v3971_v34  ;;  %v3993_v54 = vmul.f32 16.0, %v3400_v0 }
  0xcd   : > { %v1121_v30 = vand.u32 2147483647, %v1120_v43  ;;  %v1206_v44 = vadd.s32 536870912, %v1205_v4  ;;  %v1601_v15 = vshrl.u32 %v1600_v28, 23  ;;  %v3998_v9 = vand.u32 3, %v1134_v45 }
  0xce   : > { %vm1504_vm14 = vcmp.gt.s32.totalorder %v1503_v2, 0  ;;  %v4000_v51 = vand.u32 3, %v1130_v27  ;;  %v1501_v19 = vor.u32 8388608, %v1500_v38  ;;  %v4006_v57 = vand.u32 8388607, %v1597_v31 }
  0xcf   : > { %v1124_v63 = vmul.f32 %v1123_v13, %v1121_v30  ;;  %v3986_v5 = vshrl.u32 %v1206_v44, 30  ;;  %v1505_v46 = vsel %vm1504_vm14, %v1503_v2, 0  ;;  %v2974_v23 = vadd.s32 4294967169, %v1601_v15 }
  0xd0   : > { %v1507_v7 = vand.u32 31, %v1505_v46  ;;  %v1506_v55 = vshrl.u32 %v1505_v46, 5  ;;  %v1201_v12 = vadd.s32 %v3955_v11, %v3960_v32  ;;  %v4020_v6 = vshll.u32 %v1501_v19, 8 }
  0xd1   : > { %v1125_v59 = vxor.u32 2147483648, %v1124_v63  ;;  %v1208_v53 = vshll.u32 %v3986_v5, 30  ;;  %vm1140_vm0 = vcmp.eq.s32.totalorder %v3998_v9, 2  ;;  %vm1367_vm1 = vcmp.eq.s32.totalorder %v4000_v51, 2 }
  0xd2   : > { %v1508_v20 = vsub.s32 32, %v1507_v7  ;;  %v1510_v58 = vshll.u32 %v3273_v33, %v1507_v7  ;;  %v1513_v62 = vshll.u32 %v3274_v35, %v1507_v7  ;;  %v1516_v8 = vshll.u32 %v3275_v37, %v1507_v7 }
  0xd3   : > { %v1126_v50 = vsel %vm1043_vm2, %v1125_v59, %v1124_v63  ;;  %v4002_v25 = vsub.s32 %v1205_v4, %v1208_v53  ;;  %v1519_v22 = vshll.u32 %v3276_v39, %v1507_v7  ;;  %v1935_v43 = vand.u32 2147483647, %v3993_v54 }
  0xd4   : > { %v1129_v56 = vsel %vm3975_vm12, %v3515_v18, %v1126_v50  ;;  %v1511_v61 = vshrl.u32 %v3274_v35, %v1508_v20  ;;  %v1514_v47 = vshrl.u32 %v3275_v37, %v1508_v20  ;;  %v1517_v16 = vshrl.u32 %v3276_v39, %v1508_v20 }
  0xd5   : > { %3146 = vcosq.f32 %v1129_v56  ;;  %v1211_v36 = vsub.s32 0, %v4002_v25  ;;  %v1520_v21 = vshrl.u32 %v3277_v41, %v1508_v20  ;;  %v1509_v24 = vshrl.u32 %v3273_v33, %v1508_v20 }
  0xd6   : > { %3148 = vsinq.f32 %v1129_v56  ;;  %v1512_v42 = vor.u32 %v1511_v61, %v1510_v58  ;;  %v1515_v17 = vor.u32 %v1514_v47, %v1513_v62  ;;  %vm1137_vm15 = vcmp.eq.s32.totalorder %v3998_v9, 0 }
  0xd7   : > { %v2959_v29 = vmin.u32 %v1211_v36, %v4002_v25  ;;  %v1521_v52 = vor.u32 %v1520_v21, %v1519_v22  ;;  %vm1364_vm3 = vcmp.eq.s32.totalorder %v4000_v51, 0  ;;  %v1518_v11 = vor.u32 %v1517_v16, %v1516_v8 }
  0xd8   : > { %v1605_v32 = vor.u32 8388608, %v4006_v57  ;;  %v1607_v40 = vadd.s32 1, %v2974_v23  ;;  %vm1136_vm4 = vcmp.lt.s32.totalorder %v3998_v9, 2  ;;  %vm1363_vm5 = vcmp.lt.s32.totalorder %v4000_v51, 2 }
  0xd9   : > { %v1213_v13 = vclz %v2959_v29  ;;  %v1522_v26 = vshll.u32 %v3277_v41, %v1507_v7  ;;  %v1523_v48 = vshrl.u32 %v3278_v49, %v1508_v20  ;;  %vm1525_vm6 = vcmp.lt.s32.totalorder %v1506_v55, 1 }
  0xda   : > { %vm1526_vm7 = vcmp.lt.s32.totalorder %v1506_v55, 2  ;;  %vm1133_vm8 = vweird.f32 %v3515_v18  ;;  %vm1527_vm9 = vcmp.lt.s32.totalorder %v1506_v55, 3  ;;  %vm1528_vm10 = vcmp.lt.s32.totalorder %v1506_v55, 4 }
  0xdb   : > { %v2960_v30 = vadd.s32 4294967294, %v1213_v13  ;;  %v1529_v27 = vsel %vm1525_vm6, %v1509_v24, %v1512_v42  ;;  %v1524_v4 = vor.u32 %v1523_v48, %v1522_v26  ;;  %v1530_v2 = vsel %vm1528_vm10, %v1518_v11, 2102212464 }
  0xdc   : > { %v1533_v63 = vsel %vm1525_vm6, %v1512_v42, %v1515_v17  ;;  %v1534_v44 = vsel %vm1528_vm10, %v1521_v52, 920167782  ;;  %vm1147_vm13 = vcmp.lt.s32.totalorder %v3783_v3, 0  ;;  %v1531_v28 = vsel %vm1527_vm9, %v1515_v17, %v1530_v2 }
  0xdd   : > { %vm2961_vm2 = vcmp.lt.s32.totalorder %v2960_v30, 0  ;;  %v1535_v45 = vsel %vm1527_vm9, %v1518_v11, %v1534_v44  ;;  %v1537_v38 = vsel %vm1525_vm6, %v1515_v17, %v1518_v11  ;;  %v1532_v46 = vsel %vm1526_vm7, %v1529_v27, %v1531_v28 }
  0xde   : > { %v1216_v59 = vsel %vm2961_vm2, 0, %v2960_v30  ;;  %v1536_v7 = vsel %vm1526_vm7, %v1533_v63, %v1535_v45  ;;  %v1538_v50 = vsel %vm1528_vm10, %v1524_v4, 1326507024  ;;  %vm4042_vm11 = vcmp.le.f32.partialorder %v1145_v60, 0.7853982 }
  0xdf   : > { %v1217_v53 = vsub.s32 32, %v1216_v59  ;;  %v1218_v15 = vshll.u32 %v4002_v25, %v1216_v59  ;;  %v1221_v56 = vsub.s32 4294967266, %v1216_v59  ;;  %v1539_v20 = vsel %vm1527_vm9, %v1521_v52, %v1538_v50 }
  0xe0   : > { %v1231_v61 = vsub.s32 4, %v3986_v5  ;;  %v1540_v62 = vsel %vm1526_vm7, %v1537_v38, %v1539_v20  ;;  %v4049_v36 = vmul.u32.u64.low %v4020_v6, %v1536_v7  ;;  %v4050_v47 = vmul.u32.u64.high %v4020_v6, %v1536_v7, %v4049_v36 }
  0xe1   : > { %v1219_v23 = vshrl.u32 %v1201_v12, %v1217_v53  ;;  %v1222_v16 = vadd.s32 127, %v1221_v56  ;;  %vm1608_vm12 = vcmp.gt.s32.totalorder %v1607_v40, 0  ;;  %v1548_v29 = vmul.u32 %v4020_v6, %v1532_v46 }
  0xe2   : > { %v3147_v19 = vpop.eup %3146  ;;  %v4054_v60 = vmul.u32.u64.low %v4020_v6, %v1540_v62  ;;  %v4055_v21 = vmul.u32.u64.high %v4020_v6, %v1540_v62, %v4054_v60  ;;  %v1551_v13 = vadd.s32 1, %v4050_v47  ;;  %v1609_v11 = vsel %vm1608_vm12, %v1607_v40, 0 }
  0xe3   : > { %v3149_v25 = vpop.eup %3148  ;;  %v1141_v8 = vxor.u32 2147483648, %v3147_v19  ;;  %v1220_v24 = vor.u32 %v1219_v23, %v1218_v15  ;;  %v1223_v42 = vshll.u32 %v1222_v16, 23  ;;  %v1232_v4 = vsel %vm1147_vm13, %v1231_v61, %v3986_v5 }
  0xe4   : > { %v1138_v22 = vxor.u32 2147483648, %v3149_v25  ;;  %vm1550_vm14 = vc.u32 %v4055_v21, %v4049_v36  ;;  %v1611_v45 = vand.u32 31, %v1609_v11  ;;  %v1938_v38 = vand.u32 2139095040, %v3993_v54 }
  0xe5   : > { %v1142_v55 = vsel %vm1140_vm0, %v1141_v8, %v3149_v25  ;;  %v1369_v17 = vsel %vm1367_vm1, %v1141_v8, %v3149_v25  ;;  %v1224_v26 = vor.u32 4788187, %v1223_v42  ;;  %v1227_v48 = vcvt.s32.f32 %v1220_v24 }
  0xe6   : > { %v1139_v12 = vsel %vm1137_vm15, %v3147_v19, %v1138_v22  ;;  %v1366_v52 = vsel %vm1364_vm3, %v3147_v19, %v1138_v22  ;;  %v1552_v28 = vsel %vm1550_vm14, %v1551_v13, %v4050_v47  ;;  %v1234_v18 = vsel %vm4042_vm11, 0, %v1232_v4 }
  0xe7   : > { %v1143_v6 = vsel %vm1136_vm4, %v1139_v12, %v1142_v55  ;;  %v1370_v30 = vsel %vm1363_vm5, %v1366_v52, %v1369_v17  ;;  %v1225_v63 = vand.u32 2147483647, %v1224_v26  ;;  %v1553_v46 = vadd.s32 %v1552_v28, %v1548_v29 }
  0xe8   : > { %v1144_v27 = vsel %vm1133_vm8, nan, %v1143_v6  ;;  %v1371_v40 = vsel %vm1133_vm8, nan, %v1370_v30  ;;  %v1612_v50 = vsub.s32 32, %v1611_v45  ;;  %v1614_v53 = vshll.u32 %v3273_v33, %v1611_v45 }
  0xe9   : > { %v1253_v9 = vrot.slane %v1144_v27, 1  ;;  %v1251_v2 = vcombine.high %v1144_v27, %v1144_v27  ;;  %v1479_v51 = vrot.slane %v1371_v40, 6  ;;  %v1477_v44 = vcombine.high %v1371_v40, %v1371_v40 }
  0xea   : > { %v1228_v59 = vmul.f32 %v1227_v48, %v1225_v63  ;;  %v1617_v15 = vshll.u32 %v3274_v35, %v1611_v45  ;;  %v1554_v20 = vadd.s32 536870912, %v1553_v46  ;;  %v1610_v19 = vshrl.u32 %v1609_v11, 5 }
  0xeb   : > { %1261 = vst [vmem:[%s3404_s26 + $0x40] ss:$-28 sps:$4 sm:$0x83] %v1253_v9   ;;  %v1254_v5 = vrot.slane %v1251_v2, 1  ;;  %1487 = vst [vmem:[%s3404_s26 + $0x40] sm:$0x1c] %v1479_v51  ;;  %v1623_v61 = vshll.u32 %v3276_v39, %v1611_v45  ;;  %v1615_v62 = vshrl.u32 %v3274_v35, %v1612_v50  ;;  %v1618_v47 = vshrl.u32 %v3275_v37, %v1612_v50 }
  0xec   : > { %v1480_v7 = vrot.slane %v1477_v44, 6  ;;  %v1229_v56 = vxor.u32 2147483648, %v1228_v59  ;;  %v1620_v25 = vshll.u32 %v3275_v37, %v1611_v45  ;;  %v1621_v8 = vshrl.u32 %v3276_v39, %v1612_v50 }
  0xed   : > { %1262 = vst [vmem:[%s3404_s26 + $0x48] ss:$-28 sps:$4 sm:$0x83] %v1254_v5   ;;  %v1238_v16 = vadd.s32 3, %v1234_v18  ;;  %v1555_v22 = vshrl.u32 %v1554_v20, 30  ;;  %v1624_v60 = vshrl.u32 %v3277_v41, %v1612_v50  ;;  %v1616_v55 = vor.u32 %v1615_v62, %v1614_v53 }
  0xee   : > { %1488 = vst [vmem:[%s3404_s26 + $0x48] sm:$0x1c] %v1480_v7  ;;  %v1230_v23 = vsel %vm1147_vm13, %v1229_v56, %v1228_v59  ;;  %v1619_v24 = vor.u32 %v1618_v47, %v1617_v15  ;;  %v1626_v42 = vshll.u32 %v3277_v41, %v1611_v45  ;;  %vm1629_vm0 = vcmp.lt.s32.totalorder %v1610_v19, 1 }
  0xef   : > { %v1233_v29 = vsel %vm4042_vm11, %v3783_v3, %v1230_v23  ;;  %v1556_v17 = vshll.u32 %v1555_v22, 30  ;;  %v1625_v12 = vor.u32 %v1624_v60, %v1623_v61  ;;  %v1622_v52 = vor.u32 %v1621_v8, %v1620_v25 }
  0xf0   : > { %3150 = vcosq.f32 %v1233_v29  ;;  %v1627_v13 = vshrl.u32 %v3278_v49, %v1612_v50  ;;  %vm1632_vm1 = vcmp.lt.s32.totalorder %v1610_v19, 4  ;;  %v1613_v6 = vshrl.u32 %v3273_v33, %v1612_v50 }
  0xf1   : > { %3152 = vsinq.f32 %v1233_v29  ;;  %v4103_v11 = vsub.s32 %v1553_v46, %v1556_v17  ;;  %vm1631_vm15 = vcmp.lt.s32.totalorder %v1610_v19, 3  ;;  %v4108_v58 = vshll.u32 %v1605_v32, 8 }
  0xf2   : > { %v1628_v26 = vor.u32 %v1627_v13, %v1626_v42  ;;  %vm1630_vm3 = vcmp.lt.s32.totalorder %v1610_v19, 2  ;;  %v1637_v48 = vsel %vm1629_vm0, %v1616_v55, %v1619_v24  ;;  %v1939_v30 = vshrl.u32 %v1938_v38, 23 }
  0xf3   : > { %v1465_v27 = vand.u32 3, %v1234_v18  ;;  %v1559_v4 = vsub.s32 0, %v4103_v11  ;;  %v1634_v40 = vsel %vm1632_vm1, %v1622_v52, 2102212464  ;;  %v1638_v9 = vsel %vm1632_vm1, %v1625_v12, 920167782 }
  0xf4   : > { %v1239_v2 = vand.u32 3, %v1238_v16  ;;  %v1639_v63 = vsel %vm1631_vm15, %v1622_v52, %v1638_v9  ;;  %v1641_v51 = vsel %vm1629_vm0, %v1619_v24, %v1622_v52  ;;  %v1642_v57 = vsel %vm1632_vm1, %v1628_v26, 1326507024 }
  0xf5   : > { %v2971_v32 = vmin.u32 %v1559_v4, %v4103_v11  ;;  %v1633_v44 = vsel %vm1629_vm0, %v1613_v6, %v1616_v55  ;;  %v1640_v28 = vsel %vm1630_vm3, %v1637_v48, %v1639_v63  ;;  %v1643_v45 = vsel %vm1631_vm15, %v1625_v12, %v1642_v57 }
  0xf6   : > { %v1635_v38 = vsel %vm1631_vm15, %v1619_v24, %v1634_v40  ;;  %v1644_v5 = vsel %vm1630_vm3, %v1641_v51, %v1643_v45  ;;  %v4124_v59 = vmul.u32.u64.low %v4108_v58, %v1640_v28  ;;  %v4125_v18 = vmul.u32.u64.high %v4108_v58, %v1640_v28, %v4124_v59 }
  0xf7   : > { %vm1237_vm4 = vweird.f32 %v3783_v3  ;;  %vm4131_vm5 = vcmp.le.f32.partialorder %v1493_v10, 0.7853982  ;;  %vm1495_vm6 = vcmp.lt.s32.totalorder %v3877_v14, 0  ;;  %v1561_v7 = vclz %v2971_v32 }
  0xf8   : > { %v1579_v50 = vsub.s32 4, %v1555_v22  ;;  %vm1466_vm7 = vcmp.lt.s32.totalorder %v1465_v27, 2  ;;  %v4137_v53 = vmul.u32.u64.low %v4108_v58, %v1644_v5  ;;  %v4138_v15 = vmul.u32.u64.high %v4108_v58, %v1644_v5, %v4137_v53 }
  0xf9   : > { %v4142_v56 = vand.u32 8388607, %v1935_v43  ;;  %vm1467_vm8 = vcmp.eq.s32.totalorder %v1465_v27, 0  ;;  %v2972_v20 = vadd.s32 4294967294, %v1561_v7  ;;  %v1636_v10 = vsel %vm1630_vm3, %v1633_v44, %v1635_v38 }
  0xfa   : > { %v2986_v61 = vadd.s32 4294967169, %v1939_v30  ;;  %vm1240_vm9 = vcmp.lt.s32.totalorder %v1239_v2, 2  ;;  %vm1241_vm10 = vcmp.eq.s32.totalorder %v1239_v2, 0  ;;  %vm1470_vm13 = vcmp.eq.s32.totalorder %v1465_v27, 2 }
  0xfb   : > { %v1655_v62 = vadd.s32 1, %v4125_v18  ;;  %v1549_v47 = vadd.s32 %v4049_v36, %v4055_v21  ;;  %vm2973_vm2 = vcmp.lt.s32.totalorder %v2972_v20, 0  ;;  %v1580_v25 = vsel %vm1495_vm6, %v1579_v50, %v1555_v22 }
  0xfc   : > { %v1945_v8 = vadd.s32 1, %v2986_v61  ;;  %vm1244_vm11 = vcmp.eq.s32.totalorder %v1239_v2, 2  ;;  %v1564_v16 = vsel %vm2973_vm2, 0, %v2972_v20  ;;  %v1652_v19 = vmul.u32 %v4108_v58, %v1636_v10 }
  0xfd   : > { %v3151_v23 = vpop.eup %3150  ;;  %vm1654_vm12 = vc.u32 %v4138_v15, %v4124_v59  ;;  %v1565_v55 = vsub.s32 32, %v1564_v16  ;;  %v1566_v24 = vshll.u32 %v4103_v11, %v1564_v16  ;;  %v1569_v42 = vsub.s32 4294967266, %v1564_v16 }
  0xfe   : > { %v3153_v60 = vpop.eup %3152  ;;  %v1245_v29 = vxor.u32 2147483648, %v3151_v23  ;;  %v1582_v21 = vsel %vm4131_vm5, 0, %v1580_v25  ;;  %v1656_v22 = vsel %vm1654_vm12, %v1655_v62, %v4125_v18  ;;  %vm1946_vm14 = vcmp.gt.s32.totalorder %v1945_v8, 0 }
  0xff   : > { %v1242_v36 = vxor.u32 2147483648, %v3153_v60  ;;  %v1567_v52 = vshrl.u32 %v1549_v47, %v1565_v55  ;;  %v1570_v13 = vadd.s32 127, %v1569_v42  ;;  %v1657_v26 = vadd.s32 %v1656_v22, %v1652_v19 }
 0x100   : > { %v1246_v17 = vsel %vm1244_vm11, %v1245_v29, %v3153_v60  ;;  %v1472_v12 = vsel %vm1470_vm13, %v1245_v29, %v3153_v60  ;;  %v1947_v48 = vsel %vm1946_vm14, %v1945_v8, 0  ;;  %v1586_v51 = vadd.s32 3, %v1582_v21 }
 0x101   : > { %v1243_v6 = vsel %vm1241_vm10, %v3151_v23, %v1242_v36  ;;  %v1469_v58 = vsel %vm1467_vm8, %v3151_v23, %v1242_v36  ;;  %v1568_v4 = vor.u32 %v1567_v52, %v1566_v24  ;;  %v1571_v40 = vshll.u32 %v1570_v13, 23 }
 0x102   : > { %v1247_v11 = vsel %vm1240_vm9, %v1243_v6, %v1246_v17  ;;  %v1473_v30 = vsel %vm1466_vm7, %v1469_v58, %v1472_v12  ;;  %v1658_v57 = vadd.s32 536870912, %v1657_v26  ;;  %v1949_v5 = vand.u32 31, %v1947_v48 }
 0x103   : > { %v1248_v9 = vsel %vm1237_vm4, nan, %v1247_v11  ;;  %v1474_v63 = vsel %vm1237_vm4, nan, %v1473_v30  ;;  %v1572_v27 = vor.u32 4788187, %v1571_v40  ;;  %v1575_v45 = vcvt.s32.f32 %v1568_v4 }
 0x104   : > { %v1255_v32 = vrot.slane %v1248_v9, 1  ;;  %v1252_v44 = vcombine.high %v1248_v9, %v1248_v9  ;;  %v1481_v2 = vrot.slane %v1474_v63, 6  ;;  %v1478_v28 = vcombine.high %v1474_v63, %v1474_v63 }
 0x105   : > { %v4166_v38 = vshrl.u32 %v1658_v57, 30  ;;  %v1573_v50 = vand.u32 2147483647, %v1572_v27  ;;  %v1950_v53 = vsub.s32 32, %v1949_v5  ;;  %v4173_v20 = vand.u32 3, %v1586_v51 }
 0x106   : > { %1263 = vst [vmem:[%s3404_s26 + $0x50] ss:$-28 sps:$4 sm:$0x83] %v1255_v32   ;;  %v1256_v18 = vrot.slane %v1252_v44, 1  ;;  %1489 = vst [vmem:[%s3404_s26 + $0x50] sm:$0x1c] %v1481_v2  ;;  %v1952_v25 = vshll.u32 %v3273_v33, %v1949_v5  ;;  %v1955_v23 = vshll.u32 %v3274_v35, %v1949_v5  ;;  %v1961_v19 = vshll.u32 %v3276_v39, %v1949_v5 }
 0x107   : > { %v1482_v7 = vrot.slane %v1478_v28, 6  ;;  %v1660_v3 = vshll.u32 %v4166_v38, 30  ;;  %v1943_v10 = vor.u32 8388608, %v4142_v56  ;;  %v1576_v61 = vmul.f32 %v1575_v45, %v1573_v50 }
 0x108   : > { %1264 = vst [vmem:[%s3404_s26 + $0x58] ss:$-28 sps:$4 sm:$0x83] %v1256_v18   ;;  %v1948_v47 = vshrl.u32 %v1947_v48, 5  ;;  %v1953_v8 = vshrl.u32 %v3274_v35, %v1950_v53  ;;  %v1956_v16 = vshrl.u32 %v3275_v37, %v1950_v53  ;;  %v1958_v55 = vshll.u32 %v3275_v37, %v1949_v5 }
 0x109   : > { %1490 = vst [vmem:[%s3404_s26 + $0x58] sm:$0x1c] %v1482_v7  ;;  %v4176_v62 = vsub.s32 %v1657_v26, %v1660_v3  ;;  %v1577_v60 = vxor.u32 2147483648, %v1576_v61  ;;  %v1959_v56 = vshrl.u32 %v3276_v39, %v1950_v53  ;;  %v4186_v24 = vand.u32 3, %v1582_v21 }
 0x10a   : > { %v1962_v42 = vshrl.u32 %v3277_v41, %v1950_v53  ;;  %v4189_v36 = vshll.u32 %v1943_v10, 8  ;;  %v4192_v22 = vmul.f32 16.0, %v3402_v1  ;;  %v1653_v12 = vadd.s32 %v4124_v59, %v4138_v15 }
 0x10b   : > { %v1663_v29 = vsub.s32 0, %v4176_v62  ;;  %v1578_v17 = vsel %vm1495_vm6, %v1577_v60, %v1576_v61  ;;  %v1951_v13 = vshrl.u32 %v3273_v33, %v1950_v53  ;;  %v1954_v6 = vor.u32 %v1953_v8, %v1952_v25 }
 0x10c   : > { %v1581_v21 = vsel %vm4131_vm5, %v3877_v14, %v1578_v17  ;;  %v1957_v58 = vor.u32 %v1956_v16, %v1955_v23  ;;  %v1963_v26 = vor.u32 %v1962_v42, %v1961_v19  ;;  %vm1599_vm0 = vcmp.lt.s32.totalorder %v3971_v34, 0 }
 0x10d   : > { %v2975_v52 = vmin.u32 %v1663_v29, %v4176_v62  ;;  %3154 = vcosq.f32 %v1581_v21  ;;  %v1960_v11 = vor.u32 %v1959_v56, %v1958_v55  ;;  %vm1967_vm1 = vcmp.lt.s32.totalorder %v1948_v47, 1 }
 0x10e   : > { %3156 = vsinq.f32 %v1581_v21  ;;  %v1964_v59 = vshll.u32 %v3277_v41, %v1949_v5  ;;  %v1965_v15 = vshrl.u32 %v3278_v49, %v1950_v53  ;;  %vm1968_vm15 = vcmp.lt.s32.totalorder %v1948_v47, 2 }
 0x10f   : > { %v1665_v48 = vclz %v2975_v52  ;;  %vm1969_vm3 = vcmp.lt.s32.totalorder %v1948_v47, 3  ;;  %vm1970_vm4 = vcmp.lt.s32.totalorder %v1948_v47, 4  ;;  %v1971_v46 = vsel %vm1967_vm1, %v1951_v13, %v1954_v6 }
 0x110   : > { %v1966_v4 = vor.u32 %v1965_v15, %v1964_v59  ;;  %v1972_v40 = vsel %vm1970_vm4, %v1960_v11, 2102212464  ;;  %v1975_v9 = vsel %vm1967_vm1, %v1954_v6, %v1957_v58  ;;  %v1976_v63 = vsel %vm1970_vm4, %v1963_v26, 920167782 }
 0x111   : > { %v2976_v30 = vadd.s32 4294967294, %v1665_v48  ;;  %v1973_v51 = vsel %vm1969_vm3, %v1957_v58, %v1972_v40  ;;  %v1977_v57 = vsel %vm1969_vm3, %v1960_v11, %v1976_v63  ;;  %v1979_v32 = vsel %vm1967_vm1, %v1957_v58, %v1960_v11 }
 0x112   : > { %v1683_v2 = vsub.s32 4, %v4166_v38  ;;  %v1978_v28 = vsel %vm1968_vm15, %v1975_v9, %v1977_v57  ;;  %v1980_v27 = vsel %vm1970_vm4, %v1966_v4, 1326507024  ;;  %v1974_v50 = vsel %vm1968_vm15, %v1971_v46, %v1973_v51 }
 0x113   : > { %vm2977_vm5 = vcmp.lt.s32.totalorder %v2976_v30, 0  ;;  %v1981_v7 = vsel %vm1969_vm3, %v1963_v26, %v1980_v27  ;;  %v4218_v53 = vmul.u32.u64.low %v4189_v36, %v1978_v28  ;;  %v4219_v10 = vmul.u32.u64.high %v4189_v36, %v1978_v28, %v4218_v53 }
 0x114   : > { %v1668_v44 = vsel %vm2977_vm5, 0, %v2976_v30  ;;  %v1982_v3 = vsel %vm1968_vm15, %v1979_v32, %v1981_v7  ;;  %vm1585_vm6 = vweird.f32 %v3877_v14  ;;  %vm1588_vm7 = vcmp.lt.s32.totalorder %v4173_v20, 2 }
 0x115   : > { %v1669_v45 = vsub.s32 32, %v1668_v44  ;;  %v1670_v5 = vshll.u32 %v4176_v62, %v1668_v44  ;;  %v1673_v18 = vsub.s32 4294967266, %v1668_v44  ;;  %vm4230_vm8 = vcmp.le.f32.partialorder %v1597_v31, 0.7853982 }
 0x116   : > { %v4224_v8 = vmul.u32.u64.low %v4189_v36, %v1982_v3  ;;  %v4225_v23 = vmul.u32.u64.high %v4189_v36, %v1982_v3, %v4224_v8  ;;  %v1684_v47 = vsel %vm1599_vm0, %v1683_v2, %v4166_v38  ;;  %v2042_v16 = vand.u32 2139095040, %v4192_v22 }
 0x117   : > { %v1671_v61 = vshrl.u32 %v1653_v12, %v1669_v45  ;;  %v1674_v25 = vadd.s32 127, %v1673_v18  ;;  %vm1589_vm9 = vcmp.eq.s32.totalorder %v4173_v20, 0  ;;  %v1990_v29 = vmul.u32 %v4189_v36, %v1974_v50 }
 0x118   : > { %vm1592_vm10 = vcmp.eq.s32.totalorder %v4173_v20, 2  ;;  %vm1811_vm13 = vcmp.lt.s32.totalorder %v4186_v24, 2  ;;  %v1993_v31 = vadd.s32 1, %v4219_v10  ;;  %v2043_v55 = vshrl.u32 %v2042_v16, 23 }
 0x119   : > { %v1672_v19 = vor.u32 %v1671_v61, %v1670_v5  ;;  %v1675_v60 = vshll.u32 %v1674_v25, 23  ;;  %v1686_v38 = vsel %vm4230_vm8, 0, %v1684_v47  ;;  %vm1992_vm2 = vc.u32 %v4225_v23, %v4218_v53 }
 0x11a   : > { %v3155_v17 = vpop.eup %3154  ;;  %vm1812_vm11 = vcmp.eq.s32.totalorder %v4186_v24, 0  ;;  %vm1815_vm12 = vcmp.eq.s32.totalorder %v4186_v24, 2  ;;  %v1994_v36 = vsel %vm1992_vm2, %v1993_v31, %v4219_v10  ;;  %v2990_v12 = vadd.s32 4294967169, %v2043_v55 }
 0x11b   : > { %v1676_v56 = vor.u32 4788187, %v1675_v60  ;;  %v1679_v42 = vcvt.s32.f32 %v1672_v19  ;;  %v3157_v52 = vpop.eup %3156  ;;  %v1593_v13 = vxor.u32 2147483648, %v3155_v17  ;;  %v1995_v6 = vadd.s32 %v1994_v36, %v1990_v29 }
 0x11c   : > { %v4251_v58 = vmul.f32 32.0, %v3400_v0  ;;  %v1590_v26 = vxor.u32 2147483648, %v3157_v52  ;;  %v1690_v48 = vadd.s32 3, %v1686_v38  ;;  %v2039_v11 = vand.u32 2147483647, %v4192_v22 }
 0x11d   : > { %v1677_v21 = vand.u32 2147483647, %v1676_v56  ;;  %v2049_v59 = vadd.s32 1, %v2990_v12  ;;  %v1594_v15 = vsel %vm1592_vm10, %v1593_v13, %v3157_v52  ;;  %v1817_v46 = vsel %vm1815_vm12, %v1593_v13, %v3157_v52 }
 0x11e   : > { %v1996_v4 = vadd.s32 536870912, %v1995_v6  ;;  %v1591_v40 = vsel %vm1589_vm9, %v3155_v17, %v1590_v26  ;;  %v1814_v9 = vsel %vm1812_vm11, %v3155_v17, %v1590_v26  ;;  %v4260_v0 = vand.u32 3, %v1686_v38 }
 0x11f   : > { %v1680_v30 = vmul.f32 %v1679_v42, %v1677_v21  ;;  %vm2050_vm14 = vcmp.gt.s32.totalorder %v2049_v59, 0  ;;  %v1595_v63 = vsel %vm1588_vm7, %v1591_v40, %v1594_v15  ;;  %v1818_v57 = vsel %vm1811_vm13, %v1814_v9, %v1817_v46 }
 0x120   : > { %v4266_v32 = vshrl.u32 %v1996_v4, 30  ;;  %v1596_v44 = vsel %vm1585_vm6, nan, %v1595_v63  ;;  %v1819_v2 = vsel %vm1585_vm6, nan, %v1818_v57  ;;  %v2046_v28 = vand.u32 8388607, %v2039_v11 }
 0x121   : > { %v1681_v51 = vxor.u32 2147483648, %v1680_v30  ;;  %v2051_v27 = vsel %vm2050_vm14, %v2049_v59, 0  ;;  %v1705_v20 = vrot.slane %v1596_v44, 3  ;;  %v1703_v45 = vcombine.high %v1596_v44, %v1596_v44  ;;  %1929 = vst [vmem:[%s3404_s26 + $0x60] sm:$0x7] %v1819_v2 }
 0x122   : > { %v1925_v5 = vcombine.high %v1819_v2, %v1819_v2  ;;  %v1998_v14 = vshll.u32 %v4266_v32, 30  ;;  %v4281_v7 = vshrl.u32 %v2051_v27, 5  ;;  %v2390_v50 = vand.u32 2139095040, %v4251_v58 }
 0x123   : > { %v1682_v24 = vsel %vm1599_vm0, %v1681_v51, %v1680_v30  ;;  %1713 = vst [vmem:[%s3404_s26 + $0x40] sm:$0xe0] %v1705_v20  ;;  %v1706_v3 = vrot.slane %v1703_v45, 3  ;;  %v4285_v10 = vand.u32 3, %v1690_v48  ;;  %v2053_v61 = vand.u32 31, %v2051_v27 }
 0x124   : > { %v1685_v18 = vsel %vm4230_vm8, %v3971_v34, %v1682_v24  ;;  %1930 = vst [vmem:[%s3404_s26 + $0x68] sm:$0x7] %v1925_v5  ;;  %v4288_v25 = vsub.s32 %v1995_v6, %v1998_v14  ;;  %v2047_v8 = vor.u32 8388608, %v2046_v28  ;;  %v2387_v62 = vand.u32 2147483647, %v4251_v58 }
 0x125   : > { %3158 = vcosq.f32 %v1685_v18  ;;  %1714 = vst [vmem:[%s3404_s26 + $0x48] sm:$0xe0] %v1706_v3  ;;  %v1991_v47 = vadd.s32 %v4218_v53, %v4225_v23  ;;  %v2054_v16 = vsub.s32 32, %v2053_v61  ;;  %v2056_v19 = vshll.u32 %v3273_v33, %v2053_v61 }
 0x126   : > { %3160 = vsinq.f32 %v1685_v18  ;;  %v2059_v60 = vshll.u32 %v3274_v35, %v2053_v61  ;;  %v2001_v29 = vsub.s32 0, %v4288_v25  ;;  %v2062_v31 = vshll.u32 %v3275_v37, %v2053_v61 }
 0x127   : > { %vm2071_vm0 = vcmp.lt.s32.totalorder %v4281_v7, 1  ;;  %v2391_v55 = vshrl.u32 %v2390_v50, 23  ;;  %v2057_v56 = vshrl.u32 %v3274_v35, %v2054_v16  ;;  %v2060_v42 = vshrl.u32 %v3275_v37, %v2054_v16 }
 0x128   : > { %v2063_v38 = vshrl.u32 %v3276_v39, %v2054_v16  ;;  %v2065_v53 = vshll.u32 %v3276_v39, %v2053_v61  ;;  %vm1696_vm1 = vcmp.eq.s32.totalorder %v4285_v10, 2  ;;  %vm1918_vm15 = vcmp.eq.s32.totalorder %v4260_v0, 2 }
 0x129   : > { %vm1937_vm3 = vcmp.lt.s32.totalorder %v3993_v54, 0  ;;  %v2987_v23 = vmin.u32 %v2001_v29, %v4288_v25  ;;  %v2055_v17 = vshrl.u32 %v3273_v33, %v2054_v16  ;;  %v2066_v36 = vshrl.u32 %v3277_v41, %v2054_v16 }
 0x12a   : > { %v2068_v12 = vshll.u32 %v3277_v41, %v2053_v61  ;;  %vm1693_vm4 = vcmp.eq.s32.totalorder %v4285_v10, 0  ;;  %vm1915_vm5 = vcmp.eq.s32.totalorder %v4260_v0, 0  ;;  %v2058_v52 = vor.u32 %v2057_v56, %v2056_v19 }
 0x12b   : > { %v2061_v13 = vor.u32 %v2060_v42, %v2059_v60  ;;  %v2064_v21 = vor.u32 %v2063_v38, %v2062_v31  ;;  %v2069_v6 = vshrl.u32 %v3278_v49, %v2054_v16  ;;  %vm1692_vm6 = vcmp.lt.s32.totalorder %v4285_v10, 2 }
 0x12c   : > { %vm1914_vm7 = vcmp.lt.s32.totalorder %v4260_v0, 2  ;;  %v2003_v26 = vclz %v2987_v23  ;;  %v2021_v48 = vsub.s32 4, %v4266_v32  ;;  %v4316_v59 = vshll.u32 %v2047_v8, 8 }
 0x12d   : > { %v3002_v15 = vadd.s32 4294967169, %v2391_v55  ;;  %vm1689_vm8 = vweird.f32 %v3971_v34  ;;  %v2067_v30 = vor.u32 %v2066_v36, %v2065_v53  ;;  %v2070_v46 = vor.u32 %v2069_v6, %v2068_v12 }
 0x12e   : > { %vm2072_vm9 = vcmp.lt.s32.totalorder %v4281_v7, 2  ;;  %vm2073_vm10 = vcmp.lt.s32.totalorder %v4281_v7, 3  ;;  %v2988_v4 = vadd.s32 4294967294, %v2003_v26  ;;  %vm2074_vm13 = vcmp.lt.s32.totalorder %v4281_v7, 4 }
 0x12f   : > { %v2075_v40 = vsel %vm2071_vm0, %v2055_v17, %v2058_v52  ;;  %v2079_v9 = vsel %vm2071_vm0, %v2058_v52, %v2061_v13  ;;  %v2076_v63 = vsel %vm2074_vm13, %v2064_v21, 2102212464  ;;  %v2080_v51 = vsel %vm2074_vm13, %v2067_v30, 920167782 }
 0x130   : > { %v2083_v57 = vsel %vm2071_vm0, %v2061_v13, %v2064_v21  ;;  %v2084_v44 = vsel %vm2074_vm13, %v2070_v46, 1326507024  ;;  %vm2989_vm2 = vcmp.lt.s32.totalorder %v2988_v4, 0  ;;  %v2077_v2 = vsel %vm2073_vm10, %v2061_v13, %v2076_v63 }
 0x131   : > { %v2081_v28 = vsel %vm2073_vm10, %v2064_v21, %v2080_v51  ;;  %v2085_v27 = vsel %vm2073_vm10, %v2067_v30, %v2084_v44  ;;  %v2006_v20 = vsel %vm2989_vm2, 0, %v2988_v4  ;;  %v2078_v45 = vsel %vm2072_vm9, %v2075_v40, %v2077_v2 }
 0x132   : > { %v2086_v24 = vsel %vm2072_vm9, %v2083_v57, %v2085_v27  ;;  %v2397_v5 = vadd.s32 1, %v3002_v15  ;;  %v3159_v18 = vpop.eup %3158  ;;  %v2007_v14 = vsub.s32 32, %v2006_v20  ;;  %v2008_v50 = vshll.u32 %v4288_v25, %v2006_v20 }
 0x133   : > { %v2011_v3 = vsub.s32 4294967266, %v2006_v20  ;;  %v2082_v61 = vsel %vm2072_vm9, %v2079_v9, %v2081_v28  ;;  %v3161_v8 = vpop.eup %3160  ;;  %v1697_v16 = vxor.u32 2147483648, %v3159_v18  ;;  %v2022_v19 = vsel %vm1937_vm3, %v2021_v48, %v4266_v32 }
 0x134   : > { %v4339_v60 = vmul.u32.u64.low %v4316_v59, %v2086_v24  ;;  %v4340_v29 = vmul.u32.u64.high %v4316_v59, %v2086_v24, %v4339_v60  ;;  %v1694_v31 = vxor.u32 2147483648, %v3161_v8  ;;  %v2009_v55 = vshrl.u32 %v1991_v47, %v2007_v14 }
 0x135   : > { %v2012_v56 = vadd.s32 127, %v2011_v3  ;;  %v2094_v42 = vmul.u32 %v4316_v59, %v2078_v45  ;;  %v1698_v25 = vsel %vm1696_vm1, %v1697_v16, %v3161_v8  ;;  %v1920_v7 = vsel %vm1918_vm15, %v1697_v16, %v3161_v8 }
 0x136   : > { %v4348_v38 = vmul.u32.u64.low %v4316_v59, %v2082_v61  ;;  %v4349_v53 = vmul.u32.u64.high %v4316_v59, %v2082_v61, %v4348_v38  ;;  %v1695_v32 = vsel %vm1693_vm4, %v3159_v18, %v1694_v31  ;;  %v1917_v47 = vsel %vm1915_vm5, %v3159_v18, %v1694_v31 }
 0x137   : > { %v2010_v23 = vor.u32 %v2009_v55, %v2008_v50  ;;  %v2013_v17 = vshll.u32 %v2012_v56, 23  ;;  %v1699_v36 = vsel %vm1692_vm6, %v1695_v32, %v1698_v25  ;;  %v1921_v12 = vsel %vm1914_vm7, %v1917_v47, %v1920_v7 }
 0x138   : > { %vm2096_vm11 = vc.u32 %v4340_v29, %v4348_v38  ;;  %vm2398_vm12 = vcmp.gt.s32.totalorder %v2397_v5, 0  ;;  %v1700_v52 = vsel %vm1689_vm8, nan, %v1699_v36  ;;  %v1922_v13 = vsel %vm1689_vm8, nan, %v1921_v12 }
 0x139   : > { %v2014_v21 = vor.u32 4788187, %v2013_v17  ;;  %v2017_v6 = vcvt.s32.f32 %v2010_v23  ;;  %v1707_v26 = vrot.slane %v1700_v52, 3  ;;  %v1704_v10 = vcombine.high %v1700_v52, %v1700_v52  ;;  %1931 = vst [vmem:[%s3404_s26 + $0x70] sm:$0x7] %v1922_v13 }
 0x13a   : > { %v1926_v48 = vcombine.high %v1922_v13, %v1922_v13  ;;  %v2097_v0 = vadd.s32 1, %v4349_v53  ;;  %vm4370_vm14 = vcmp.le.f32.partialorder %v1935_v43, 0.7853982  ;;  %v2399_v4 = vsel %vm2398_vm12, %v2397_v5, 0 }
 0x13b   : > { %v2015_v15 = vand.u32 2147483647, %v2014_v21  ;;  %1715 = vst [vmem:[%s3404_s26 + $0x50] sm:$0xe0] %v1707_v26  ;;  %v1708_v30 = vrot.slane %v1704_v10, 3  ;;  %v2024_v34 = vsel %vm4370_vm14, 0, %v2022_v19  ;;  %vm2027_vm6 = vweird.f32 %v3993_v54 }
 0x13c   : > { %1932 = vst [vmem:[%s3404_s26 + $0x78] sm:$0x7] %v1926_v48  ;;  %v2098_v46 = vsel %vm2096_vm11, %v2097_v0, %v4349_v53  ;;  %v2401_v43 = vand.u32 31, %v2399_v4  ;;  %v2394_v63 = vand.u32 8388607, %v2387_v62  ;;  %v2028_v57 = vadd.s32 3, %v2024_v34 }
 0x13d   : > { %v2018_v40 = vmul.f32 %v2017_v6, %v2015_v15  ;;  %v2099_v9 = vadd.s32 %v2098_v46, %v2094_v42  ;;  %1716 = vst [vmem:[%s3404_s26 + $0x58] sm:$0xe0] %v1708_v30  ;;  %v4386_v28 = vshrl.u32 %v2399_v4, 5  ;;  %v4405_v19 = vmul.f32 32.0, %v3402_v1 }
 0x13e   : > { %v2402_v2 = vsub.s32 32, %v2401_v43  ;;  %v2404_v27 = vshll.u32 %v3273_v33, %v2401_v43  ;;  %v2407_v20 = vshll.u32 %v3274_v35, %v2401_v43  ;;  %v2413_v45 = vshll.u32 %v3276_v39, %v2401_v43 }
 0x13f   : > { %v2019_v51 = vxor.u32 2147483648, %v2018_v40  ;;  %v2100_v44 = vadd.s32 536870912, %v2099_v9  ;;  %v2410_v14 = vshll.u32 %v3275_v37, %v2401_v43  ;;  %v2395_v60 = vor.u32 8388608, %v2394_v63 }
 0x140   : > { %v2405_v18 = vshrl.u32 %v3274_v35, %v2402_v2  ;;  %v2408_v3 = vshrl.u32 %v3275_v37, %v2402_v2  ;;  %v2411_v61 = vshrl.u32 %v3276_v39, %v2402_v2  ;;  %v2414_v8 = vshrl.u32 %v3277_v41, %v2402_v2 }
 0x141   : > { %v2020_v24 = vsel %vm1937_vm3, %v2019_v51, %v2018_v40  ;;  %v4393_v5 = vshrl.u32 %v2100_v44, 30  ;;  %v2416_v55 = vshll.u32 %v3277_v41, %v2401_v43  ;;  %v2417_v7 = vshrl.u32 %v3278_v49, %v2402_v2 }
 0x142   : > { %v2023_v50 = vsel %vm4370_vm14, %v3993_v54, %v2020_v24  ;;  %v2415_v31 = vor.u32 %v2414_v8, %v2413_v45  ;;  %v2406_v42 = vor.u32 %v2405_v18, %v2404_v27  ;;  %v2409_v25 = vor.u32 %v2408_v3, %v2407_v20 }
 0x143   : > { %3162 = vcosq.f32 %v2023_v50  ;;  %v2102_v16 = vshll.u32 %v4393_v5, 30  ;;  %v4411_v53 = vand.u32 3, %v2028_v57  ;;  %v2412_v32 = vor.u32 %v2411_v61, %v2410_v14 }
 0x144   : > { %3164 = vsinq.f32 %v2023_v50  ;;  %vm2419_vm0 = vcmp.lt.s32.totalorder %v4386_v28, 1  ;;  %vm2422_vm1 = vcmp.lt.s32.totalorder %v4386_v28, 4  ;;  %vm2421_vm15 = vcmp.lt.s32.totalorder %v4386_v28, 3 }
 0x145   : > { %v4408_v56 = vsub.s32 %v2099_v9, %v2102_v16  ;;  %v2403_v47 = vshrl.u32 %v3273_v33, %v2402_v2  ;;  %v2418_v23 = vor.u32 %v2417_v7, %v2416_v55  ;;  %v2428_v17 = vsel %vm2422_vm1, %v2415_v31, 920167782 }
 0x146   : > { %v4420_v36 = vshll.u32 %v2395_v60, 8  ;;  %vm2420_vm3 = vcmp.lt.s32.totalorder %v4386_v28, 2  ;;  %v2424_v52 = vsel %vm2422_vm1, %v2412_v32, 2102212464  ;;  %v2427_v13 = vsel %vm2419_vm0, %v2406_v42, %v2409_v25 }
 0x147   : > { %v2105_v1 = vsub.s32 0, %v4408_v56  ;;  %vm2030_vm4 = vcmp.lt.s32.totalorder %v4411_v53, 2  ;;  %vm2031_vm5 = vcmp.eq.s32.totalorder %v4411_v53, 0  ;;  %v2252_v21 = vand.u32 3, %v2024_v34 }
 0x148   : > { %v2429_v6 = vsel %vm2421_vm15, %v2412_v32, %v2428_v17  ;;  %v2494_v26 = vand.u32 2139095040, %v4405_v19  ;;  %vm2034_vm7 = vcmp.eq.s32.totalorder %v4411_v53, 2  ;;  %v2095_v10 = vadd.s32 %v4348_v38, %v4340_v29 }
 0x149   : > { %v2991_v12 = vmin.u32 %v2105_v1, %v4408_v56  ;;  %v2431_v0 = vsel %vm2419_vm0, %v2409_v25, %v2412_v32  ;;  %v2423_v59 = vsel %vm2419_vm0, %v2403_v47, %v2406_v42  ;;  %v2425_v15 = vsel %vm2421_vm15, %v2409_v25, %v2424_v52 }
 0x14a   : > { %v2430_v30 = vsel %vm2420_vm3, %v2427_v13, %v2429_v6  ;;  %v2432_v34 = vsel %vm2422_vm1, %v2418_v23, 1326507024  ;;  %vm2253_vm8 = vcmp.lt.s32.totalorder %v2252_v21, 2  ;;  %vm2254_vm9 = vcmp.eq.s32.totalorder %v2252_v21, 0 }
 0x14b   : > { %v2107_v48 = vclz %v2991_v12  ;;  %v2433_v29 = vsel %vm2421_vm15, %v2415_v31, %v2432_v34  ;;  %v4450_v38 = vmul.u32.u64.low %v4420_v36, %v2430_v30  ;;  %v4451_v4 = vmul.u32.u64.high %v4420_v36, %v2430_v30, %v4450_v38 }
 0x14c   : > { %v2434_v40 = vsel %vm2420_vm3, %v2431_v0, %v2433_v29  ;;  %v2495_v9 = vshrl.u32 %v2494_v26, 23  ;;  %vm2257_vm13 = vcmp.eq.s32.totalorder %v2252_v21, 2  ;;  %v2426_v44 = vsel %vm2420_vm3, %v2423_v59, %v2425_v15 }
 0x14d   : > { %v2992_v46 = vadd.s32 4294967294, %v2107_v48  ;;  %v4457_v43 = vmul.u32.u64.low %v4420_v36, %v2434_v40  ;;  %v4458_v63 = vmul.u32.u64.high %v4420_v36, %v2434_v40, %v4457_v43  ;;  %v2491_v2 = vand.u32 2147483647, %v4405_v19 }
 0x14e   : > { %v3006_v27 = vadd.s32 4294967169, %v2495_v9  ;;  %v2125_v3 = vsub.s32 4, %v4393_v5  ;;  %v2445_v61 = vadd.s32 1, %v4451_v4  ;;  %vm2041_vm12 = vcmp.lt.s32.totalorder %v4192_v22, 0 }
 0x14f   : > { %vm2993_vm10 = vcmp.lt.s32.totalorder %v2992_v46, 0  ;;  %vm2444_vm2 = vc.u32 %v4458_v63, %v4450_v38  ;;  %vm4487_vm14 = vcmp.le.f32.partialorder %v2039_v11, 0.7853982 }
 0x150   : > { %v3163_v51 = vpop.eup %3162  ;;  %v2110_v57 = vsel %vm2993_vm10, 0, %v2992_v46  ;;  %v2501_v8 = vadd.s32 1, %v3006_v27  ;;  %v2446_v17 = vsel %vm2444_vm2, %v2445_v61, %v4451_v4  ;;  %v2126_v59 = vsel %vm2041_vm12, %v2125_v3, %v4393_v5 }
 0x151   : > { %v3165_v20 = vpop.eup %3164  ;;  %v2035_v45 = vxor.u32 2147483648, %v3163_v51  ;;  %v2111_v24 = vsub.s32 32, %v2110_v57  ;;  %v2112_v18 = vshll.u32 %v4408_v56, %v2110_v57  ;;  %v2115_v14 = vsub.s32 4294967266, %v2110_v57 }
 0x152   : > { %v2032_v50 = vxor.u32 2147483648, %v3165_v20  ;;  %v2442_v56 = vmul.u32 %v4420_v36, %v2426_v44  ;;  %vm2502_vm11 = vcmp.gt.s32.totalorder %v2501_v8, 0  ;;  %v2498_v46 = vand.u32 8388607, %v2491_v2 }
 0x153   : > { %v2036_v16 = vsel %vm2034_vm7, %v2035_v45, %v3165_v20  ;;  %v2113_v28 = vshrl.u32 %v2095_v10, %v2111_v24  ;;  %v2116_v60 = vadd.s32 127, %v2115_v14  ;;  %v2259_v31 = vsel %vm2257_vm13, %v2035_v45, %v3165_v20 }
 0x154   : > { %v2033_v55 = vsel %vm2031_vm5, %v3163_v51, %v2032_v50  ;;  %v2256_v42 = vsel %vm2254_vm9, %v3163_v51, %v2032_v50  ;;  %v2447_v26 = vadd.s32 %v2446_v17, %v2442_v56  ;;  %v2503_v21 = vsel %vm2502_vm11, %v2501_v8, 0 }
 0x155   : > { %v2037_v25 = vsel %vm2030_vm4, %v2033_v55, %v2036_v16  ;;  %v2114_v7 = vor.u32 %v2113_v28, %v2112_v18  ;;  %v2117_v32 = vshll.u32 %v2116_v60, 23  ;;  %v2260_v1 = vsel %vm2253_vm8, %v2256_v42, %v2259_v31 }
 0x156   : > { %v2038_v47 = vsel %vm2027_vm6, nan, %v2037_v25  ;;  %v2261_v23 = vsel %vm2027_vm6, nan, %v2260_v1  ;;  %v2505_v48 = vand.u32 31, %v2503_v21  ;;  %v2448_v30 = vadd.s32 536870912, %v2447_v26 }
 0x157   : > { %v2147_v36 = vrot.slane %v2038_v47, 5  ;;  %v2145_v12 = vcombine.high %v2038_v47, %v2038_v47  ;;  %v2118_v52 = vor.u32 4788187, %v2117_v32  ;;  %v2121_v53 = vcvt.s32.f32 %v2114_v7 }
 0x158   : > { %v2369_v13 = vrot.slane %v2261_v23, 2  ;;  %v2367_v6 = vcombine.high %v2261_v23, %v2261_v23  ;;  %v2506_v29 = vsub.s32 32, %v2505_v48  ;;  %v2508_v4 = vshll.u32 %v3273_v33, %v2505_v48 }
 0x159   : > { %2155 = vst [vmem:[%s3404_s26 + $0x60] sm:$0x38] %v2147_v36  ;;  %v2148_v10 = vrot.slane %v2145_v12, 5  ;;  %v2119_v54 = vand.u32 2147483647, %v2118_v52  ;;  %v4500_v11 = vshrl.u32 %v2448_v30, 30  ;;  %v2511_v40 = vshll.u32 %v3274_v35, %v2505_v48 }
 0x15a   : > { %2377 = vst [vmem:[%s3404_s26 + $0x80] ss:$-28 sps:$4 sm:$0xc1] %v2369_v13   ;;  %v2370_v15 = vrot.slane %v2367_v6, 2  ;;  %v2514_v9 = vshll.u32 %v3275_v37, %v2505_v48  ;;  %v2517_v5 = vshll.u32 %v3276_v39, %v2505_v48  ;;  %v2509_v51 = vshrl.u32 %v3274_v35, %v2506_v29 }
 0x15b   : > { %2156 = vst [vmem:[%s3404_s26 + $0x68] sm:$0x38] %v2148_v10  ;;  %v2122_v34 = vmul.f32 %v2121_v53, %v2119_v54  ;;  %v2512_v57 = vshrl.u32 %v3275_v37, %v2506_v29  ;;  %v2520_v44 = vshll.u32 %v3277_v41, %v2505_v48  ;;  %v2450_v27 = vshll.u32 %v4500_v11, 30 }
 0x15c   : > { %2378 = vst [vmem:[%s3404_s26 + $0x88] ss:$-28 sps:$4 sm:$0xc1] %v2370_v15   ;;  %v2504_v20 = vshrl.u32 %v2503_v21, 5  ;;  %v2515_v45 = vshrl.u32 %v3276_v39, %v2506_v29  ;;  %v2518_v24 = vshrl.u32 %v3277_v41, %v2506_v29  ;;  %v2499_v14 = vor.u32 8388608, %v2498_v46 }
 0x15d   : > { %v2123_v43 = vxor.u32 2147483648, %v2122_v34  ;;  %v2507_v50 = vshrl.u32 %v3273_v33, %v2506_v29  ;;  %v2521_v3 = vshrl.u32 %v3278_v49, %v2506_v29  ;;  %v2451_v37 = vsub.s32 %v2447_v26, %v2450_v27 }
 0x15e   : > { %v2510_v61 = vor.u32 %v2509_v51, %v2508_v4  ;;  %v2513_v8 = vor.u32 %v2512_v57, %v2511_v40  ;;  %v2516_v16 = vor.u32 %v2515_v45, %v2514_v9  ;;  %v2519_v39 = vor.u32 %v2518_v24, %v2517_v5 }
 0x15f   : > { %v2124_v18 = vsel %vm2041_vm12, %v2123_v43, %v2122_v34  ;;  %v2522_v28 = vor.u32 %v2521_v3, %v2520_v44  ;;  %v2128_v41 = vsel %vm4487_vm14, 0, %v2126_v59  ;;  %v2453_v60 = vsub.s32 0, %v2451_v37 }
 0x160   : > { %v2127_v35 = vsel %vm4487_vm14, %v4192_v22, %v2124_v18  ;;  %vm2523_vm0 = vcmp.lt.s32.totalorder %v2504_v20, 1  ;;  %vm2524_vm1 = vcmp.lt.s32.totalorder %v2504_v20, 2  ;;  %vm2525_vm15 = vcmp.lt.s32.totalorder %v2504_v20, 3 }
 0x161   : > { %3166 = vcosq.f32 %v2127_v35  ;;  %vm2526_vm3 = vcmp.lt.s32.totalorder %v2504_v20, 4  ;;  %v2539_v33 = vshll.u32 %v2499_v14, 8  ;;  %v3003_v49 = vmin.u32 %v2453_v60, %v2451_v37 }
 0x162   : > { %3168 = vsinq.f32 %v2127_v35  ;;  %v2527_v31 = vsel %vm2523_vm0, %v2507_v50, %v2510_v61  ;;  %v2528_v55 = vsel %vm2526_vm3, %v2516_v16, 2102212464  ;;  %v2531_v42 = vsel %vm2523_vm0, %v2510_v61, %v2513_v8 }
 0x163   : > { %v2529_v56 = vsel %vm2525_vm15, %v2513_v8, %v2528_v55  ;;  %v2532_v25 = vsel %vm2526_vm3, %v2519_v39, 920167782  ;;  %v2535_v7 = vsel %vm2523_vm0, %v2513_v8, %v2516_v16  ;;  %v2536_v32 = vsel %vm2526_vm3, %v2522_v28, 1326507024 }
 0x164   : > { %v2132_v1 = vadd.s32 3, %v2128_v41  ;;  %v2455_v47 = vclz %v3003_v49  ;;  %v2355_v23 = vand.u32 3, %v2128_v41  ;;  %v2533_v17 = vsel %vm2525_vm15, %v2516_v16, %v2532_v25 }
 0x165   : > { %v2537_v36 = vsel %vm2525_vm15, %v2519_v39, %v2536_v32  ;;  %v2530_v52 = vsel %vm2524_vm1, %v2527_v31, %v2529_v56  ;;  %v2534_v53 = vsel %vm2524_vm1, %v2531_v42, %v2533_v17  ;;  %v2443_v48 = vadd.s32 %v4450_v38, %v4458_v63 }
 0x166   : > { %v3004_v12 = vadd.s32 4294967294, %v2455_v47  ;;  %v2538_v13 = vsel %vm2524_vm1, %v2535_v7, %v2537_v36  ;;  %v4526_v21 = vmul.u32.u64.low %v2539_v33, %v2534_v53  ;;  %v4527_v10 = vmul.u32.u64.high %v2539_v33, %v2534_v53, %v4526_v21 }
 0x167   : > { %v4523_v6 = vmul.u32.u64.low %v2539_v33, %v2538_v13  ;;  %v4524_v26 = vmul.u32.u64.high %v2539_v33, %v2538_v13, %v4523_v6  ;;  %v2133_v54 = vand.u32 3, %v2132_v1  ;;  %v2546_v34 = vmul.u32 %v2539_v33, %v2530_v52 }
 0x168   : > { %vm3005_vm4 = vcmp.lt.s32.totalorder %v3004_v12, 0  ;;  %vm2356_vm5 = vcmp.lt.s32.totalorder %v2355_v23, 2  ;;  %vm2357_vm6 = vcmp.eq.s32.totalorder %v2355_v23, 0  ;;  %v2549_v46 = vadd.s32 1, %v4527_v10 }
 0x169   : > { %v2458_v0 = vsel %vm3005_vm4, 0, %v3004_v12  ;;  %vm2548_vm7 = vc.u32 %v4524_v26, %v4526_v21  ;;  %vm2138_vm8 = vcmp.eq.s32.totalorder %v2133_v54, 2  ;;  %vm2360_vm9 = vcmp.eq.s32.totalorder %v2355_v23, 2 }
 0x16a   : > { %v2459_v59 = vsub.s32 32, %v2458_v0  ;;  %v2460_v15 = vshll.u32 %v2451_v37, %v2458_v0  ;;  %v2463_v30 = vsub.s32 4294967266, %v2458_v0  ;;  %vm2134_vm10 = vcmp.lt.s32.totalorder %v2133_v54, 2 }
 0x16b   : > { %vm2135_vm13 = vcmp.eq.s32.totalorder %v2133_v54, 0  ;;  %v2550_v63 = vsel %vm2548_vm7, %v2549_v46, %v4527_v10  ;;  %vm2131_vm2 = vweird.f32 %v4192_v22  ;;  %vm2389_vm11 = vcmp.lt.s32.totalorder %v4251_v58, 0 }
 0x16c   : > { %v2461_v4 = vshrl.u32 %v2443_v48, %v2459_v59  ;;  %v2464_v40 = vadd.s32 127, %v2463_v30  ;;  %v2551_v57 = vadd.s32 %v2550_v63, %v2546_v34  ;;  %v2473_v49 = vsub.s32 4, %v4500_v11 }
 0x16d   : > { %vm2388_vm12 = vcmp.le.f32.partialorder %v2387_v62, 0.7853982  ;;  %v2547_v62 = vadd.s32 %v4526_v21, %v4524_v26  ;;  %vm2479_vm4 = vweird.f32 %v4251_v58  ;;  %vm2493_vm7 = vcmp.lt.s32.totalorder %v4405_v19, 0 }
 0x16e   : > { %v3167_v29 = vpop.eup %3166  ;;  %v2462_v43 = vor.u32 %v2461_v4, %v2460_v15  ;;  %v2465_v51 = vshll.u32 %v2464_v40, 23  ;;  %v2552_v3 = vadd.s32 536870912, %v2551_v57  ;;  %v2474_v25 = vsel %vm2389_vm11, %v2473_v49, %v4500_v11 }
 0x16f   : > { %v3169_v9 = vpop.eup %3168  ;;  %v2139_v38 = vxor.u32 2147483648, %v3167_v29  ;;  %v2476_v1 = vsel %vm2388_vm12, 0, %v2474_v25 }
 0x170   : > { %v2136_v5 = vxor.u32 2147483648, %v3169_v9  ;;  %v2466_v24 = vor.u32 4788187, %v2465_v51  ;;  %v2469_v18 = vcvt.s32.f32 %v2462_v43  ;;  %v4539_v41 = vshrl.u32 %v2552_v3, 30 }
 0x171   : > { %v2140_v44 = vsel %vm2138_vm8, %v2139_v38, %v3169_v9  ;;  %v2362_v27 = vsel %vm2360_vm9, %v2139_v38, %v3169_v9  ;;  %v2480_v17 = vadd.s32 3, %v2476_v1  ;;  %v2704_v53 = vand.u32 3, %v2476_v1 }
 0x172   : > { %v2137_v20 = vsel %vm2135_vm13, %v3167_v29, %v2136_v5  ;;  %v2359_v45 = vsel %vm2357_vm6, %v3167_v29, %v2136_v5  ;;  %v2467_v61 = vand.u32 2147483647, %v2466_v24  ;;  %v2554_v55 = vshll.u32 %v4539_v41, 30 }
 0x173   : > { %v2141_v14 = vsel %vm2134_vm10, %v2137_v20, %v2140_v44  ;;  %v2363_v50 = vsel %vm2356_vm5, %v2359_v45, %v2362_v27  ;;  %v2481_v12 = vand.u32 3, %v2480_v17  ;;  %vm2709_vm15 = vcmp.eq.s32.totalorder %v2704_v53, 2 }
 0x174   : > { %v2142_v35 = vsel %vm2131_vm2, nan, %v2141_v14  ;;  %v2364_v37 = vsel %vm2131_vm2, nan, %v2363_v50  ;;  %v2470_v28 = vmul.f32 %v2469_v18, %v2467_v61  ;;  %v2555_v56 = vsub.s32 %v2551_v57, %v2554_v55 }
 0x175   : > { %v2149_v8 = vrot.slane %v2142_v35, 5  ;;  %v2146_v22 = vcombine.high %v2142_v35, %v2142_v35  ;;  %v2371_v16 = vrot.slane %v2364_v37, 2  ;;  %v2368_v39 = vcombine.high %v2364_v37, %v2364_v37 }
 0x176   : > { %v2471_v31 = vxor.u32 2147483648, %v2470_v28  ;;  %v2557_v32 = vsub.s32 0, %v2555_v56  ;;  %vm2483_vm0 = vcmp.eq.s32.totalorder %v2481_v12, 0  ;;  %vm2486_vm1 = vcmp.eq.s32.totalorder %v2481_v12, 2 }
 0x177   : > { %2157 = vst [vmem:[%s3404_s26 + $0x70] sm:$0x38] %v2149_v8  ;;  %v2150_v60 = vrot.slane %v2146_v22, 5  ;;  %2379 = vst [vmem:[%s3404_s26 + $0x90] ss:$-28 sps:$4 sm:$0xc1] %v2371_v16  }
 0x178   : > { %v2372_v33 = vrot.slane %v2368_v39, 2  ;;  %v2472_v42 = vsel %vm2389_vm11, %v2471_v31, %v2470_v28  ;;  %v3007_v47 = vmin.u32 %v2557_v32, %v2555_v56  ;;  %vm2706_vm3 = vcmp.eq.s32.totalorder %v2704_v53, 0 }
 0x179   : > { %2158 = vst [vmem:[%s3404_s26 + $0x78] sm:$0x38] %v2150_v60  ;;  %v2475_v7 = vsel %vm2388_vm12, %v4251_v58, %v2472_v42  ;;  %vm2482_vm5 = vcmp.lt.s32.totalorder %v2481_v12, 2  ;;  %vm2705_vm6 = vcmp.lt.s32.totalorder %v2704_v53, 2  ;;  %v2577_v27 = vsub.s32 4, %v4539_v41 }
 0x17a   : > { %2380 = vst [vmem:[%s3404_s26 + $0x98] ss:$-28 sps:$4 sm:$0xc1] %v2372_v33   ;;  %3170 = vcosq.f32 %v2475_v7  ;;  %v2559_v23 = vclz %v3007_v47  ;;  %vm2492_vm8 = vcmp.le.f32.partialorder %v2491_v2, 0.7853982 }
 0x17b   : > { %3172 = vsinq.f32 %v2475_v7  ;;  %v2578_v18 = vsel %vm2493_vm7, %v2577_v27, %v4539_v41 }
 0x17c   : > { %v3008_v36 = vadd.s32 4294967294, %v2559_v23  ;;  %v2580_v50 = vsel %vm2492_vm8, 0, %v2578_v18 }
 0x17d   : > { %v2584_v3 = vadd.s32 3, %v2580_v50  ;;  %v2807_v37 = vand.u32 3, %v2580_v50 }
 0x17e   : > { %vm3009_vm14 = vcmp.lt.s32.totalorder %v3008_v36, 0 }
 0x17f   : > { %v2562_v52 = vsel %vm3009_vm14, 0, %v3008_v36  ;;  %v2585_v35 = vand.u32 3, %v2584_v3  ;;  %vm2812_vm10 = vcmp.eq.s32.totalorder %v2807_v37, 2  ;;  %vm2809_vm2 = vcmp.eq.s32.totalorder %v2807_v37, 0 }
 0x180   : > { %v2563_v13 = vsub.s32 32, %v2562_v52  ;;  %v2564_v6 = vshll.u32 %v2555_v56, %v2562_v52  ;;  %v2567_v11 = vsub.s32 4294967266, %v2562_v52  ;;  %vm2808_vm12 = vcmp.lt.s32.totalorder %v2807_v37, 2 }
 0x181   : > { %vm2590_vm9 = vcmp.eq.s32.totalorder %v2585_v35, 2  ;;  %vm2587_vm13 = vcmp.eq.s32.totalorder %v2585_v35, 0  ;;  %vm2586_vm11 = vcmp.lt.s32.totalorder %v2585_v35, 2  ;;  %vm2583_vm14 = vweird.f32 %v4405_v19 }
 0x182   : > { %v2565_v10 = vshrl.u32 %v2547_v62, %v2563_v13  ;;  %v2568_v54 = vadd.s32 127, %v2567_v11 }
 0x184   : > { %v2566_v15 = vor.u32 %v2565_v10, %v2564_v6  ;;  %v2569_v30 = vshll.u32 %v2568_v54, 23 }
 0x186   : > { %v2570_v34 = vor.u32 4788187, %v2569_v30  ;;  %v2573_v46 = vcvt.s32.f32 %v2566_v15 }
 0x187   : > { %v3171_v48 = vpop.eup %3170 }
 0x188   : > { %v3173_v0 = vpop.eup %3172  ;;  %v2487_v59 = vxor.u32 2147483648, %v3171_v48  ;;  %v2571_v38 = vand.u32 2147483647, %v2570_v34 }
 0x189   : > { %v2484_v26 = vxor.u32 2147483648, %v3173_v0 }
 0x18a   : > { %v2488_v21 = vsel %vm2486_vm1, %v2487_v59, %v3173_v0  ;;  %v2711_v29 = vsel %vm2709_vm15, %v2487_v59, %v3173_v0  ;;  %v2574_v57 = vmul.f32 %v2573_v46, %v2571_v38 }
 0x18b   : > { %v2485_v4 = vsel %vm2483_vm0, %v3171_v48, %v2484_v26  ;;  %v2708_v40 = vsel %vm2706_vm3, %v3171_v48, %v2484_v26 }
 0x18c   : > { %v2489_v9 = vsel %vm2482_vm5, %v2485_v4, %v2488_v21  ;;  %v2712_v63 = vsel %vm2705_vm6, %v2708_v40, %v2711_v29  ;;  %v2575_v45 = vxor.u32 2147483648, %v2574_v57 }
 0x18d   : > { %v2490_v5 = vsel %vm2479_vm4, nan, %v2489_v9  ;;  %v2713_v43 = vsel %vm2479_vm4, nan, %v2712_v63 }
 0x18e   : > { %v2599_v58 = vrot.slane %v2490_v5, 7  ;;  %v2597_v51 = vcombine.high %v2490_v5, %v2490_v5  ;;  %v2819_v44 = vcombine.low %v2713_v43, %v2713_v43  ;;  %2824 = vst [vmem:[%s3404_s26 + $0x88] sm:$0x70] %v2713_v43  ;;  %v2576_v24 = vsel %vm2493_vm7, %v2575_v45, %v2574_v57 }
 0x18f   : > { %v2579_v14 = vsel %vm2492_vm8, %v4405_v19, %v2576_v24 }
 0x190   : > { %2607 = vst [vmem:[%s3404_s26 + $0x80] sm:$0xe] %v2599_v58  ;;  %v2600_v20 = vrot.slane %v2597_v51, 7  ;;  %2823 = vst [vmem:[%s3404_s26 + $0x80] sm:$0x70] %v2819_v44  ;;  %3174 = vcosq.f32 %v2579_v14 }
 0x191   : > { %3176 = vsinq.f32 %v2579_v14 }
 0x192   : > { %2608 = vst [vmem:[%s3404_s26 + $0x88] sm:$0xe] %v2600_v20 }
 0x19d   : > { %v3175_v61 = vpop.eup %3174 }
 0x19e   : > { %v3177_v2 = vpop.eup %3176  ;;  %v2591_v8 = vxor.u32 2147483648, %v3175_v61 }
 0x19f   : > { %v2588_v22 = vxor.u32 2147483648, %v3177_v2 }
 0x1a0   : > { %v2592_v16 = vsel %vm2590_vm9, %v2591_v8, %v3177_v2  ;;  %v2814_v39 = vsel %vm2812_vm10, %v2591_v8, %v3177_v2 }
 0x1a1   : > { %v2589_v28 = vsel %vm2587_vm13, %v3175_v61, %v2588_v22  ;;  %v2811_v41 = vsel %vm2809_vm2, %v3175_v61, %v2588_v22 }
 0x1a2   : > { %v2593_v60 = vsel %vm2586_vm11, %v2589_v28, %v2592_v16  ;;  %v2815_v33 = vsel %vm2808_vm12, %v2811_v41, %v2814_v39 }
 0x1a3   : > { %v2594_v49 = vsel %vm2583_vm14, nan, %v2593_v60  ;;  %v2816_v31 = vsel %vm2583_vm14, nan, %v2815_v33 }
 0x1a4   : > { %v2601_v55 = vrot.slane %v2594_v49, 7  ;;  %v2598_v42 = vcombine.high %v2594_v49, %v2594_v49  ;;  %v2820_v56 = vcombine.low %v2816_v31, %v2816_v31  ;;  %2826 = vst [vmem:[%s3404_s26 + $0x98] sm:$0x70] %v2816_v31 }
 0x1a6   : > { %2609 = vst [vmem:[%s3404_s26 + $0x90] sm:$0xe] %v2601_v55  ;;  %v2602_v19 = vrot.slane %v2598_v42, 7  ;;  %2825 = vst [vmem:[%s3404_s26 + $0x90] sm:$0x70] %v2820_v56 }
 0x1a8   : > { %2610 = vst [vmem:[%s3404_s26 + $0x98] sm:$0xe] %v2602_v19 }
 0x1a9   : > { %3219 = shalt.err (!%p3216_p10)
}
 0x1aa   : > { %s3220_s11 = scalar_lea.hbm %s4573_s30, 2560  ;;  %s3224_s16 = scalar_lea.hbm %s4622_s1, 5120 }
 0x1ab   : > { %p3221_p2 = scmp.ne.s32.totalorder %s4573_s30, %s3220_s11  ;;  %p3225_p7 = scmp.lt.s32.totalorder %s4573_s30, %s4622_s1 }
 0x1ac   : > { %p3226_p0 = scmp.lt.s32.totalorder %s3224_s16, %s3220_s11 }
 0x1ad   : > { %p3222_p4 = pnand %p3221_p2, %p4653_p12 }
 0x1ae   : > { %p3227_p6 = por %p3226_p0, %p3225_p7 }
 0x1af   : > { %p3223_p9 = pneg %p3222_p4 }
 0x1b1   : > { %p3228_p11 = pnand %p3227_p6, %p3223_p9 }
 0x1b3   : > { %3231 = shalt.err (!%p3228_p11)
}
 0x1b4   : > { %s3280_s23 = smov 512   ;;  %s3281_s24 = smov 1024  }
 0x1b5   : > { %s3282_s25 = smov 32  }
 0x1b6   : > { %3075 = dma.vmem_to_hbm [thread:$0]  (%p4653_p12), %s4575_s27, 2560, %s4573_s30, %s2828_s10, %s3280_s23, %s3281_s24, %s3282_s25  }
 0x1b7 PF: > { %s2856_s26 = sand.u32 1, %s3258_s6   ;;  %p4654_p13 = scmp.ne.s32.totalorder %s4628_s19, 0 }
 0x1b8   : > { %p4655_p1 = scmp.ge.s32.totalorder %s3270_s9, 2  ;;  %s2857_s17 = scalar_lea.sflag [#allocation4], %s2856_s26 }
 0x1ba   : > { %p3082_p3 = pnand %p4655_p1, %p4654_p13 }
 0x1bc   : > { %p3083_p5 = pneg %p3082_p3 }
 0x1be   : > { %3253 = dma.done.wait (%p3083_p5), %s2857_s17, 2560  }
 0x1bf   : > { %3255 = vsyncadd (%p3083_p5), %s2857_s17, 4294964736  ;;  %p14_p8 = scmp.ge.s32.totalorder %s3318_s12, 4   ;;  %s4656_s6 = smov %s3262_s7 }
 0x1c0   : > { %s4657_s7 = smov %s3266_s8  ;;  %s4658_s8 = smov %s3330_s15 }
 0x1c1   : > { %s4659_s9 = smov %s3318_s12  ;;  %16 = sbr.rel (!%p14_p8) target bundleno = 5 (0x5), region = 69 }
 0x1c6   :  { %2862 = vsyncpa [#allocation3], 1 }
 0x1c7   :  { %2864 = vsyncpa [#allocation3 + $0x1], 1 }
 0x1c8   :  { %2865 = vsyncpa [#allocation4], 1 }
 0x1c9   :  { %2867 = vsyncpa [#allocation4 + $0x1], 1 }

</bundles_post_ra>
